<compile_context>
chip_gen: v5e
topology: v5e:2x2
jax: 0.10.0
libtpu: 0.0.40
codegen_flags: <defaults>
</compile_context>

<pallas_src>
import math
import jax
import jax.numpy as jnp
from jax.experimental import pallas as pl
from jax.experimental.pallas import tpu as pltpu

# ------------------------- model hyper-parameters (small) -------------------------
B, S, H = 2, 8, 32
NUM_HEADS = 4
HEAD_DIM = H // NUM_HEADS
FFN = 4 * H
NUM_LAYERS = 4
VOCAB = 64
TYPE_VOCAB = 2
MAX_POS = 16
LN_EPS = 1e-12
SOLDERED_LAYERS = {"wordnet": 1}   # run layers 0..1, insert SolderedKG, then layers 2..3

M = B * S                          # batch folded into the matmul M dimension
ATTN_SCALE = 1.0 / math.sqrt(HEAD_DIM)


# ------------------------- in-kernel helpers -------------------------
def _layer_norm(x, gamma, beta):
    mu = jnp.mean(x, axis=-1, keepdims=True)
    var = jnp.mean((x - mu) ** 2, axis=-1, keepdims=True)
    return (x - mu) * jax.lax.rsqrt(var + LN_EPS) * gamma + beta


def _gelu(x):
    # tanh approximation of GELU; exact-erf GELU differs at ~1e-3 per element.
    return 0.5 * x * (1.0 + jnp.tanh(0.7978845608028654 * (x + 0.044715 * x * x * x)))


# ------------------------- fused KnowBert kernel (single invocation) -------------------------
def knowbert_fused_kernel(
    emb_ref, bias_ref, eg_ref, eb_ref,                       # embeddings / mask / emb-LN
    wqkv_ref, bqkv_ref, wo_ref, bo_ref, g1_ref, b1_ref,      # stacked per-layer params
    w1_ref, bf1_ref, w2_ref, bf2_ref, g2_ref, b2_ref,
    pw_ref, pb_ref,                                          # pooler
    x_ref, pooled_ref,                                       # outputs
):
    # Embedding LayerNorm into a vreg-resident activation (M, H) = (B*S, H).
    x = _layer_norm(emb_ref[...], eg_ref[...], eb_ref[...])
    bias = bias_ref[...]                                     # (B, S, S) pre-broadcast mask bias

    for l in range(NUM_LAYERS):                              # static unroll: full LLO visibility
        xb = x.astype(jnp.bfloat16)
        # Fused QKV projection: one (M, H) x (H, 3H) bf16 matmul, f32 accumulation.
        qkv = jnp.dot(xb, wqkv_ref[l], preferred_element_type=jnp.float32) + bqkv_ref[l]
        qkv3 = qkv.reshape(B, S, 3 * H)
        wo_l = wo_ref[l]                                     # (H, H) bf16

        # Multi-head self-attention.  Each head's context is folded directly into
        # the output projection via the matching row-slice of Wo, so no VMEM
        # scratch, no masked partial stores, no lane-concat relayout.
        attn = jnp.zeros((M, H), jnp.float32)
        for h in range(NUM_HEADS):
            q_h = qkv3[:, :, h * HEAD_DIM:(h + 1) * HEAD_DIM]                  # (B, S, D)
            k_h = qkv3[:, :, H + h * HEAD_DIM:H + (h + 1) * HEAD_DIM]
            v_h = qkv3[:, :, 2 * H + h * HEAD_DIM:2 * H + (h + 1) * HEAD_DIM]
            s = jnp.einsum("bqd,bkd->bqk", q_h, k_h,
                           preferred_element_type=jnp.float32) * ATTN_SCALE + bias
            s = s - jnp.max(s, axis=-1, keepdims=True)
            p = jnp.exp(s)
            p = p / jnp.sum(p, axis=-1, keepdims=True)       # exact softmax
            ctx_h = jnp.einsum("bqk,bkd->bqd", p, v_h,
                               preferred_element_type=jnp.float32)             # (B, S, D)
            attn = attn + jnp.dot(
                ctx_h.reshape(M, HEAD_DIM).astype(jnp.bfloat16),
                wo_l[h * HEAD_DIM:(h + 1) * HEAD_DIM, :],
                preferred_element_type=jnp.float32)
        attn = attn + bo_ref[l]

        y = _layer_norm(x + attn, g1_ref[l], b1_ref[l])

        h1 = _gelu(jnp.dot(y.astype(jnp.bfloat16), w1_ref[l],
                           preferred_element_type=jnp.float32) + bf1_ref[l])
        h2 = jnp.dot(h1.astype(jnp.bfloat16), w2_ref[l],
                     preferred_element_type=jnp.float32) + bf2_ref[l]
        x = _layer_norm(y + h2, g2_ref[l], b2_ref[l])

    x_ref[...] = x

    # Pooler = tanh(CLS @ Wp + bp), written once at the end (no grid conditioning).
    cls = x.reshape(B, S, H)[:, 0, :]                        # (B, H) CLS rows
    pooled_ref[...] = jnp.tanh(
        jnp.dot(cls.astype(jnp.bfloat16), pw_ref[...],
                preferred_element_type=jnp.float32) + pb_ref[...])


def _cost_estimate(args):
    per_layer = (2 * M * H * (3 * H)                           # fused QKV matmul
                 + 2 * 2 * B * NUM_HEADS * S * S * HEAD_DIM    # scores + context
                 + 2 * M * H * H                               # attention out proj
                 + 2 * 2 * M * H * FFN)                        # FFN up + down
    flops = NUM_LAYERS * per_layer + 2 * B * H * H             # + pooler
    transcendentals = NUM_LAYERS * (B * NUM_HEADS * S * S + M * FFN + 4 * M) + B * H
    in_bytes = sum(int(a.size) * a.dtype.itemsize for a in args)
    out_bytes = (M * H + B * H) * 4
    return pl.CostEstimate(flops=flops, transcendentals=transcendentals,
                           bytes_accessed=in_bytes + out_bytes)


def knowbert_encoder(emb2d, attn_bias, params):
    args = (emb2d, attn_bias, params["emb_ln_g"], params["emb_ln_b"],
            params["wqkv"], params["bqkv"], params["wo"], params["bo"],
            params["ln1_g"], params["ln1_b"], params["w1"], params["b1"],
            params["w2"], params["b2"], params["ln2_g"], params["ln2_b"],
            params["pooler_w"], params["pooler_b"])

    # Everything is small enough to sit whole in VMEM: one DMA per array, one
    # kernel invocation, no grid and no streaming pipeline.
    vmem = pl.BlockSpec(memory_space=pltpu.MemorySpace.VMEM)

    x2d, pooled = pl.pallas_call(
        knowbert_fused_kernel,
        out_shape=(jax.ShapeDtypeStruct((M, H), jnp.float32),
                   jax.ShapeDtypeStruct((B, H), jnp.float32)),
        in_specs=[vmem] * len(args),
        out_specs=(vmem, vmem),
        compiler_params=pltpu.CompilerParams(vmem_limit_bytes=32 * 1024 * 1024),
        cost_estimate=_cost_estimate(args),
    )(*args)
    return x2d, pooled


# ------------------------- parameter init (deterministic, synthetic) -------------------------
def init_params(key):
    keys = jax.random.split(key, 8)

    def nrm(k, shape, dtype=jnp.float32):
        return (jax.random.normal(k, shape, jnp.float32) * 0.02).astype(dtype)

    L = NUM_LAYERS
    return {
        "word_emb": nrm(keys[0], (VOCAB, H)),
        "pos_emb": nrm(keys[1], (MAX_POS, H)),
        "type_emb": nrm(keys[2], (TYPE_VOCAB, H)),
        "emb_ln_g": jnp.ones((1, H), jnp.float32),
        "emb_ln_b": jnp.zeros((1, H), jnp.float32),
        "pooler_w": nrm(keys[3], (H, H), jnp.bfloat16),
        "pooler_b": jnp.zeros((1, H), jnp.float32),
        # stacked per-layer weights (bf16 matmul weights, f32 biases / LN params)
        "wqkv": nrm(keys[4], (L, H, 3 * H), jnp.bfloat16),
        "bqkv": jnp.zeros((L, 1, 3 * H), jnp.float32),
        "wo": nrm(keys[5], (L, H, H), jnp.bfloat16),
        "bo": jnp.zeros((L, 1, H), jnp.float32),
        "ln1_g": jnp.ones((L, 1, H), jnp.float32),
        "ln1_b": jnp.zeros((L, 1, H), jnp.float32),
        "w1": nrm(keys[6], (L, H, FFN), jnp.bfloat16),
        "b1": jnp.zeros((L, 1, FFN), jnp.float32),
        "w2": nrm(keys[7], (L, FFN, H), jnp.bfloat16),
        "b2": jnp.zeros((L, 1, H), jnp.float32),
        "ln2_g": jnp.ones((L, 1, H), jnp.float32),
        "ln2_b": jnp.zeros((L, 1, H), jnp.float32),
    }


# ------------------------- KnowBert forward -------------------------
@jax.jit
def _knowbert_core(params, tokens, segment_ids):
    # mask = tokens > 0 ; extended attention mask = (1 - mask) * -10000
    mask = (tokens > 0).astype(jnp.float32)
    # Pre-broadcast the additive bias to (B, S, S): one exact-shape add per head
    # inside the kernel, no repeated broadcast_in_dim.
    attn_bias = jnp.broadcast_to(((1.0 - mask) * -10000.0)[:, None, :], (B, S, S))

    # embedding gathers + sum stay in plain JAX (single (B*S, H) slab into the kernel)
    emb = (params["word_emb"][tokens]
           + params["pos_emb"][:S][None, :, :]
           + params["type_emb"][segment_ids]).reshape(M, H)

    x2d, pooled = knowbert_encoder(emb, attn_bias, params)
    return x2d.reshape(B, S, H), pooled


def knowbert_forward(params, tokens, segment_ids, candidates):
    assert candidates.keys() == SOLDERED_LAYERS.keys()

    contextual, pooled = _knowbert_core(params, tokens, segment_ids)

    # The layer split at the soldered-KG insertion indices is respected
    # structurally, but since the SolderedKG forward is an external module the
    # contextual embeddings pass through unchanged, so all layers run fused.
    # TODO(synk): SolderedKG forward (entity linker + span-attention
    # recontextualizer) is an external module whose code is not provided.
    output = {}
    layer_to_soldered_kg = sorted((l, k) for k, l in SOLDERED_LAYERS.items())
    layer_to_soldered_kg.append((NUM_LAYERS - 1, None))
    for _, soldered_kg_key in layer_to_soldered_kg:
        if soldered_kg_key is not None:
            output[soldered_kg_key] = {}

    output["loss"] = 0.0
    output["pooled_output"] = pooled
    output["contextual_embeddings"] = contextual
    return output


# ------------------------- main -------------------------
if __name__ == "__main__":
    key = jax.random.PRNGKey(0)
    pkey, tkey = jax.random.split(key)
    params = init_params(pkey)

    tokens = jax.random.randint(tkey, (B, S), 1, VOCAB, dtype=jnp.int32)
    tokens = tokens.at[0, -2:].set(0).at[1, -3:].set(0)          # zero padding
    segment_ids = jnp.zeros((B, S), jnp.int32).at[:, S // 2:].set(1)

    num_ents, num_cands = 2, 3
    candidates = {
        "wordnet": {
            "candidate_entity_priors": jnp.full((B, num_ents, num_cands), 1.0 / num_cands, jnp.float32),
            "ids": jnp.ones((B, num_ents, num_cands), jnp.int32),
            "candidate_spans": jnp.array([[[0, 1], [2, 3]], [[1, 2], [-1, -1]]], jnp.int32),
            "candidate_segment_ids": jnp.zeros((B, num_ents), jnp.int32),
        }
    }

    out = knowbert_forward(params, tokens, segment_ids, candidates)
    jax.block_until_ready(out["pooled_output"])
    jax.block_until_ready(out["contextual_embeddings"])
    assert out["pooled_output"].shape == (B, H)
    assert out["contextual_embeddings"].shape == (B, S, H)
    assert bool(jnp.all(jnp.isfinite(out["pooled_output"])))
    assert bool(jnp.all(jnp.isfinite(out["contextual_embeddings"])))
    print("KERNEL_OK")
</pallas_src>

<mosaic_0001>
module attributes {stable_mosaic.version = 11 : i64} {
  func.func @knowbert_fused_kernel(%arg0: memref<16x32xf32, #tpu.memory_space<vmem>>, %arg1: memref<2x8x8xf32, #tpu.memory_space<vmem>>, %arg2: memref<1x32xf32, #tpu.memory_space<vmem>>, %arg3: memref<1x32xf32, #tpu.memory_space<vmem>>, %arg4: memref<4x32x96xbf16, #tpu.memory_space<vmem>>, %arg5: memref<4x1x96xf32, #tpu.memory_space<vmem>>, %arg6: memref<4x32x32xbf16, #tpu.memory_space<vmem>>, %arg7: memref<4x1x32xf32, #tpu.memory_space<vmem>>, %arg8: memref<4x1x32xf32, #tpu.memory_space<vmem>>, %arg9: memref<4x1x32xf32, #tpu.memory_space<vmem>>, %arg10: memref<4x32x128xbf16, #tpu.memory_space<vmem>>, %arg11: memref<4x1x128xf32, #tpu.memory_space<vmem>>, %arg12: memref<4x128x32xbf16, #tpu.memory_space<vmem>>, %arg13: memref<4x1x32xf32, #tpu.memory_space<vmem>>, %arg14: memref<4x1x32xf32, #tpu.memory_space<vmem>>, %arg15: memref<4x1x32xf32, #tpu.memory_space<vmem>>, %arg16: memref<32x32xbf16, #tpu.memory_space<vmem>>, %arg17: memref<1x32xf32, #tpu.memory_space<vmem>>, %arg18: memref<16x32xf32, #tpu.memory_space<vmem>>, %arg19: memref<2x32xf32, #tpu.memory_space<vmem>>) attributes {dimension_semantics = [], scalar_prefetch = 0 : i64, scratch_operands = 0 : i64, tpu.core_type = #tpu.core_type<tc>} {
    %c0 = arith.constant 0 : index
    %c0_0 = arith.constant 0 : index
    %0 = vector.load %arg0[%c0, %c0_0] : memref<16x32xf32, #tpu.memory_space<vmem>>, vector<16x32xf32>
    %c0_1 = arith.constant 0 : index
    %c0_2 = arith.constant 0 : index
    %1 = vector.load %arg2[%c0_1, %c0_2] : memref<1x32xf32, #tpu.memory_space<vmem>>, vector<1x32xf32>
    %c0_3 = arith.constant 0 : index
    %c0_4 = arith.constant 0 : index
    %2 = vector.load %arg3[%c0_3, %c0_4] : memref<1x32xf32, #tpu.memory_space<vmem>>, vector<1x32xf32>
    %cst = arith.constant dense<0.000000e+00> : vector<16xf32>
    %3 = vector.multi_reduction <add>, %0, %cst [1] : vector<16x32xf32> to vector<16xf32>
    %4 = vector.shape_cast %3 : vector<16xf32> to vector<16x1xf32>
    %cst_5 = arith.constant 3.200000e+01 : f32
    %5 = vector.broadcast %cst_5 : f32 to vector<16x1xf32>
    %6 = arith.divf %4, %5 : vector<16x1xf32>
    %7 = vector.broadcast %6 : vector<16x1xf32> to vector<16x32xf32>
    %8 = arith.subf %0, %7 : vector<16x32xf32>
    %9 = arith.mulf %8, %8 : vector<16x32xf32>
    %cst_6 = arith.constant dense<0.000000e+00> : vector<16xf32>
    %10 = vector.multi_reduction <add>, %9, %cst_6 [1] : vector<16x32xf32> to vector<16xf32>
    %11 = vector.shape_cast %10 : vector<16xf32> to vector<16x1xf32>
    %cst_7 = arith.constant 3.200000e+01 : f32
    %12 = vector.broadcast %cst_7 : f32 to vector<16x1xf32>
    %13 = arith.divf %11, %12 : vector<16x1xf32>
    %14 = vector.broadcast %6 : vector<16x1xf32> to vector<16x32xf32>
    %15 = arith.subf %0, %14 : vector<16x32xf32>
    %cst_8 = arith.constant 9.99999996E-13 : f32
    %16 = vector.broadcast %cst_8 : f32 to vector<16x1xf32>
    %17 = arith.addf %13, %16 : vector<16x1xf32>
    %18 = math.rsqrt %17 : vector<16x1xf32>
    %19 = vector.broadcast %18 : vector<16x1xf32> to vector<16x32xf32>
    %20 = arith.mulf %15, %19 : vector<16x32xf32>
    %21 = vector.broadcast %1 : vector<1x32xf32> to vector<16x32xf32>
    %22 = arith.mulf %20, %21 : vector<16x32xf32>
    %23 = vector.broadcast %2 : vector<1x32xf32> to vector<16x32xf32>
    %24 = arith.addf %22, %23 : vector<16x32xf32>
    %c0_9 = arith.constant 0 : index
    %c0_10 = arith.constant 0 : index
    %c0_11 = arith.constant 0 : index
    %25 = vector.load %arg1[%c0_9, %c0_10, %c0_11] : memref<2x8x8xf32, #tpu.memory_space<vmem>>, vector<2x8x8xf32>
    %26 = arith.truncf %24 : vector<16x32xf32> to vector<16x32xbf16>
    %c0_12 = arith.constant 0 : index
    %c0_13 = arith.constant 0 : index
    %c0_14 = arith.constant 0 : index
    %27 = vector.load %arg4[%c0_12, %c0_13, %c0_14] : memref<4x32x96xbf16, #tpu.memory_space<vmem>>, vector<1x32x96xbf16>
    %28 = vector.shape_cast %27 : vector<1x32x96xbf16> to vector<32x96xbf16>
    %cst_15 = arith.constant dense<0.000000e+00> : vector<16x96xf32>
    %29 = tpu.matmul %26, %28, %cst_15 {dimension_numbers = #tpu.dot_dimension_numbers<[1], [0], [0], [1], [0, 0, 1, 1], [], []>} : vector<16x32xbf16>, vector<32x96xbf16>, vector<16x96xf32> -> vector<16x96xf32>
    %c0_16 = arith.constant 0 : index
    %c0_17 = arith.constant 0 : index
    %c0_18 = arith.constant 0 : index
    %30 = vector.load %arg5[%c0_16, %c0_17, %c0_18] : memref<4x1x96xf32, #tpu.memory_space<vmem>>, vector<1x1x96xf32>
    %31 = vector.shape_cast %30 : vector<1x1x96xf32> to vector<1x96xf32>
    %32 = vector.broadcast %31 : vector<1x96xf32> to vector<16x96xf32>
    %33 = arith.addf %29, %32 : vector<16x96xf32>
    %34 = vector.shape_cast %33 : vector<16x96xf32> to vector<2x8x96xf32>
    %c0_19 = arith.constant 0 : index
    %c0_20 = arith.constant 0 : index
    %c0_21 = arith.constant 0 : index
    %35 = vector.load %arg6[%c0_19, %c0_20, %c0_21] : memref<4x32x32xbf16, #tpu.memory_space<vmem>>, vector<1x32x32xbf16>
    %36 = vector.shape_cast %35 : vector<1x32x32xbf16> to vector<32x32xbf16>
    %cst_22 = arith.constant 0.000000e+00 : f32
    %37 = vector.broadcast %cst_22 : f32 to vector<16x32xf32>
    %38 = vector.extract_strided_slice %34 {offsets = [0, 0, 0], sizes = [2, 8, 8], strides = [1, 1, 1]} : vector<2x8x96xf32> to vector<2x8x8xf32>
    %39 = vector.extract_strided_slice %34 {offsets = [0, 0, 32], sizes = [2, 8, 8], strides = [1, 1, 1]} : vector<2x8x96xf32> to vector<2x8x8xf32>
    %40 = vector.extract_strided_slice %34 {offsets = [0, 0, 64], sizes = [2, 8, 8], strides = [1, 1, 1]} : vector<2x8x96xf32> to vector<2x8x8xf32>
    "tpu.trace_start"() <{level = 10 : i32, message = "bqd,bkd->bqk"}> : () -> ()
    %cst_23 = arith.constant dense<0.000000e+00> : vector<2x8x8xf32>
    %41 = tpu.matmul %38, %39, %cst_23 {dimension_numbers = #tpu.dot_dimension_numbers<[2], [2], [1], [1], [0, 0, 0, 1, 1, 1], [0], [0]>} : vector<2x8x8xf32>, vector<2x8x8xf32>, vector<2x8x8xf32> -> vector<2x8x8xf32>
    "tpu.trace_stop"() : () -> ()
    %cst_24 = arith.constant 0.353553385 : f32
    %42 = vector.broadcast %cst_24 : f32 to vector<2x8x8xf32>
    %43 = arith.mulf %41, %42 : vector<2x8x8xf32>
    %44 = arith.addf %43, %25 : vector<2x8x8xf32>
    %cst_25 = arith.constant dense<0xFF800000> : vector<2x8xf32>
    %45 = vector.multi_reduction <maximumf>, %44, %cst_25 [2] : vector<2x8x8xf32> to vector<2x8xf32>
    %46 = vector.shape_cast %45 : vector<2x8xf32> to vector<2x8x1xf32>
    %47 = vector.broadcast %46 : vector<2x8x1xf32> to vector<2x8x8xf32>
    %48 = arith.subf %44, %47 : vector<2x8x8xf32>
    %49 = math.exp %48 : vector<2x8x8xf32>
    %cst_26 = arith.constant dense<0.000000e+00> : vector<2x8xf32>
    %50 = vector.multi_reduction <add>, %49, %cst_26 [2] : vector<2x8x8xf32> to vector<2x8xf32>
    %51 = vector.shape_cast %50 : vector<2x8xf32> to vector<2x8x1xf32>
    %52 = vector.broadcast %51 : vector<2x8x1xf32> to vector<2x8x8xf32>
    %53 = arith.divf %49, %52 : vector<2x8x8xf32>
    "tpu.trace_start"() <{level = 10 : i32, message = "bqk,bkd->bqd"}> : () -> ()
    %cst_27 = arith.constant dense<0.000000e+00> : vector<2x8x8xf32>
    %54 = tpu.matmul %53, %40, %cst_27 {dimension_numbers = #tpu.dot_dimension_numbers<[2], [1], [1], [2], [0, 0, 0, 1, 1, 2], [0], [0]>} : vector<2x8x8xf32>, vector<2x8x8xf32>, vector<2x8x8xf32> -> vector<2x8x8xf32>
    "tpu.trace_stop"() : () -> ()
    %55 = vector.shape_cast %54 : vector<2x8x8xf32> to vector<16x8xf32>
    %56 = arith.truncf %55 : vector<16x8xf32> to vector<16x8xbf16>
    %57 = vector.extract_strided_slice %36 {offsets = [0, 0], sizes = [8, 32], strides = [1, 1]} : vector<32x32xbf16> to vector<8x32xbf16>
    %cst_28 = arith.constant dense<0.000000e+00> : vector<16x32xf32>
    %58 = tpu.matmul %56, %57, %cst_28 {dimension_numbers = #tpu.dot_dimension_numbers<[1], [0], [0], [1], [0, 0, 1, 1], [], []>} : vector<16x8xbf16>, vector<8x32xbf16>, vector<16x32xf32> -> vector<16x32xf32>
    %59 = arith.addf %37, %58 : vector<16x32xf32>
    %60 = vector.extract_strided_slice %34 {offsets = [0, 0, 8], sizes = [2, 8, 8], strides = [1, 1, 1]} : vector<2x8x96xf32> to vector<2x8x8xf32>
    %61 = vector.extract_strided_slice %34 {offsets = [0, 0, 40], sizes = [2, 8, 8], strides = [1, 1, 1]} : vector<2x8x96xf32> to vector<2x8x8xf32>
    %62 = vector.extract_strided_slice %34 {offsets = [0, 0, 72], sizes = [2, 8, 8], strides = [1, 1, 1]} : vector<2x8x96xf32> to vector<2x8x8xf32>
    "tpu.trace_start"() <{level = 10 : i32, message = "bqd,bkd->bqk"}> : () -> ()
    %cst_29 = arith.constant dense<0.000000e+00> : vector<2x8x8xf32>
    %63 = tpu.matmul %60, %61, %cst_29 {dimension_numbers = #tpu.dot_dimension_numbers<[2], [2], [1], [1], [0, 0, 0, 1, 1, 1], [0], [0]>} : vector<2x8x8xf32>, vector<2x8x8xf32>, vector<2x8x8xf32> -> vector<2x8x8xf32>
    "tpu.trace_stop"() : () -> ()
    %cst_30 = arith.constant 0.353553385 : f32
    %64 = vector.broadcast %cst_30 : f32 to vector<2x8x8xf32>
    %65 = arith.mulf %63, %64 : vector<2x8x8xf32>
    %66 = arith.addf %65, %25 : vector<2x8x8xf32>
    %cst_31 = arith.constant dense<0xFF800000> : vector<2x8xf32>
    %67 = vector.multi_reduction <maximumf>, %66, %cst_31 [2] : vector<2x8x8xf32> to vector<2x8xf32>
    %68 = vector.shape_cast %67 : vector<2x8xf32> to vector<2x8x1xf32>
    %69 = vector.broadcast %68 : vector<2x8x1xf32> to vector<2x8x8xf32>
    %70 = arith.subf %66, %69 : vector<2x8x8xf32>
    %71 = math.exp %70 : vector<2x8x8xf32>
    %cst_32 = arith.constant dense<0.000000e+00> : vector<2x8xf32>
    %72 = vector.multi_reduction <add>, %71, %cst_32 [2] : vector<2x8x8xf32> to vector<2x8xf32>
    %73 = vector.shape_cast %72 : vector<2x8xf32> to vector<2x8x1xf32>
    %74 = vector.broadcast %73 : vector<2x8x1xf32> to vector<2x8x8xf32>
    %75 = arith.divf %71, %74 : vector<2x8x8xf32>
    "tpu.trace_start"() <{level = 10 : i32, message = "bqk,bkd->bqd"}> : () -> ()
    %cst_33 = arith.constant dense<0.000000e+00> : vector<2x8x8xf32>
    %76 = tpu.matmul %75, %62, %cst_33 {dimension_numbers = #tpu.dot_dimension_numbers<[2], [1], [1], [2], [0, 0, 0, 1, 1, 2], [0], [0]>} : vector<2x8x8xf32>, vector<2x8x8xf32>, vector<2x8x8xf32> -> vector<2x8x8xf32>
    "tpu.trace_stop"() : () -> ()
    %77 = vector.shape_cast %76 : vector<2x8x8xf32> to vector<16x8xf32>
    %78 = arith.truncf %77 : vector<16x8xf32> to vector<16x8xbf16>
    %79 = vector.extract_strided_slice %36 {offsets = [8, 0], sizes = [8, 32], strides = [1, 1]} : vector<32x32xbf16> to vector<8x32xbf16>
    %cst_34 = arith.constant dense<0.000000e+00> : vector<16x32xf32>
    %80 = tpu.matmul %78, %79, %cst_34 {dimension_numbers = #tpu.dot_dimension_numbers<[1], [0], [0], [1], [0, 0, 1, 1], [], []>} : vector<16x8xbf16>, vector<8x32xbf16>, vector<16x32xf32> -> vector<16x32xf32>
    %81 = arith.addf %59, %80 : vector<16x32xf32>
    %82 = vector.extract_strided_slice %34 {offsets = [0, 0, 16], sizes = [2, 8, 8], strides = [1, 1, 1]} : vector<2x8x96xf32> to vector<2x8x8xf32>
    %83 = vector.extract_strided_slice %34 {offsets = [0, 0, 48], sizes = [2, 8, 8], strides = [1, 1, 1]} : vector<2x8x96xf32> to vector<2x8x8xf32>
    %84 = vector.extract_strided_slice %34 {offsets = [0, 0, 80], sizes = [2, 8, 8], strides = [1, 1, 1]} : vector<2x8x96xf32> to vector<2x8x8xf32>
    "tpu.trace_start"() <{level = 10 : i32, message = "bqd,bkd->bqk"}> : () -> ()
    %cst_35 = arith.constant dense<0.000000e+00> : vector<2x8x8xf32>
    %85 = tpu.matmul %82, %83, %cst_35 {dimension_numbers = #tpu.dot_dimension_numbers<[2], [2], [1], [1], [0, 0, 0, 1, 1, 1], [0], [0]>} : vector<2x8x8xf32>, vector<2x8x8xf32>, vector<2x8x8xf32> -> vector<2x8x8xf32>
    "tpu.trace_stop"() : () -> ()
    %cst_36 = arith.constant 0.353553385 : f32
    %86 = vector.broadcast %cst_36 : f32 to vector<2x8x8xf32>
    %87 = arith.mulf %85, %86 : vector<2x8x8xf32>
    %88 = arith.addf %87, %25 : vector<2x8x8xf32>
    %cst_37 = arith.constant dense<0xFF800000> : vector<2x8xf32>
    %89 = vector.multi_reduction <maximumf>, %88, %cst_37 [2] : vector<2x8x8xf32> to vector<2x8xf32>
    %90 = vector.shape_cast %89 : vector<2x8xf32> to vector<2x8x1xf32>
    %91 = vector.broadcast %90 : vector<2x8x1xf32> to vector<2x8x8xf32>
    %92 = arith.subf %88, %91 : vector<2x8x8xf32>
    %93 = math.exp %92 : vector<2x8x8xf32>
    %cst_38 = arith.constant dense<0.000000e+00> : vector<2x8xf32>
    %94 = vector.multi_reduction <add>, %93, %cst_38 [2] : vector<2x8x8xf32> to vector<2x8xf32>
    %95 = vector.shape_cast %94 : vector<2x8xf32> to vector<2x8x1xf32>
    %96 = vector.broadcast %95 : vector<2x8x1xf32> to vector<2x8x8xf32>
    %97 = arith.divf %93, %96 : vector<2x8x8xf32>
    "tpu.trace_start"() <{level = 10 : i32, message = "bqk,bkd->bqd"}> : () -> ()
    %cst_39 = arith.constant dense<0.000000e+00> : vector<2x8x8xf32>
    %98 = tpu.matmul %97, %84, %cst_39 {dimension_numbers = #tpu.dot_dimension_numbers<[2], [1], [1], [2], [0, 0, 0, 1, 1, 2], [0], [0]>} : vector<2x8x8xf32>, vector<2x8x8xf32>, vector<2x8x8xf32> -> vector<2x8x8xf32>
    "tpu.trace_stop"() : () -> ()
    %99 = vector.shape_cast %98 : vector<2x8x8xf32> to vector<16x8xf32>
    %100 = arith.truncf %99 : vector<16x8xf32> to vector<16x8xbf16>
    %101 = vector.extract_strided_slice %36 {offsets = [16, 0], sizes = [8, 32], strides = [1, 1]} : vector<32x32xbf16> to vector<8x32xbf16>
    %cst_40 = arith.constant dense<0.000000e+00> : vector<16x32xf32>
    %102 = tpu.matmul %100, %101, %cst_40 {dimension_numbers = #tpu.dot_dimension_numbers<[1], [0], [0], [1], [0, 0, 1, 1], [], []>} : vector<16x8xbf16>, vector<8x32xbf16>, vector<16x32xf32> -> vector<16x32xf32>
    %103 = arith.addf %81, %102 : vector<16x32xf32>
    %104 = vector.extract_strided_slice %34 {offsets = [0, 0, 24], sizes = [2, 8, 8], strides = [1, 1, 1]} : vector<2x8x96xf32> to vector<2x8x8xf32>
    %105 = vector.extract_strided_slice %34 {offsets = [0, 0, 56], sizes = [2, 8, 8], strides = [1, 1, 1]} : vector<2x8x96xf32> to vector<2x8x8xf32>
    %106 = vector.extract_strided_slice %34 {offsets = [0, 0, 88], sizes = [2, 8, 8], strides = [1, 1, 1]} : vector<2x8x96xf32> to vector<2x8x8xf32>
    "tpu.trace_start"() <{level = 10 : i32, message = "bqd,bkd->bqk"}> : () -> ()
    %cst_41 = arith.constant dense<0.000000e+00> : vector<2x8x8xf32>
    %107 = tpu.matmul %104, %105, %cst_41 {dimension_numbers = #tpu.dot_dimension_numbers<[2], [2], [1], [1], [0, 0, 0, 1, 1, 1], [0], [0]>} : vector<2x8x8xf32>, vector<2x8x8xf32>, vector<2x8x8xf32> -> vector<2x8x8xf32>
    "tpu.trace_stop"() : () -> ()
    %cst_42 = arith.constant 0.353553385 : f32
    %108 = vector.broadcast %cst_42 : f32 to vector<2x8x8xf32>
    %109 = arith.mulf %107, %108 : vector<2x8x8xf32>
    %110 = arith.addf %109, %25 : vector<2x8x8xf32>
    %cst_43 = arith.constant dense<0xFF800000> : vector<2x8xf32>
    %111 = vector.multi_reduction <maximumf>, %110, %cst_43 [2] : vector<2x8x8xf32> to vector<2x8xf32>
    %112 = vector.shape_cast %111 : vector<2x8xf32> to vector<2x8x1xf32>
    %113 = vector.broadcast %112 : vector<2x8x1xf32> to vector<2x8x8xf32>
    %114 = arith.subf %110, %113 : vector<2x8x8xf32>
    %115 = math.exp %114 : vector<2x8x8xf32>
    %cst_44 = arith.constant dense<0.000000e+00> : vector<2x8xf32>
    %116 = vector.multi_reduction <add>, %115, %cst_44 [2] : vector<2x8x8xf32> to vector<2x8xf32>
    %117 = vector.shape_cast %116 : vector<2x8xf32> to vector<2x8x1xf32>
    %118 = vector.broadcast %117 : vector<2x8x1xf32> to vector<2x8x8xf32>
    %119 = arith.divf %115, %118 : vector<2x8x8xf32>
    "tpu.trace_start"() <{level = 10 : i32, message = "bqk,bkd->bqd"}> : () -> ()
    %cst_45 = arith.constant dense<0.000000e+00> : vector<2x8x8xf32>
    %120 = tpu.matmul %119, %106, %cst_45 {dimension_numbers = #tpu.dot_dimension_numbers<[2], [1], [1], [2], [0, 0, 0, 1, 1, 2], [0], [0]>} : vector<2x8x8xf32>, vector<2x8x8xf32>, vector<2x8x8xf32> -> vector<2x8x8xf32>
    "tpu.trace_stop"() : () -> ()
    %121 = vector.shape_cast %120 : vector<2x8x8xf32> to vector<16x8xf32>
    %122 = arith.truncf %121 : vector<16x8xf32> to vector<16x8xbf16>
    %123 = vector.extract_strided_slice %36 {offsets = [24, 0], sizes = [8, 32], strides = [1, 1]} : vector<32x32xbf16> to vector<8x32xbf16>
    %cst_46 = arith.constant dense<0.000000e+00> : vector<16x32xf32>
    %124 = tpu.matmul %122, %123, %cst_46 {dimension_numbers = #tpu.dot_dimension_numbers<[1], [0], [0], [1], [0, 0, 1, 1], [], []>} : vector<16x8xbf16>, vector<8x32xbf16>, vector<16x32xf32> -> vector<16x32xf32>
    %125 = arith.addf %103, %124 : vector<16x32xf32>
    %c0_47 = arith.constant 0 : index
    %c0_48 = arith.constant 0 : index
    %c0_49 = arith.constant 0 : index
    %126 = vector.load %arg7[%c0_47, %c0_48, %c0_49] : memref<4x1x32xf32, #tpu.memory_space<vmem>>, vector<1x1x32xf32>
    %127 = vector.shape_cast %126 : vector<1x1x32xf32> to vector<1x32xf32>
    %128 = vector.broadcast %127 : vector<1x32xf32> to vector<16x32xf32>
    %129 = arith.addf %125, %128 : vector<16x32xf32>
    %130 = arith.addf %24, %129 : vector<16x32xf32>
    %c0_50 = arith.constant 0 : index
    %c0_51 = arith.constant 0 : index
    %c0_52 = arith.constant 0 : index
    %131 = vector.load %arg8[%c0_50, %c0_51, %c0_52] : memref<4x1x32xf32, #tpu.memory_space<vmem>>, vector<1x1x32xf32>
    %132 = vector.shape_cast %131 : vector<1x1x32xf32> to vector<1x32xf32>
    %c0_53 = arith.constant 0 : index
    %c0_54 = arith.constant 0 : index
    %c0_55 = arith.constant 0 : index
    %133 = vector.load %arg9[%c0_53, %c0_54, %c0_55] : memref<4x1x32xf32, #tpu.memory_space<vmem>>, vector<1x1x32xf32>
    %134 = vector.shape_cast %133 : vector<1x1x32xf32> to vector<1x32xf32>
    %cst_56 = arith.constant dense<0.000000e+00> : vector<16xf32>
    %135 = vector.multi_reduction <add>, %130, %cst_56 [1] : vector<16x32xf32> to vector<16xf32>
    %136 = vector.shape_cast %135 : vector<16xf32> to vector<16x1xf32>
    %cst_57 = arith.constant 3.200000e+01 : f32
    %137 = vector.broadcast %cst_57 : f32 to vector<16x1xf32>
    %138 = arith.divf %136, %137 : vector<16x1xf32>
    %139 = vector.broadcast %138 : vector<16x1xf32> to vector<16x32xf32>
    %140 = arith.subf %130, %139 : vector<16x32xf32>
    %141 = arith.mulf %140, %140 : vector<16x32xf32>
    %cst_58 = arith.constant dense<0.000000e+00> : vector<16xf32>
    %142 = vector.multi_reduction <add>, %141, %cst_58 [1] : vector<16x32xf32> to vector<16xf32>
    %143 = vector.shape_cast %142 : vector<16xf32> to vector<16x1xf32>
    %cst_59 = arith.constant 3.200000e+01 : f32
    %144 = vector.broadcast %cst_59 : f32 to vector<16x1xf32>
    %145 = arith.divf %143, %144 : vector<16x1xf32>
    %146 = vector.broadcast %138 : vector<16x1xf32> to vector<16x32xf32>
    %147 = arith.subf %130, %146 : vector<16x32xf32>
    %cst_60 = arith.constant 9.99999996E-13 : f32
    %148 = vector.broadcast %cst_60 : f32 to vector<16x1xf32>
    %149 = arith.addf %145, %148 : vector<16x1xf32>
    %150 = math.rsqrt %149 : vector<16x1xf32>
    %151 = vector.broadcast %150 : vector<16x1xf32> to vector<16x32xf32>
    %152 = arith.mulf %147, %151 : vector<16x32xf32>
    %153 = vector.broadcast %132 : vector<1x32xf32> to vector<16x32xf32>
    %154 = arith.mulf %152, %153 : vector<16x32xf32>
    %155 = vector.broadcast %134 : vector<1x32xf32> to vector<16x32xf32>
    %156 = arith.addf %154, %155 : vector<16x32xf32>
    %157 = arith.truncf %156 : vector<16x32xf32> to vector<16x32xbf16>
    %c0_61 = arith.constant 0 : index
    %c0_62 = arith.constant 0 : index
    %c0_63 = arith.constant 0 : index
    %158 = vector.load %arg10[%c0_61, %c0_62, %c0_63] : memref<4x32x128xbf16, #tpu.memory_space<vmem>>, vector<1x32x128xbf16>
    %159 = vector.shape_cast %158 : vector<1x32x128xbf16> to vector<32x128xbf16>
    %cst_64 = arith.constant dense<0.000000e+00> : vector<16x128xf32>
    %160 = tpu.matmul %157, %159, %cst_64 {dimension_numbers = #tpu.dot_dimension_numbers<[1], [0], [0], [1], [0, 0, 1, 1], [], []>} : vector<16x32xbf16>, vector<32x128xbf16>, vector<16x128xf32> -> vector<16x128xf32>
    %c0_65 = arith.constant 0 : index
    %c0_66 = arith.constant 0 : index
    %c0_67 = arith.constant 0 : index
    %161 = vector.load %arg11[%c0_65, %c0_66, %c0_67] : memref<4x1x128xf32, #tpu.memory_space<vmem>>, vector<1x1x128xf32>
    %162 = vector.shape_cast %161 : vector<1x1x128xf32> to vector<1x128xf32>
    %163 = vector.broadcast %162 : vector<1x128xf32> to vector<16x128xf32>
    %164 = arith.addf %160, %163 : vector<16x128xf32>
    %cst_68 = arith.constant 5.000000e-01 : f32
    %165 = vector.broadcast %cst_68 : f32 to vector<16x128xf32>
    %166 = arith.mulf %165, %164 : vector<16x128xf32>
    %cst_69 = arith.constant 4.471500e-02 : f32
    %167 = vector.broadcast %cst_69 : f32 to vector<16x128xf32>
    %168 = arith.mulf %167, %164 : vector<16x128xf32>
    %169 = arith.mulf %168, %164 : vector<16x128xf32>
    %170 = arith.mulf %169, %164 : vector<16x128xf32>
    %171 = arith.addf %164, %170 : vector<16x128xf32>
    %cst_70 = arith.constant 0.797884583 : f32
    %172 = vector.broadcast %cst_70 : f32 to vector<16x128xf32>
    %173 = arith.mulf %172, %171 : vector<16x128xf32>
    %174 = math.tanh %173 : vector<16x128xf32>
    %cst_71 = arith.constant 1.000000e+00 : f32
    %175 = vector.broadcast %cst_71 : f32 to vector<16x128xf32>
    %176 = arith.addf %175, %174 : vector<16x128xf32>
    %177 = arith.mulf %166, %176 : vector<16x128xf32>
    %178 = arith.truncf %177 : vector<16x128xf32> to vector<16x128xbf16>
    %c0_72 = arith.constant 0 : index
    %c0_73 = arith.constant 0 : index
    %c0_74 = arith.constant 0 : index
    %179 = vector.load %arg12[%c0_72, %c0_73, %c0_74] : memref<4x128x32xbf16, #tpu.memory_space<vmem>>, vector<1x128x32xbf16>
    %180 = vector.shape_cast %179 : vector<1x128x32xbf16> to vector<128x32xbf16>
    %cst_75 = arith.constant dense<0.000000e+00> : vector<16x32xf32>
    %181 = tpu.matmul %178, %180, %cst_75 {dimension_numbers = #tpu.dot_dimension_numbers<[1], [0], [0], [1], [0, 0, 1, 1], [], []>} : vector<16x128xbf16>, vector<128x32xbf16>, vector<16x32xf32> -> vector<16x32xf32>
    %c0_76 = arith.constant 0 : index
    %c0_77 = arith.constant 0 : index
    %c0_78 = arith.constant 0 : index
    %182 = vector.load %arg13[%c0_76, %c0_77, %c0_78] : memref<4x1x32xf32, #tpu.memory_space<vmem>>, vector<1x1x32xf32>
    %183 = vector.shape_cast %182 : vector<1x1x32xf32> to vector<1x32xf32>
    %184 = vector.broadcast %183 : vector<1x32xf32> to vector<16x32xf32>
    %185 = arith.addf %181, %184 : vector<16x32xf32>
    %186 = arith.addf %156, %185 : vector<16x32xf32>
    %c0_79 = arith.constant 0 : index
    %c0_80 = arith.constant 0 : index
    %c0_81 = arith.constant 0 : index
    %187 = vector.load %arg14[%c0_79, %c0_80, %c0_81] : memref<4x1x32xf32, #tpu.memory_space<vmem>>, vector<1x1x32xf32>
    %188 = vector.shape_cast %187 : vector<1x1x32xf32> to vector<1x32xf32>
    %c0_82 = arith.constant 0 : index
    %c0_83 = arith.constant 0 : index
    %c0_84 = arith.constant 0 : index
    %189 = vector.load %arg15[%c0_82, %c0_83, %c0_84] : memref<4x1x32xf32, #tpu.memory_space<vmem>>, vector<1x1x32xf32>
    %190 = vector.shape_cast %189 : vector<1x1x32xf32> to vector<1x32xf32>
    %cst_85 = arith.constant dense<0.000000e+00> : vector<16xf32>
    %191 = vector.multi_reduction <add>, %186, %cst_85 [1] : vector<16x32xf32> to vector<16xf32>
    %192 = vector.shape_cast %191 : vector<16xf32> to vector<16x1xf32>
    %cst_86 = arith.constant 3.200000e+01 : f32
    %193 = vector.broadcast %cst_86 : f32 to vector<16x1xf32>
    %194 = arith.divf %192, %193 : vector<16x1xf32>
    %195 = vector.broadcast %194 : vector<16x1xf32> to vector<16x32xf32>
    %196 = arith.subf %186, %195 : vector<16x32xf32>
    %197 = arith.mulf %196, %196 : vector<16x32xf32>
    %cst_87 = arith.constant dense<0.000000e+00> : vector<16xf32>
    %198 = vector.multi_reduction <add>, %197, %cst_87 [1] : vector<16x32xf32> to vector<16xf32>
    %199 = vector.shape_cast %198 : vector<16xf32> to vector<16x1xf32>
    %cst_88 = arith.constant 3.200000e+01 : f32
    %200 = vector.broadcast %cst_88 : f32 to vector<16x1xf32>
    %201 = arith.divf %199, %200 : vector<16x1xf32>
    %202 = vector.broadcast %194 : vector<16x1xf32> to vector<16x32xf32>
    %203 = arith.subf %186, %202 : vector<16x32xf32>
    %cst_89 = arith.constant 9.99999996E-13 : f32
    %204 = vector.broadcast %cst_89 : f32 to vector<16x1xf32>
    %205 = arith.addf %201, %204 : vector<16x1xf32>
    %206 = math.rsqrt %205 : vector<16x1xf32>
    %207 = vector.broadcast %206 : vector<16x1xf32> to vector<16x32xf32>
    %208 = arith.mulf %203, %207 : vector<16x32xf32>
    %209 = vector.broadcast %188 : vector<1x32xf32> to vector<16x32xf32>
    %210 = arith.mulf %208, %209 : vector<16x32xf32>
    %211 = vector.broadcast %190 : vector<1x32xf32> to vector<16x32xf32>
    %212 = arith.addf %210, %211 : vector<16x32xf32>
    %213 = arith.truncf %212 : vector<16x32xf32> to vector<16x32xbf16>
    %c1 = arith.constant 1 : index
    %c0_90 = arith.constant 0 : index
    %c0_91 = arith.constant 0 : index
    %214 = vector.load %arg4[%c1, %c0_90, %c0_91] : memref<4x32x96xbf16, #tpu.memory_space<vmem>>, vector<1x32x96xbf16>
    %215 = vector.shape_cast %214 : vector<1x32x96xbf16> to vector<32x96xbf16>
    %cst_92 = arith.constant dense<0.000000e+00> : vector<16x96xf32>
    %216 = tpu.matmul %213, %215, %cst_92 {dimension_numbers = #tpu.dot_dimension_numbers<[1], [0], [0], [1], [0, 0, 1, 1], [], []>} : vector<16x32xbf16>, vector<32x96xbf16>, vector<16x96xf32> -> vector<16x96xf32>
    %c1_93 = arith.constant 1 : index
    %c0_94 = arith.constant 0 : index
    %c0_95 = arith.constant 0 : index
    %217 = vector.load %arg5[%c1_93, %c0_94, %c0_95] : memref<4x1x96xf32, #tpu.memory_space<vmem>>, vector<1x1x96xf32>
    %218 = vector.shape_cast %217 : vector<1x1x96xf32> to vector<1x96xf32>
    %219 = vector.broadcast %218 : vector<1x96xf32> to vector<16x96xf32>
    %220 = arith.addf %216, %219 : vector<16x96xf32>
    %221 = vector.shape_cast %220 : vector<16x96xf32> to vector<2x8x96xf32>
    %c1_96 = arith.constant 1 : index
    %c0_97 = arith.constant 0 : index
    %c0_98 = arith.constant 0 : index
    %222 = vector.load %arg6[%c1_96, %c0_97, %c0_98] : memref<4x32x32xbf16, #tpu.memory_space<vmem>>, vector<1x32x32xbf16>
    %223 = vector.shape_cast %222 : vector<1x32x32xbf16> to vector<32x32xbf16>
    %cst_99 = arith.constant 0.000000e+00 : f32
    %224 = vector.broadcast %cst_99 : f32 to vector<16x32xf32>
    %225 = vector.extract_strided_slice %221 {offsets = [0, 0, 0], sizes = [2, 8, 8], strides = [1, 1, 1]} : vector<2x8x96xf32> to vector<2x8x8xf32>
    %226 = vector.extract_strided_slice %221 {offsets = [0, 0, 32], sizes = [2, 8, 8], strides = [1, 1, 1]} : vector<2x8x96xf32> to vector<2x8x8xf32>
    %227 = vector.extract_strided_slice %221 {offsets = [0, 0, 64], sizes = [2, 8, 8], strides = [1, 1, 1]} : vector<2x8x96xf32> to vector<2x8x8xf32>
    "tpu.trace_start"() <{level = 10 : i32, message = "bqd,bkd->bqk"}> : () -> ()
    %cst_100 = arith.constant dense<0.000000e+00> : vector<2x8x8xf32>
    %228 = tpu.matmul %225, %226, %cst_100 {dimension_numbers = #tpu.dot_dimension_numbers<[2], [2], [1], [1], [0, 0, 0, 1, 1, 1], [0], [0]>} : vector<2x8x8xf32>, vector<2x8x8xf32>, vector<2x8x8xf32> -> vector<2x8x8xf32>
    "tpu.trace_stop"() : () -> ()
    %cst_101 = arith.constant 0.353553385 : f32
    %229 = vector.broadcast %cst_101 : f32 to vector<2x8x8xf32>
    %230 = arith.mulf %228, %229 : vector<2x8x8xf32>
    %231 = arith.addf %230, %25 : vector<2x8x8xf32>
    %cst_102 = arith.constant dense<0xFF800000> : vector<2x8xf32>
    %232 = vector.multi_reduction <maximumf>, %231, %cst_102 [2] : vector<2x8x8xf32> to vector<2x8xf32>
    %233 = vector.shape_cast %232 : vector<2x8xf32> to vector<2x8x1xf32>
    %234 = vector.broadcast %233 : vector<2x8x1xf32> to vector<2x8x8xf32>
    %235 = arith.subf %231, %234 : vector<2x8x8xf32>
    %236 = math.exp %235 : vector<2x8x8xf32>
    %cst_103 = arith.constant dense<0.000000e+00> : vector<2x8xf32>
    %237 = vector.multi_reduction <add>, %236, %cst_103 [2] : vector<2x8x8xf32> to vector<2x8xf32>
    %238 = vector.shape_cast %237 : vector<2x8xf32> to vector<2x8x1xf32>
    %239 = vector.broadcast %238 : vector<2x8x1xf32> to vector<2x8x8xf32>
    %240 = arith.divf %236, %239 : vector<2x8x8xf32>
    "tpu.trace_start"() <{level = 10 : i32, message = "bqk,bkd->bqd"}> : () -> ()
    %cst_104 = arith.constant dense<0.000000e+00> : vector<2x8x8xf32>
    %241 = tpu.matmul %240, %227, %cst_104 {dimension_numbers = #tpu.dot_dimension_numbers<[2], [1], [1], [2], [0, 0, 0, 1, 1, 2], [0], [0]>} : vector<2x8x8xf32>, vector<2x8x8xf32>, vector<2x8x8xf32> -> vector<2x8x8xf32>
    "tpu.trace_stop"() : () -> ()
    %242 = vector.shape_cast %241 : vector<2x8x8xf32> to vector<16x8xf32>
    %243 = arith.truncf %242 : vector<16x8xf32> to vector<16x8xbf16>
    %244 = vector.extract_strided_slice %223 {offsets = [0, 0], sizes = [8, 32], strides = [1, 1]} : vector<32x32xbf16> to vector<8x32xbf16>
    %cst_105 = arith.constant dense<0.000000e+00> : vector<16x32xf32>
    %245 = tpu.matmul %243, %244, %cst_105 {dimension_numbers = #tpu.dot_dimension_numbers<[1], [0], [0], [1], [0, 0, 1, 1], [], []>} : vector<16x8xbf16>, vector<8x32xbf16>, vector<16x32xf32> -> vector<16x32xf32>
    %246 = arith.addf %224, %245 : vector<16x32xf32>
    %247 = vector.extract_strided_slice %221 {offsets = [0, 0, 8], sizes = [2, 8, 8], strides = [1, 1, 1]} : vector<2x8x96xf32> to vector<2x8x8xf32>
    %248 = vector.extract_strided_slice %221 {offsets = [0, 0, 40], sizes = [2, 8, 8], strides = [1, 1, 1]} : vector<2x8x96xf32> to vector<2x8x8xf32>
    %249 = vector.extract_strided_slice %221 {offsets = [0, 0, 72], sizes = [2, 8, 8], strides = [1, 1, 1]} : vector<2x8x96xf32> to vector<2x8x8xf32>
    "tpu.trace_start"() <{level = 10 : i32, message = "bqd,bkd->bqk"}> : () -> ()
    %cst_106 = arith.constant dense<0.000000e+00> : vector<2x8x8xf32>
    %250 = tpu.matmul %247, %248, %cst_106 {dimension_numbers = #tpu.dot_dimension_numbers<[2], [2], [1], [1], [0, 0, 0, 1, 1, 1], [0], [0]>} : vector<2x8x8xf32>, vector<2x8x8xf32>, vector<2x8x8xf32> -> vector<2x8x8xf32>
    "tpu.trace_stop"() : () -> ()
    %cst_107 = arith.constant 0.353553385 : f32
    %251 = vector.broadcast %cst_107 : f32 to vector<2x8x8xf32>
    %252 = arith.mulf %250, %251 : vector<2x8x8xf32>
    %253 = arith.addf %252, %25 : vector<2x8x8xf32>
    %cst_108 = arith.constant dense<0xFF800000> : vector<2x8xf32>
    %254 = vector.multi_reduction <maximumf>, %253, %cst_108 [2] : vector<2x8x8xf32> to vector<2x8xf32>
    %255 = vector.shape_cast %254 : vector<2x8xf32> to vector<2x8x1xf32>
    %256 = vector.broadcast %255 : vector<2x8x1xf32> to vector<2x8x8xf32>
    %257 = arith.subf %253, %256 : vector<2x8x8xf32>
    %258 = math.exp %257 : vector<2x8x8xf32>
    %cst_109 = arith.constant dense<0.000000e+00> : vector<2x8xf32>
    %259 = vector.multi_reduction <add>, %258, %cst_109 [2] : vector<2x8x8xf32> to vector<2x8xf32>
    %260 = vector.shape_cast %259 : vector<2x8xf32> to vector<2x8x1xf32>
    %261 = vector.broadcast %260 : vector<2x8x1xf32> to vector<2x8x8xf32>
    %262 = arith.divf %258, %261 : vector<2x8x8xf32>
    "tpu.trace_start"() <{level = 10 : i32, message = "bqk,bkd->bqd"}> : () -> ()
    %cst_110 = arith.constant dense<0.000000e+00> : vector<2x8x8xf32>
    %263 = tpu.matmul %262, %249, %cst_110 {dimension_numbers = #tpu.dot_dimension_numbers<[2], [1], [1], [2], [0, 0, 0, 1, 1, 2], [0], [0]>} : vector<2x8x8xf32>, vector<2x8x8xf32>, vector<2x8x8xf32> -> vector<2x8x8xf32>
    "tpu.trace_stop"() : () -> ()
    %264 = vector.shape_cast %263 : vector<2x8x8xf32> to vector<16x8xf32>
    %265 = arith.truncf %264 : vector<16x8xf32> to vector<16x8xbf16>
    %266 = vector.extract_strided_slice %223 {offsets = [8, 0], sizes = [8, 32], strides = [1, 1]} : vector<32x32xbf16> to vector<8x32xbf16>
    %cst_111 = arith.constant dense<0.000000e+00> : vector<16x32xf32>
    %267 = tpu.matmul %265, %266, %cst_111 {dimension_numbers = #tpu.dot_dimension_numbers<[1], [0], [0], [1], [0, 0, 1, 1], [], []>} : vector<16x8xbf16>, vector<8x32xbf16>, vector<16x32xf32> -> vector<16x32xf32>
    %268 = arith.addf %246, %267 : vector<16x32xf32>
    %269 = vector.extract_strided_slice %221 {offsets = [0, 0, 16], sizes = [2, 8, 8], strides = [1, 1, 1]} : vector<2x8x96xf32> to vector<2x8x8xf32>
    %270 = vector.extract_strided_slice %221 {offsets = [0, 0, 48], sizes = [2, 8, 8], strides = [1, 1, 1]} : vector<2x8x96xf32> to vector<2x8x8xf32>
    %271 = vector.extract_strided_slice %221 {offsets = [0, 0, 80], sizes = [2, 8, 8], strides = [1, 1, 1]} : vector<2x8x96xf32> to vector<2x8x8xf32>
    "tpu.trace_start"() <{level = 10 : i32, message = "bqd,bkd->bqk"}> : () -> ()
    %cst_112 = arith.constant dense<0.000000e+00> : vector<2x8x8xf32>
    %272 = tpu.matmul %269, %270, %cst_112 {dimension_numbers = #tpu.dot_dimension_numbers<[2], [2], [1], [1], [0, 0, 0, 1, 1, 1], [0], [0]>} : vector<2x8x8xf32>, vector<2x8x8xf32>, vector<2x8x8xf32> -> vector<2x8x8xf32>
    "tpu.trace_stop"() : () -> ()
    %cst_113 = arith.constant 0.353553385 : f32
    %273 = vector.broadcast %cst_113 : f32 to vector<2x8x8xf32>
    %274 = arith.mulf %272, %273 : vector<2x8x8xf32>
    %275 = arith.addf %274, %25 : vector<2x8x8xf32>
    %cst_114 = arith.constant dense<0xFF800000> : vector<2x8xf32>
    %276 = vector.multi_reduction <maximumf>, %275, %cst_114 [2] : vector<2x8x8xf32> to vector<2x8xf32>
    %277 = vector.shape_cast %276 : vector<2x8xf32> to vector<2x8x1xf32>
    %278 = vector.broadcast %277 : vector<2x8x1xf32> to vector<2x8x8xf32>
    %279 = arith.subf %275, %278 : vector<2x8x8xf32>
    %280 = math.exp %279 : vector<2x8x8xf32>
    %cst_115 = arith.constant dense<0.000000e+00> : vector<2x8xf32>
    %281 = vector.multi_reduction <add>, %280, %cst_115 [2] : vector<2x8x8xf32> to vector<2x8xf32>
    %282 = vector.shape_cast %281 : vector<2x8xf32> to vector<2x8x1xf32>
    %283 = vector.broadcast %282 : vector<2x8x1xf32> to vector<2x8x8xf32>
    %284 = arith.divf %280, %283 : vector<2x8x8xf32>
    "tpu.trace_start"() <{level = 10 : i32, message = "bqk,bkd->bqd"}> : () -> ()
    %cst_116 = arith.constant dense<0.000000e+00> : vector<2x8x8xf32>
    %285 = tpu.matmul %284, %271, %cst_116 {dimension_numbers = #tpu.dot_dimension_numbers<[2], [1], [1], [2], [0, 0, 0, 1, 1, 2], [0], [0]>} : vector<2x8x8xf32>, vector<2x8x8xf32>, vector<2x8x8xf32> -> vector<2x8x8xf32>
    "tpu.trace_stop"() : () -> ()
    %286 = vector.shape_cast %285 : vector<2x8x8xf32> to vector<16x8xf32>
    %287 = arith.truncf %286 : vector<16x8xf32> to vector<16x8xbf16>
    %288 = vector.extract_strided_slice %223 {offsets = [16, 0], sizes = [8, 32], strides = [1, 1]} : vector<32x32xbf16> to vector<8x32xbf16>
    %cst_117 = arith.constant dense<0.000000e+00> : vector<16x32xf32>
    %289 = tpu.matmul %287, %288, %cst_117 {dimension_numbers = #tpu.dot_dimension_numbers<[1], [0], [0], [1], [0, 0, 1, 1], [], []>} : vector<16x8xbf16>, vector<8x32xbf16>, vector<16x32xf32> -> vector<16x32xf32>
    %290 = arith.addf %268, %289 : vector<16x32xf32>
    %291 = vector.extract_strided_slice %221 {offsets = [0, 0, 24], sizes = [2, 8, 8], strides = [1, 1, 1]} : vector<2x8x96xf32> to vector<2x8x8xf32>
    %292 = vector.extract_strided_slice %221 {offsets = [0, 0, 56], sizes = [2, 8, 8], strides = [1, 1, 1]} : vector<2x8x96xf32> to vector<2x8x8xf32>
    %293 = vector.extract_strided_slice %221 {offsets = [0, 0, 88], sizes = [2, 8, 8], strides = [1, 1, 1]} : vector<2x8x96xf32> to vector<2x8x8xf32>
    "tpu.trace_start"() <{level = 10 : i32, message = "bqd,bkd->bqk"}> : () -> ()
    %cst_118 = arith.constant dense<0.000000e+00> : vector<2x8x8xf32>
    %294 = tpu.matmul %291, %292, %cst_118 {dimension_numbers = #tpu.dot_dimension_numbers<[2], [2], [1], [1], [0, 0, 0, 1, 1, 1], [0], [0]>} : vector<2x8x8xf32>, vector<2x8x8xf32>, vector<2x8x8xf32> -> vector<2x8x8xf32>
    "tpu.trace_stop"() : () -> ()
    %cst_119 = arith.constant 0.353553385 : f32
    %295 = vector.broadcast %cst_119 : f32 to vector<2x8x8xf32>
    %296 = arith.mulf %294, %295 : vector<2x8x8xf32>
    %297 = arith.addf %296, %25 : vector<2x8x8xf32>
    %cst_120 = arith.constant dense<0xFF800000> : vector<2x8xf32>
    %298 = vector.multi_reduction <maximumf>, %297, %cst_120 [2] : vector<2x8x8xf32> to vector<2x8xf32>
    %299 = vector.shape_cast %298 : vector<2x8xf32> to vector<2x8x1xf32>
    %300 = vector.broadcast %299 : vector<2x8x1xf32> to vector<2x8x8xf32>
    %301 = arith.subf %297, %300 : vector<2x8x8xf32>
    %302 = math.exp %301 : vector<2x8x8xf32>
    %cst_121 = arith.constant dense<0.000000e+00> : vector<2x8xf32>
    %303 = vector.multi_reduction <add>, %302, %cst_121 [2] : vector<2x8x8xf32> to vector<2x8xf32>
    %304 = vector.shape_cast %303 : vector<2x8xf32> to vector<2x8x1xf32>
    %305 = vector.broadcast %304 : vector<2x8x1xf32> to vector<2x8x8xf32>
    %306 = arith.divf %302, %305 : vector<2x8x8xf32>
    "tpu.trace_start"() <{level = 10 : i32, message = "bqk,bkd->bqd"}> : () -> ()
    %cst_122 = arith.constant dense<0.000000e+00> : vector<2x8x8xf32>
    %307 = tpu.matmul %306, %293, %cst_122 {dimension_numbers = #tpu.dot_dimension_numbers<[2], [1], [1], [2], [0, 0, 0, 1, 1, 2], [0], [0]>} : vector<2x8x8xf32>, vector<2x8x8xf32>, vector<2x8x8xf32> -> vector<2x8x8xf32>
    "tpu.trace_stop"() : () -> ()
    %308 = vector.shape_cast %307 : vector<2x8x8xf32> to vector<16x8xf32>
    %309 = arith.truncf %308 : vector<16x8xf32> to vector<16x8xbf16>
    %310 = vector.extract_strided_slice %223 {offsets = [24, 0], sizes = [8, 32], strides = [1, 1]} : vector<32x32xbf16> to vector<8x32xbf16>
    %cst_123 = arith.constant dense<0.000000e+00> : vector<16x32xf32>
    %311 = tpu.matmul %309, %310, %cst_123 {dimension_numbers = #tpu.dot_dimension_numbers<[1], [0], [0], [1], [0, 0, 1, 1], [], []>} : vector<16x8xbf16>, vector<8x32xbf16>, vector<16x32xf32> -> vector<16x32xf32>
    %312 = arith.addf %290, %311 : vector<16x32xf32>
    %c1_124 = arith.constant 1 : index
    %c0_125 = arith.constant 0 : index
    %c0_126 = arith.constant 0 : index
    %313 = vector.load %arg7[%c1_124, %c0_125, %c0_126] : memref<4x1x32xf32, #tpu.memory_space<vmem>>, vector<1x1x32xf32>
    %314 = vector.shape_cast %313 : vector<1x1x32xf32> to vector<1x32xf32>
    %315 = vector.broadcast %314 : vector<1x32xf32> to vector<16x32xf32>
    %316 = arith.addf %312, %315 : vector<16x32xf32>
    %317 = arith.addf %212, %316 : vector<16x32xf32>
    %c1_127 = arith.constant 1 : index
    %c0_128 = arith.constant 0 : index
    %c0_129 = arith.constant 0 : index
    %318 = vector.load %arg8[%c1_127, %c0_128, %c0_129] : memref<4x1x32xf32, #tpu.memory_space<vmem>>, vector<1x1x32xf32>
    %319 = vector.shape_cast %318 : vector<1x1x32xf32> to vector<1x32xf32>
    %c1_130 = arith.constant 1 : index
    %c0_131 = arith.constant 0 : index
    %c0_132 = arith.constant 0 : index
    %320 = vector.load %arg9[%c1_130, %c0_131, %c0_132] : memref<4x1x32xf32, #tpu.memory_space<vmem>>, vector<1x1x32xf32>
    %321 = vector.shape_cast %320 : vector<1x1x32xf32> to vector<1x32xf32>
    %cst_133 = arith.constant dense<0.000000e+00> : vector<16xf32>
    %322 = vector.multi_reduction <add>, %317, %cst_133 [1] : vector<16x32xf32> to vector<16xf32>
    %323 = vector.shape_cast %322 : vector<16xf32> to vector<16x1xf32>
    %cst_134 = arith.constant 3.200000e+01 : f32
    %324 = vector.broadcast %cst_134 : f32 to vector<16x1xf32>
    %325 = arith.divf %323, %324 : vector<16x1xf32>
    %326 = vector.broadcast %325 : vector<16x1xf32> to vector<16x32xf32>
    %327 = arith.subf %317, %326 : vector<16x32xf32>
    %328 = arith.mulf %327, %327 : vector<16x32xf32>
    %cst_135 = arith.constant dense<0.000000e+00> : vector<16xf32>
    %329 = vector.multi_reduction <add>, %328, %cst_135 [1] : vector<16x32xf32> to vector<16xf32>
    %330 = vector.shape_cast %329 : vector<16xf32> to vector<16x1xf32>
    %cst_136 = arith.constant 3.200000e+01 : f32
    %331 = vector.broadcast %cst_136 : f32 to vector<16x1xf32>
    %332 = arith.divf %330, %331 : vector<16x1xf32>
    %333 = vector.broadcast %325 : vector<16x1xf32> to vector<16x32xf32>
    %334 = arith.subf %317, %333 : vector<16x32xf32>
    %cst_137 = arith.constant 9.99999996E-13 : f32
    %335 = vector.broadcast %cst_137 : f32 to vector<16x1xf32>
    %336 = arith.addf %332, %335 : vector<16x1xf32>
    %337 = math.rsqrt %336 : vector<16x1xf32>
    %338 = vector.broadcast %337 : vector<16x1xf32> to vector<16x32xf32>
    %339 = arith.mulf %334, %338 : vector<16x32xf32>
    %340 = vector.broadcast %319 : vector<1x32xf32> to vector<16x32xf32>
    %341 = arith.mulf %339, %340 : vector<16x32xf32>
    %342 = vector.broadcast %321 : vector<1x32xf32> to vector<16x32xf32>
    %343 = arith.addf %341, %342 : vector<16x32xf32>
    %344 = arith.truncf %343 : vector<16x32xf32> to vector<16x32xbf16>
    %c1_138 = arith.constant 1 : index
    %c0_139 = arith.constant 0 : index
    %c0_140 = arith.constant 0 : index
    %345 = vector.load %arg10[%c1_138, %c0_139, %c0_140] : memref<4x32x128xbf16, #tpu.memory_space<vmem>>, vector<1x32x128xbf16>
    %346 = vector.shape_cast %345 : vector<1x32x128xbf16> to vector<32x128xbf16>
    %cst_141 = arith.constant dense<0.000000e+00> : vector<16x128xf32>
    %347 = tpu.matmul %344, %346, %cst_141 {dimension_numbers = #tpu.dot_dimension_numbers<[1], [0], [0], [1], [0, 0, 1, 1], [], []>} : vector<16x32xbf16>, vector<32x128xbf16>, vector<16x128xf32> -> vector<16x128xf32>
    %c1_142 = arith.constant 1 : index
    %c0_143 = arith.constant 0 : index
    %c0_144 = arith.constant 0 : index
    %348 = vector.load %arg11[%c1_142, %c0_143, %c0_144] : memref<4x1x128xf32, #tpu.memory_space<vmem>>, vector<1x1x128xf32>
    %349 = vector.shape_cast %348 : vector<1x1x128xf32> to vector<1x128xf32>
    %350 = vector.broadcast %349 : vector<1x128xf32> to vector<16x128xf32>
    %351 = arith.addf %347, %350 : vector<16x128xf32>
    %cst_145 = arith.constant 5.000000e-01 : f32
    %352 = vector.broadcast %cst_145 : f32 to vector<16x128xf32>
    %353 = arith.mulf %352, %351 : vector<16x128xf32>
    %cst_146 = arith.constant 4.471500e-02 : f32
    %354 = vector.broadcast %cst_146 : f32 to vector<16x128xf32>
    %355 = arith.mulf %354, %351 : vector<16x128xf32>
    %356 = arith.mulf %355, %351 : vector<16x128xf32>
    %357 = arith.mulf %356, %351 : vector<16x128xf32>
    %358 = arith.addf %351, %357 : vector<16x128xf32>
    %cst_147 = arith.constant 0.797884583 : f32
    %359 = vector.broadcast %cst_147 : f32 to vector<16x128xf32>
    %360 = arith.mulf %359, %358 : vector<16x128xf32>
    %361 = math.tanh %360 : vector<16x128xf32>
    %cst_148 = arith.constant 1.000000e+00 : f32
    %362 = vector.broadcast %cst_148 : f32 to vector<16x128xf32>
    %363 = arith.addf %362, %361 : vector<16x128xf32>
    %364 = arith.mulf %353, %363 : vector<16x128xf32>
    %365 = arith.truncf %364 : vector<16x128xf32> to vector<16x128xbf16>
    %c1_149 = arith.constant 1 : index
    %c0_150 = arith.constant 0 : index
    %c0_151 = arith.constant 0 : index
    %366 = vector.load %arg12[%c1_149, %c0_150, %c0_151] : memref<4x128x32xbf16, #tpu.memory_space<vmem>>, vector<1x128x32xbf16>
    %367 = vector.shape_cast %366 : vector<1x128x32xbf16> to vector<128x32xbf16>
    %cst_152 = arith.constant dense<0.000000e+00> : vector<16x32xf32>
    %368 = tpu.matmul %365, %367, %cst_152 {dimension_numbers = #tpu.dot_dimension_numbers<[1], [0], [0], [1], [0, 0, 1, 1], [], []>} : vector<16x128xbf16>, vector<128x32xbf16>, vector<16x32xf32> -> vector<16x32xf32>
    %c1_153 = arith.constant 1 : index
    %c0_154 = arith.constant 0 : index
    %c0_155 = arith.constant 0 : index
    %369 = vector.load %arg13[%c1_153, %c0_154, %c0_155] : memref<4x1x32xf32, #tpu.memory_space<vmem>>, vector<1x1x32xf32>
    %370 = vector.shape_cast %369 : vector<1x1x32xf32> to vector<1x32xf32>
    %371 = vector.broadcast %370 : vector<1x32xf32> to vector<16x32xf32>
    %372 = arith.addf %368, %371 : vector<16x32xf32>
    %373 = arith.addf %343, %372 : vector<16x32xf32>
    %c1_156 = arith.constant 1 : index
    %c0_157 = arith.constant 0 : index
    %c0_158 = arith.constant 0 : index
    %374 = vector.load %arg14[%c1_156, %c0_157, %c0_158] : memref<4x1x32xf32, #tpu.memory_space<vmem>>, vector<1x1x32xf32>
    %375 = vector.shape_cast %374 : vector<1x1x32xf32> to vector<1x32xf32>
    %c1_159 = arith.constant 1 : index
    %c0_160 = arith.constant 0 : index
    %c0_161 = arith.constant 0 : index
    %376 = vector.load %arg15[%c1_159, %c0_160, %c0_161] : memref<4x1x32xf32, #tpu.memory_space<vmem>>, vector<1x1x32xf32>
    %377 = vector.shape_cast %376 : vector<1x1x32xf32> to vector<1x32xf32>
    %cst_162 = arith.constant dense<0.000000e+00> : vector<16xf32>
    %378 = vector.multi_reduction <add>, %373, %cst_162 [1] : vector<16x32xf32> to vector<16xf32>
    %379 = vector.shape_cast %378 : vector<16xf32> to vector<16x1xf32>
    %cst_163 = arith.constant 3.200000e+01 : f32
    %380 = vector.broadcast %cst_163 : f32 to vector<16x1xf32>
    %381 = arith.divf %379, %380 : vector<16x1xf32>
    %382 = vector.broadcast %381 : vector<16x1xf32> to vector<16x32xf32>
    %383 = arith.subf %373, %382 : vector<16x32xf32>
    %384 = arith.mulf %383, %383 : vector<16x32xf32>
    %cst_164 = arith.constant dense<0.000000e+00> : vector<16xf32>
    %385 = vector.multi_reduction <add>, %384, %cst_164 [1] : vector<16x32xf32> to vector<16xf32>
    %386 = vector.shape_cast %385 : vector<16xf32> to vector<16x1xf32>
    %cst_165 = arith.constant 3.200000e+01 : f32
    %387 = vector.broadcast %cst_165 : f32 to vector<16x1xf32>
    %388 = arith.divf %386, %387 : vector<16x1xf32>
    %389 = vector.broadcast %381 : vector<16x1xf32> to vector<16x32xf32>
    %390 = arith.subf %373, %389 : vector<16x32xf32>
    %cst_166 = arith.constant 9.99999996E-13 : f32
    %391 = vector.broadcast %cst_166 : f32 to vector<16x1xf32>
    %392 = arith.addf %388, %391 : vector<16x1xf32>
    %393 = math.rsqrt %392 : vector<16x1xf32>
    %394 = vector.broadcast %393 : vector<16x1xf32> to vector<16x32xf32>
    %395 = arith.mulf %390, %394 : vector<16x32xf32>
    %396 = vector.broadcast %375 : vector<1x32xf32> to vector<16x32xf32>
    %397 = arith.mulf %395, %396 : vector<16x32xf32>
    %398 = vector.broadcast %377 : vector<1x32xf32> to vector<16x32xf32>
    %399 = arith.addf %397, %398 : vector<16x32xf32>
    %400 = arith.truncf %399 : vector<16x32xf32> to vector<16x32xbf16>
    %c2 = arith.constant 2 : index
    %c0_167 = arith.constant 0 : index
    %c0_168 = arith.constant 0 : index
    %401 = vector.load %arg4[%c2, %c0_167, %c0_168] : memref<4x32x96xbf16, #tpu.memory_space<vmem>>, vector<1x32x96xbf16>
    %402 = vector.shape_cast %401 : vector<1x32x96xbf16> to vector<32x96xbf16>
    %cst_169 = arith.constant dense<0.000000e+00> : vector<16x96xf32>
    %403 = tpu.matmul %400, %402, %cst_169 {dimension_numbers = #tpu.dot_dimension_numbers<[1], [0], [0], [1], [0, 0, 1, 1], [], []>} : vector<16x32xbf16>, vector<32x96xbf16>, vector<16x96xf32> -> vector<16x96xf32>
    %c2_170 = arith.constant 2 : index
    %c0_171 = arith.constant 0 : index
    %c0_172 = arith.constant 0 : index
    %404 = vector.load %arg5[%c2_170, %c0_171, %c0_172] : memref<4x1x96xf32, #tpu.memory_space<vmem>>, vector<1x1x96xf32>
    %405 = vector.shape_cast %404 : vector<1x1x96xf32> to vector<1x96xf32>
    %406 = vector.broadcast %405 : vector<1x96xf32> to vector<16x96xf32>
    %407 = arith.addf %403, %406 : vector<16x96xf32>
    %408 = vector.shape_cast %407 : vector<16x96xf32> to vector<2x8x96xf32>
    %c2_173 = arith.constant 2 : index
    %c0_174 = arith.constant 0 : index
    %c0_175 = arith.constant 0 : index
    %409 = vector.load %arg6[%c2_173, %c0_174, %c0_175] : memref<4x32x32xbf16, #tpu.memory_space<vmem>>, vector<1x32x32xbf16>
    %410 = vector.shape_cast %409 : vector<1x32x32xbf16> to vector<32x32xbf16>
    %cst_176 = arith.constant 0.000000e+00 : f32
    %411 = vector.broadcast %cst_176 : f32 to vector<16x32xf32>
    %412 = vector.extract_strided_slice %408 {offsets = [0, 0, 0], sizes = [2, 8, 8], strides = [1, 1, 1]} : vector<2x8x96xf32> to vector<2x8x8xf32>
    %413 = vector.extract_strided_slice %408 {offsets = [0, 0, 32], sizes = [2, 8, 8], strides = [1, 1, 1]} : vector<2x8x96xf32> to vector<2x8x8xf32>
    %414 = vector.extract_strided_slice %408 {offsets = [0, 0, 64], sizes = [2, 8, 8], strides = [1, 1, 1]} : vector<2x8x96xf32> to vector<2x8x8xf32>
    "tpu.trace_start"() <{level = 10 : i32, message = "bqd,bkd->bqk"}> : () -> ()
    %cst_177 = arith.constant dense<0.000000e+00> : vector<2x8x8xf32>
    %415 = tpu.matmul %412, %413, %cst_177 {dimension_numbers = #tpu.dot_dimension_numbers<[2], [2], [1], [1], [0, 0, 0, 1, 1, 1], [0], [0]>} : vector<2x8x8xf32>, vector<2x8x8xf32>, vector<2x8x8xf32> -> vector<2x8x8xf32>
    "tpu.trace_stop"() : () -> ()
    %cst_178 = arith.constant 0.353553385 : f32
    %416 = vector.broadcast %cst_178 : f32 to vector<2x8x8xf32>
    %417 = arith.mulf %415, %416 : vector<2x8x8xf32>
    %418 = arith.addf %417, %25 : vector<2x8x8xf32>
    %cst_179 = arith.constant dense<0xFF800000> : vector<2x8xf32>
    %419 = vector.multi_reduction <maximumf>, %418, %cst_179 [2] : vector<2x8x8xf32> to vector<2x8xf32>
    %420 = vector.shape_cast %419 : vector<2x8xf32> to vector<2x8x1xf32>
    %421 = vector.broadcast %420 : vector<2x8x1xf32> to vector<2x8x8xf32>
    %422 = arith.subf %418, %421 : vector<2x8x8xf32>
    %423 = math.exp %422 : vector<2x8x8xf32>
    %cst_180 = arith.constant dense<0.000000e+00> : vector<2x8xf32>
    %424 = vector.multi_reduction <add>, %423, %cst_180 [2] : vector<2x8x8xf32> to vector<2x8xf32>
    %425 = vector.shape_cast %424 : vector<2x8xf32> to vector<2x8x1xf32>
    %426 = vector.broadcast %425 : vector<2x8x1xf32> to vector<2x8x8xf32>
    %427 = arith.divf %423, %426 : vector<2x8x8xf32>
    "tpu.trace_start"() <{level = 10 : i32, message = "bqk,bkd->bqd"}> : () -> ()
    %cst_181 = arith.constant dense<0.000000e+00> : vector<2x8x8xf32>
    %428 = tpu.matmul %427, %414, %cst_181 {dimension_numbers = #tpu.dot_dimension_numbers<[2], [1], [1], [2], [0, 0, 0, 1, 1, 2], [0], [0]>} : vector<2x8x8xf32>, vector<2x8x8xf32>, vector<2x8x8xf32> -> vector<2x8x8xf32>
    "tpu.trace_stop"() : () -> ()
    %429 = vector.shape_cast %428 : vector<2x8x8xf32> to vector<16x8xf32>
    %430 = arith.truncf %429 : vector<16x8xf32> to vector<16x8xbf16>
    %431 = vector.extract_strided_slice %410 {offsets = [0, 0], sizes = [8, 32], strides = [1, 1]} : vector<32x32xbf16> to vector<8x32xbf16>
    %cst_182 = arith.constant dense<0.000000e+00> : vector<16x32xf32>
    %432 = tpu.matmul %430, %431, %cst_182 {dimension_numbers = #tpu.dot_dimension_numbers<[1], [0], [0], [1], [0, 0, 1, 1], [], []>} : vector<16x8xbf16>, vector<8x32xbf16>, vector<16x32xf32> -> vector<16x32xf32>
    %433 = arith.addf %411, %432 : vector<16x32xf32>
    %434 = vector.extract_strided_slice %408 {offsets = [0, 0, 8], sizes = [2, 8, 8], strides = [1, 1, 1]} : vector<2x8x96xf32> to vector<2x8x8xf32>
    %435 = vector.extract_strided_slice %408 {offsets = [0, 0, 40], sizes = [2, 8, 8], strides = [1, 1, 1]} : vector<2x8x96xf32> to vector<2x8x8xf32>
    %436 = vector.extract_strided_slice %408 {offsets = [0, 0, 72], sizes = [2, 8, 8], strides = [1, 1, 1]} : vector<2x8x96xf32> to vector<2x8x8xf32>
    "tpu.trace_start"() <{level = 10 : i32, message = "bqd,bkd->bqk"}> : () -> ()
    %cst_183 = arith.constant dense<0.000000e+00> : vector<2x8x8xf32>
    %437 = tpu.matmul %434, %435, %cst_183 {dimension_numbers = #tpu.dot_dimension_numbers<[2], [2], [1], [1], [0, 0, 0, 1, 1, 1], [0], [0]>} : vector<2x8x8xf32>, vector<2x8x8xf32>, vector<2x8x8xf32> -> vector<2x8x8xf32>
    "tpu.trace_stop"() : () -> ()
    %cst_184 = arith.constant 0.353553385 : f32
    %438 = vector.broadcast %cst_184 : f32 to vector<2x8x8xf32>
    %439 = arith.mulf %437, %438 : vector<2x8x8xf32>
    %440 = arith.addf %439, %25 : vector<2x8x8xf32>
    %cst_185 = arith.constant dense<0xFF800000> : vector<2x8xf32>
    %441 = vector.multi_reduction <maximumf>, %440, %cst_185 [2] : vector<2x8x8xf32> to vector<2x8xf32>
    %442 = vector.shape_cast %441 : vector<2x8xf32> to vector<2x8x1xf32>
    %443 = vector.broadcast %442 : vector<2x8x1xf32> to vector<2x8x8xf32>
    %444 = arith.subf %440, %443 : vector<2x8x8xf32>
    %445 = math.exp %444 : vector<2x8x8xf32>
    %cst_186 = arith.constant dense<0.000000e+00> : vector<2x8xf32>
    %446 = vector.multi_reduction <add>, %445, %cst_186 [2] : vector<2x8x8xf32> to vector<2x8xf32>
    %447 = vector.shape_cast %446 : vector<2x8xf32> to vector<2x8x1xf32>
    %448 = vector.broadcast %447 : vector<2x8x1xf32> to vector<2x8x8xf32>
    %449 = arith.divf %445, %448 : vector<2x8x8xf32>
    "tpu.trace_start"() <{level = 10 : i32, message = "bqk,bkd->bqd"}> : () -> ()
    %cst_187 = arith.constant dense<0.000000e+00> : vector<2x8x8xf32>
    %450 = tpu.matmul %449, %436, %cst_187 {dimension_numbers = #tpu.dot_dimension_numbers<[2], [1], [1], [2], [0, 0, 0, 1, 1, 2], [0], [0]>} : vector<2x8x8xf32>, vector<2x8x8xf32>, vector<2x8x8xf32> -> vector<2x8x8xf32>
    "tpu.trace_stop"() : () -> ()
    %451 = vector.shape_cast %450 : vector<2x8x8xf32> to vector<16x8xf32>
    %452 = arith.truncf %451 : vector<16x8xf32> to vector<16x8xbf16>
    %453 = vector.extract_strided_slice %410 {offsets = [8, 0], sizes = [8, 32], strides = [1, 1]} : vector<32x32xbf16> to vector<8x32xbf16>
    %cst_188 = arith.constant dense<0.000000e+00> : vector<16x32xf32>
    %454 = tpu.matmul %452, %453, %cst_188 {dimension_numbers = #tpu.dot_dimension_numbers<[1], [0], [0], [1], [0, 0, 1, 1], [], []>} : vector<16x8xbf16>, vector<8x32xbf16>, vector<16x32xf32> -> vector<16x32xf32>
    %455 = arith.addf %433, %454 : vector<16x32xf32>
    %456 = vector.extract_strided_slice %408 {offsets = [0, 0, 16], sizes = [2, 8, 8], strides = [1, 1, 1]} : vector<2x8x96xf32> to vector<2x8x8xf32>
    %457 = vector.extract_strided_slice %408 {offsets = [0, 0, 48], sizes = [2, 8, 8], strides = [1, 1, 1]} : vector<2x8x96xf32> to vector<2x8x8xf32>
    %458 = vector.extract_strided_slice %408 {offsets = [0, 0, 80], sizes = [2, 8, 8], strides = [1, 1, 1]} : vector<2x8x96xf32> to vector<2x8x8xf32>
    "tpu.trace_start"() <{level = 10 : i32, message = "bqd,bkd->bqk"}> : () -> ()
    %cst_189 = arith.constant dense<0.000000e+00> : vector<2x8x8xf32>
    %459 = tpu.matmul %456, %457, %cst_189 {dimension_numbers = #tpu.dot_dimension_numbers<[2], [2], [1], [1], [0, 0, 0, 1, 1, 1], [0], [0]>} : vector<2x8x8xf32>, vector<2x8x8xf32>, vector<2x8x8xf32> -> vector<2x8x8xf32>
    "tpu.trace_stop"() : () -> ()
    %cst_190 = arith.constant 0.353553385 : f32
    %460 = vector.broadcast %cst_190 : f32 to vector<2x8x8xf32>
    %461 = arith.mulf %459, %460 : vector<2x8x8xf32>
    %462 = arith.addf %461, %25 : vector<2x8x8xf32>
    %cst_191 = arith.constant dense<0xFF800000> : vector<2x8xf32>
    %463 = vector.multi_reduction <maximumf>, %462, %cst_191 [2] : vector<2x8x8xf32> to vector<2x8xf32>
    %464 = vector.shape_cast %463 : vector<2x8xf32> to vector<2x8x1xf32>
    %465 = vector.broadcast %464 : vector<2x8x1xf32> to vector<2x8x8xf32>
    %466 = arith.subf %462, %465 : vector<2x8x8xf32>
    %467 = math.exp %466 : vector<2x8x8xf32>
    %cst_192 = arith.constant dense<0.000000e+00> : vector<2x8xf32>
    %468 = vector.multi_reduction <add>, %467, %cst_192 [2] : vector<2x8x8xf32> to vector<2x8xf32>
    %469 = vector.shape_cast %468 : vector<2x8xf32> to vector<2x8x1xf32>
    %470 = vector.broadcast %469 : vector<2x8x1xf32> to vector<2x8x8xf32>
    %471 = arith.divf %467, %470 : vector<2x8x8xf32>
    "tpu.trace_start"() <{level = 10 : i32, message = "bqk,bkd->bqd"}> : () -> ()
    %cst_193 = arith.constant dense<0.000000e+00> : vector<2x8x8xf32>
    %472 = tpu.matmul %471, %458, %cst_193 {dimension_numbers = #tpu.dot_dimension_numbers<[2], [1], [1], [2], [0, 0, 0, 1, 1, 2], [0], [0]>} : vector<2x8x8xf32>, vector<2x8x8xf32>, vector<2x8x8xf32> -> vector<2x8x8xf32>
    "tpu.trace_stop"() : () -> ()
    %473 = vector.shape_cast %472 : vector<2x8x8xf32> to vector<16x8xf32>
    %474 = arith.truncf %473 : vector<16x8xf32> to vector<16x8xbf16>
    %475 = vector.extract_strided_slice %410 {offsets = [16, 0], sizes = [8, 32], strides = [1, 1]} : vector<32x32xbf16> to vector<8x32xbf16>
    %cst_194 = arith.constant dense<0.000000e+00> : vector<16x32xf32>
    %476 = tpu.matmul %474, %475, %cst_194 {dimension_numbers = #tpu.dot_dimension_numbers<[1], [0], [0], [1], [0, 0, 1, 1], [], []>} : vector<16x8xbf16>, vector<8x32xbf16>, vector<16x32xf32> -> vector<16x32xf32>
    %477 = arith.addf %455, %476 : vector<16x32xf32>
    %478 = vector.extract_strided_slice %408 {offsets = [0, 0, 24], sizes = [2, 8, 8], strides = [1, 1, 1]} : vector<2x8x96xf32> to vector<2x8x8xf32>
    %479 = vector.extract_strided_slice %408 {offsets = [0, 0, 56], sizes = [2, 8, 8], strides = [1, 1, 1]} : vector<2x8x96xf32> to vector<2x8x8xf32>
    %480 = vector.extract_strided_slice %408 {offsets = [0, 0, 88], sizes = [2, 8, 8], strides = [1, 1, 1]} : vector<2x8x96xf32> to vector<2x8x8xf32>
    "tpu.trace_start"() <{level = 10 : i32, message = "bqd,bkd->bqk"}> : () -> ()
    %cst_195 = arith.constant dense<0.000000e+00> : vector<2x8x8xf32>
    %481 = tpu.matmul %478, %479, %cst_195 {dimension_numbers = #tpu.dot_dimension_numbers<[2], [2], [1], [1], [0, 0, 0, 1, 1, 1], [0], [0]>} : vector<2x8x8xf32>, vector<2x8x8xf32>, vector<2x8x8xf32> -> vector<2x8x8xf32>
    "tpu.trace_stop"() : () -> ()
    %cst_196 = arith.constant 0.353553385 : f32
    %482 = vector.broadcast %cst_196 : f32 to vector<2x8x8xf32>
    %483 = arith.mulf %481, %482 : vector<2x8x8xf32>
    %484 = arith.addf %483, %25 : vector<2x8x8xf32>
    %cst_197 = arith.constant dense<0xFF800000> : vector<2x8xf32>
    %485 = vector.multi_reduction <maximumf>, %484, %cst_197 [2] : vector<2x8x8xf32> to vector<2x8xf32>
    %486 = vector.shape_cast %485 : vector<2x8xf32> to vector<2x8x1xf32>
    %487 = vector.broadcast %486 : vector<2x8x1xf32> to vector<2x8x8xf32>
    %488 = arith.subf %484, %487 : vector<2x8x8xf32>
    %489 = math.exp %488 : vector<2x8x8xf32>
    %cst_198 = arith.constant dense<0.000000e+00> : vector<2x8xf32>
    %490 = vector.multi_reduction <add>, %489, %cst_198 [2] : vector<2x8x8xf32> to vector<2x8xf32>
    %491 = vector.shape_cast %490 : vector<2x8xf32> to vector<2x8x1xf32>
    %492 = vector.broadcast %491 : vector<2x8x1xf32> to vector<2x8x8xf32>
    %493 = arith.divf %489, %492 : vector<2x8x8xf32>
    "tpu.trace_start"() <{level = 10 : i32, message = "bqk,bkd->bqd"}> : () -> ()
    %cst_199 = arith.constant dense<0.000000e+00> : vector<2x8x8xf32>
    %494 = tpu.matmul %493, %480, %cst_199 {dimension_numbers = #tpu.dot_dimension_numbers<[2], [1], [1], [2], [0, 0, 0, 1, 1, 2], [0], [0]>} : vector<2x8x8xf32>, vector<2x8x8xf32>, vector<2x8x8xf32> -> vector<2x8x8xf32>
    "tpu.trace_stop"() : () -> ()
    %495 = vector.shape_cast %494 : vector<2x8x8xf32> to vector<16x8xf32>
    %496 = arith.truncf %495 : vector<16x8xf32> to vector<16x8xbf16>
    %497 = vector.extract_strided_slice %410 {offsets = [24, 0], sizes = [8, 32], strides = [1, 1]} : vector<32x32xbf16> to vector<8x32xbf16>
    %cst_200 = arith.constant dense<0.000000e+00> : vector<16x32xf32>
    %498 = tpu.matmul %496, %497, %cst_200 {dimension_numbers = #tpu.dot_dimension_numbers<[1], [0], [0], [1], [0, 0, 1, 1], [], []>} : vector<16x8xbf16>, vector<8x32xbf16>, vector<16x32xf32> -> vector<16x32xf32>
    %499 = arith.addf %477, %498 : vector<16x32xf32>
    %c2_201 = arith.constant 2 : index
    %c0_202 = arith.constant 0 : index
    %c0_203 = arith.constant 0 : index
    %500 = vector.load %arg7[%c2_201, %c0_202, %c0_203] : memref<4x1x32xf32, #tpu.memory_space<vmem>>, vector<1x1x32xf32>
    %501 = vector.shape_cast %500 : vector<1x1x32xf32> to vector<1x32xf32>
    %502 = vector.broadcast %501 : vector<1x32xf32> to vector<16x32xf32>
    %503 = arith.addf %499, %502 : vector<16x32xf32>
    %504 = arith.addf %399, %503 : vector<16x32xf32>
    %c2_204 = arith.constant 2 : index
    %c0_205 = arith.constant 0 : index
    %c0_206 = arith.constant 0 : index
    %505 = vector.load %arg8[%c2_204, %c0_205, %c0_206] : memref<4x1x32xf32, #tpu.memory_space<vmem>>, vector<1x1x32xf32>
    %506 = vector.shape_cast %505 : vector<1x1x32xf32> to vector<1x32xf32>
    %c2_207 = arith.constant 2 : index
    %c0_208 = arith.constant 0 : index
    %c0_209 = arith.constant 0 : index
    %507 = vector.load %arg9[%c2_207, %c0_208, %c0_209] : memref<4x1x32xf32, #tpu.memory_space<vmem>>, vector<1x1x32xf32>
    %508 = vector.shape_cast %507 : vector<1x1x32xf32> to vector<1x32xf32>
    %cst_210 = arith.constant dense<0.000000e+00> : vector<16xf32>
    %509 = vector.multi_reduction <add>, %504, %cst_210 [1] : vector<16x32xf32> to vector<16xf32>
    %510 = vector.shape_cast %509 : vector<16xf32> to vector<16x1xf32>
    %cst_211 = arith.constant 3.200000e+01 : f32
    %511 = vector.broadcast %cst_211 : f32 to vector<16x1xf32>
    %512 = arith.divf %510, %511 : vector<16x1xf32>
    %513 = vector.broadcast %512 : vector<16x1xf32> to vector<16x32xf32>
    %514 = arith.subf %504, %513 : vector<16x32xf32>
    %515 = arith.mulf %514, %514 : vector<16x32xf32>
    %cst_212 = arith.constant dense<0.000000e+00> : vector<16xf32>
    %516 = vector.multi_reduction <add>, %515, %cst_212 [1] : vector<16x32xf32> to vector<16xf32>
    %517 = vector.shape_cast %516 : vector<16xf32> to vector<16x1xf32>
    %cst_213 = arith.constant 3.200000e+01 : f32
    %518 = vector.broadcast %cst_213 : f32 to vector<16x1xf32>
    %519 = arith.divf %517, %518 : vector<16x1xf32>
    %520 = vector.broadcast %512 : vector<16x1xf32> to vector<16x32xf32>
    %521 = arith.subf %504, %520 : vector<16x32xf32>
    %cst_214 = arith.constant 9.99999996E-13 : f32
    %522 = vector.broadcast %cst_214 : f32 to vector<16x1xf32>
    %523 = arith.addf %519, %522 : vector<16x1xf32>
    %524 = math.rsqrt %523 : vector<16x1xf32>
    %525 = vector.broadcast %524 : vector<16x1xf32> to vector<16x32xf32>
    %526 = arith.mulf %521, %525 : vector<16x32xf32>
    %527 = vector.broadcast %506 : vector<1x32xf32> to vector<16x32xf32>
    %528 = arith.mulf %526, %527 : vector<16x32xf32>
    %529 = vector.broadcast %508 : vector<1x32xf32> to vector<16x32xf32>
    %530 = arith.addf %528, %529 : vector<16x32xf32>
    %531 = arith.truncf %530 : vector<16x32xf32> to vector<16x32xbf16>
    %c2_215 = arith.constant 2 : index
    %c0_216 = arith.constant 0 : index
    %c0_217 = arith.constant 0 : index
    %532 = vector.load %arg10[%c2_215, %c0_216, %c0_217] : memref<4x32x128xbf16, #tpu.memory_space<vmem>>, vector<1x32x128xbf16>
    %533 = vector.shape_cast %532 : vector<1x32x128xbf16> to vector<32x128xbf16>
    %cst_218 = arith.constant dense<0.000000e+00> : vector<16x128xf32>
    %534 = tpu.matmul %531, %533, %cst_218 {dimension_numbers = #tpu.dot_dimension_numbers<[1], [0], [0], [1], [0, 0, 1, 1], [], []>} : vector<16x32xbf16>, vector<32x128xbf16>, vector<16x128xf32> -> vector<16x128xf32>
    %c2_219 = arith.constant 2 : index
    %c0_220 = arith.constant 0 : index
    %c0_221 = arith.constant 0 : index
    %535 = vector.load %arg11[%c2_219, %c0_220, %c0_221] : memref<4x1x128xf32, #tpu.memory_space<vmem>>, vector<1x1x128xf32>
    %536 = vector.shape_cast %535 : vector<1x1x128xf32> to vector<1x128xf32>
    %537 = vector.broadcast %536 : vector<1x128xf32> to vector<16x128xf32>
    %538 = arith.addf %534, %537 : vector<16x128xf32>
    %cst_222 = arith.constant 5.000000e-01 : f32
    %539 = vector.broadcast %cst_222 : f32 to vector<16x128xf32>
    %540 = arith.mulf %539, %538 : vector<16x128xf32>
    %cst_223 = arith.constant 4.471500e-02 : f32
    %541 = vector.broadcast %cst_223 : f32 to vector<16x128xf32>
    %542 = arith.mulf %541, %538 : vector<16x128xf32>
    %543 = arith.mulf %542, %538 : vector<16x128xf32>
    %544 = arith.mulf %543, %538 : vector<16x128xf32>
    %545 = arith.addf %538, %544 : vector<16x128xf32>
    %cst_224 = arith.constant 0.797884583 : f32
    %546 = vector.broadcast %cst_224 : f32 to vector<16x128xf32>
    %547 = arith.mulf %546, %545 : vector<16x128xf32>
    %548 = math.tanh %547 : vector<16x128xf32>
    %cst_225 = arith.constant 1.000000e+00 : f32
    %549 = vector.broadcast %cst_225 : f32 to vector<16x128xf32>
    %550 = arith.addf %549, %548 : vector<16x128xf32>
    %551 = arith.mulf %540, %550 : vector<16x128xf32>
    %552 = arith.truncf %551 : vector<16x128xf32> to vector<16x128xbf16>
    %c2_226 = arith.constant 2 : index
    %c0_227 = arith.constant 0 : index
    %c0_228 = arith.constant 0 : index
    %553 = vector.load %arg12[%c2_226, %c0_227, %c0_228] : memref<4x128x32xbf16, #tpu.memory_space<vmem>>, vector<1x128x32xbf16>
    %554 = vector.shape_cast %553 : vector<1x128x32xbf16> to vector<128x32xbf16>
    %cst_229 = arith.constant dense<0.000000e+00> : vector<16x32xf32>
    %555 = tpu.matmul %552, %554, %cst_229 {dimension_numbers = #tpu.dot_dimension_numbers<[1], [0], [0], [1], [0, 0, 1, 1], [], []>} : vector<16x128xbf16>, vector<128x32xbf16>, vector<16x32xf32> -> vector<16x32xf32>
    %c2_230 = arith.constant 2 : index
    %c0_231 = arith.constant 0 : index
    %c0_232 = arith.constant 0 : index
    %556 = vector.load %arg13[%c2_230, %c0_231, %c0_232] : memref<4x1x32xf32, #tpu.memory_space<vmem>>, vector<1x1x32xf32>
    %557 = vector.shape_cast %556 : vector<1x1x32xf32> to vector<1x32xf32>
    %558 = vector.broadcast %557 : vector<1x32xf32> to vector<16x32xf32>
    %559 = arith.addf %555, %558 : vector<16x32xf32>
    %560 = arith.addf %530, %559 : vector<16x32xf32>
    %c2_233 = arith.constant 2 : index
    %c0_234 = arith.constant 0 : index
    %c0_235 = arith.constant 0 : index
    %561 = vector.load %arg14[%c2_233, %c0_234, %c0_235] : memref<4x1x32xf32, #tpu.memory_space<vmem>>, vector<1x1x32xf32>
    %562 = vector.shape_cast %561 : vector<1x1x32xf32> to vector<1x32xf32>
    %c2_236 = arith.constant 2 : index
    %c0_237 = arith.constant 0 : index
    %c0_238 = arith.constant 0 : index
    %563 = vector.load %arg15[%c2_236, %c0_237, %c0_238] : memref<4x1x32xf32, #tpu.memory_space<vmem>>, vector<1x1x32xf32>
    %564 = vector.shape_cast %563 : vector<1x1x32xf32> to vector<1x32xf32>
    %cst_239 = arith.constant dense<0.000000e+00> : vector<16xf32>
    %565 = vector.multi_reduction <add>, %560, %cst_239 [1] : vector<16x32xf32> to vector<16xf32>
    %566 = vector.shape_cast %565 : vector<16xf32> to vector<16x1xf32>
    %cst_240 = arith.constant 3.200000e+01 : f32
    %567 = vector.broadcast %cst_240 : f32 to vector<16x1xf32>
    %568 = arith.divf %566, %567 : vector<16x1xf32>
    %569 = vector.broadcast %568 : vector<16x1xf32> to vector<16x32xf32>
    %570 = arith.subf %560, %569 : vector<16x32xf32>
    %571 = arith.mulf %570, %570 : vector<16x32xf32>
    %cst_241 = arith.constant dense<0.000000e+00> : vector<16xf32>
    %572 = vector.multi_reduction <add>, %571, %cst_241 [1] : vector<16x32xf32> to vector<16xf32>
    %573 = vector.shape_cast %572 : vector<16xf32> to vector<16x1xf32>
    %cst_242 = arith.constant 3.200000e+01 : f32
    %574 = vector.broadcast %cst_242 : f32 to vector<16x1xf32>
    %575 = arith.divf %573, %574 : vector<16x1xf32>
    %576 = vector.broadcast %568 : vector<16x1xf32> to vector<16x32xf32>
    %577 = arith.subf %560, %576 : vector<16x32xf32>
    %cst_243 = arith.constant 9.99999996E-13 : f32
    %578 = vector.broadcast %cst_243 : f32 to vector<16x1xf32>
    %579 = arith.addf %575, %578 : vector<16x1xf32>
    %580 = math.rsqrt %579 : vector<16x1xf32>
    %581 = vector.broadcast %580 : vector<16x1xf32> to vector<16x32xf32>
    %582 = arith.mulf %577, %581 : vector<16x32xf32>
    %583 = vector.broadcast %562 : vector<1x32xf32> to vector<16x32xf32>
    %584 = arith.mulf %582, %583 : vector<16x32xf32>
    %585 = vector.broadcast %564 : vector<1x32xf32> to vector<16x32xf32>
    %586 = arith.addf %584, %585 : vector<16x32xf32>
    %587 = arith.truncf %586 : vector<16x32xf32> to vector<16x32xbf16>
    %c3 = arith.constant 3 : index
    %c0_244 = arith.constant 0 : index
    %c0_245 = arith.constant 0 : index
    %588 = vector.load %arg4[%c3, %c0_244, %c0_245] : memref<4x32x96xbf16, #tpu.memory_space<vmem>>, vector<1x32x96xbf16>
    %589 = vector.shape_cast %588 : vector<1x32x96xbf16> to vector<32x96xbf16>
    %cst_246 = arith.constant dense<0.000000e+00> : vector<16x96xf32>
    %590 = tpu.matmul %587, %589, %cst_246 {dimension_numbers = #tpu.dot_dimension_numbers<[1], [0], [0], [1], [0, 0, 1, 1], [], []>} : vector<16x32xbf16>, vector<32x96xbf16>, vector<16x96xf32> -> vector<16x96xf32>
    %c3_247 = arith.constant 3 : index
    %c0_248 = arith.constant 0 : index
    %c0_249 = arith.constant 0 : index
    %591 = vector.load %arg5[%c3_247, %c0_248, %c0_249] : memref<4x1x96xf32, #tpu.memory_space<vmem>>, vector<1x1x96xf32>
    %592 = vector.shape_cast %591 : vector<1x1x96xf32> to vector<1x96xf32>
    %593 = vector.broadcast %592 : vector<1x96xf32> to vector<16x96xf32>
    %594 = arith.addf %590, %593 : vector<16x96xf32>
    %595 = vector.shape_cast %594 : vector<16x96xf32> to vector<2x8x96xf32>
    %c3_250 = arith.constant 3 : index
    %c0_251 = arith.constant 0 : index
    %c0_252 = arith.constant 0 : index
    %596 = vector.load %arg6[%c3_250, %c0_251, %c0_252] : memref<4x32x32xbf16, #tpu.memory_space<vmem>>, vector<1x32x32xbf16>
    %597 = vector.shape_cast %596 : vector<1x32x32xbf16> to vector<32x32xbf16>
    %cst_253 = arith.constant 0.000000e+00 : f32
    %598 = vector.broadcast %cst_253 : f32 to vector<16x32xf32>
    %599 = vector.extract_strided_slice %595 {offsets = [0, 0, 0], sizes = [2, 8, 8], strides = [1, 1, 1]} : vector<2x8x96xf32> to vector<2x8x8xf32>
    %600 = vector.extract_strided_slice %595 {offsets = [0, 0, 32], sizes = [2, 8, 8], strides = [1, 1, 1]} : vector<2x8x96xf32> to vector<2x8x8xf32>
    %601 = vector.extract_strided_slice %595 {offsets = [0, 0, 64], sizes = [2, 8, 8], strides = [1, 1, 1]} : vector<2x8x96xf32> to vector<2x8x8xf32>
    "tpu.trace_start"() <{level = 10 : i32, message = "bqd,bkd->bqk"}> : () -> ()
    %cst_254 = arith.constant dense<0.000000e+00> : vector<2x8x8xf32>
    %602 = tpu.matmul %599, %600, %cst_254 {dimension_numbers = #tpu.dot_dimension_numbers<[2], [2], [1], [1], [0, 0, 0, 1, 1, 1], [0], [0]>} : vector<2x8x8xf32>, vector<2x8x8xf32>, vector<2x8x8xf32> -> vector<2x8x8xf32>
    "tpu.trace_stop"() : () -> ()
    %cst_255 = arith.constant 0.353553385 : f32
    %603 = vector.broadcast %cst_255 : f32 to vector<2x8x8xf32>
    %604 = arith.mulf %602, %603 : vector<2x8x8xf32>
    %605 = arith.addf %604, %25 : vector<2x8x8xf32>
    %cst_256 = arith.constant dense<0xFF800000> : vector<2x8xf32>
    %606 = vector.multi_reduction <maximumf>, %605, %cst_256 [2] : vector<2x8x8xf32> to vector<2x8xf32>
    %607 = vector.shape_cast %606 : vector<2x8xf32> to vector<2x8x1xf32>
    %608 = vector.broadcast %607 : vector<2x8x1xf32> to vector<2x8x8xf32>
    %609 = arith.subf %605, %608 : vector<2x8x8xf32>
    %610 = math.exp %609 : vector<2x8x8xf32>
    %cst_257 = arith.constant dense<0.000000e+00> : vector<2x8xf32>
    %611 = vector.multi_reduction <add>, %610, %cst_257 [2] : vector<2x8x8xf32> to vector<2x8xf32>
    %612 = vector.shape_cast %611 : vector<2x8xf32> to vector<2x8x1xf32>
    %613 = vector.broadcast %612 : vector<2x8x1xf32> to vector<2x8x8xf32>
    %614 = arith.divf %610, %613 : vector<2x8x8xf32>
    "tpu.trace_start"() <{level = 10 : i32, message = "bqk,bkd->bqd"}> : () -> ()
    %cst_258 = arith.constant dense<0.000000e+00> : vector<2x8x8xf32>
    %615 = tpu.matmul %614, %601, %cst_258 {dimension_numbers = #tpu.dot_dimension_numbers<[2], [1], [1], [2], [0, 0, 0, 1, 1, 2], [0], [0]>} : vector<2x8x8xf32>, vector<2x8x8xf32>, vector<2x8x8xf32> -> vector<2x8x8xf32>
    "tpu.trace_stop"() : () -> ()
    %616 = vector.shape_cast %615 : vector<2x8x8xf32> to vector<16x8xf32>
    %617 = arith.truncf %616 : vector<16x8xf32> to vector<16x8xbf16>
    %618 = vector.extract_strided_slice %597 {offsets = [0, 0], sizes = [8, 32], strides = [1, 1]} : vector<32x32xbf16> to vector<8x32xbf16>
    %cst_259 = arith.constant dense<0.000000e+00> : vector<16x32xf32>
    %619 = tpu.matmul %617, %618, %cst_259 {dimension_numbers = #tpu.dot_dimension_numbers<[1], [0], [0], [1], [0, 0, 1, 1], [], []>} : vector<16x8xbf16>, vector<8x32xbf16>, vector<16x32xf32> -> vector<16x32xf32>
    %620 = arith.addf %598, %619 : vector<16x32xf32>
    %621 = vector.extract_strided_slice %595 {offsets = [0, 0, 8], sizes = [2, 8, 8], strides = [1, 1, 1]} : vector<2x8x96xf32> to vector<2x8x8xf32>
    %622 = vector.extract_strided_slice %595 {offsets = [0, 0, 40], sizes = [2, 8, 8], strides = [1, 1, 1]} : vector<2x8x96xf32> to vector<2x8x8xf32>
    %623 = vector.extract_strided_slice %595 {offsets = [0, 0, 72], sizes = [2, 8, 8], strides = [1, 1, 1]} : vector<2x8x96xf32> to vector<2x8x8xf32>
    "tpu.trace_start"() <{level = 10 : i32, message = "bqd,bkd->bqk"}> : () -> ()
    %cst_260 = arith.constant dense<0.000000e+00> : vector<2x8x8xf32>
    %624 = tpu.matmul %621, %622, %cst_260 {dimension_numbers = #tpu.dot_dimension_numbers<[2], [2], [1], [1], [0, 0, 0, 1, 1, 1], [0], [0]>} : vector<2x8x8xf32>, vector<2x8x8xf32>, vector<2x8x8xf32> -> vector<2x8x8xf32>
    "tpu.trace_stop"() : () -> ()
    %cst_261 = arith.constant 0.353553385 : f32
    %625 = vector.broadcast %cst_261 : f32 to vector<2x8x8xf32>
    %626 = arith.mulf %624, %625 : vector<2x8x8xf32>
    %627 = arith.addf %626, %25 : vector<2x8x8xf32>
    %cst_262 = arith.constant dense<0xFF800000> : vector<2x8xf32>
    %628 = vector.multi_reduction <maximumf>, %627, %cst_262 [2] : vector<2x8x8xf32> to vector<2x8xf32>
    %629 = vector.shape_cast %628 : vector<2x8xf32> to vector<2x8x1xf32>
    %630 = vector.broadcast %629 : vector<2x8x1xf32> to vector<2x8x8xf32>
    %631 = arith.subf %627, %630 : vector<2x8x8xf32>
    %632 = math.exp %631 : vector<2x8x8xf32>
    %cst_263 = arith.constant dense<0.000000e+00> : vector<2x8xf32>
    %633 = vector.multi_reduction <add>, %632, %cst_263 [2] : vector<2x8x8xf32> to vector<2x8xf32>
    %634 = vector.shape_cast %633 : vector<2x8xf32> to vector<2x8x1xf32>
    %635 = vector.broadcast %634 : vector<2x8x1xf32> to vector<2x8x8xf32>
    %636 = arith.divf %632, %635 : vector<2x8x8xf32>
    "tpu.trace_start"() <{level = 10 : i32, message = "bqk,bkd->bqd"}> : () -> ()
    %cst_264 = arith.constant dense<0.000000e+00> : vector<2x8x8xf32>
    %637 = tpu.matmul %636, %623, %cst_264 {dimension_numbers = #tpu.dot_dimension_numbers<[2], [1], [1], [2], [0, 0, 0, 1, 1, 2], [0], [0]>} : vector<2x8x8xf32>, vector<2x8x8xf32>, vector<2x8x8xf32> -> vector<2x8x8xf32>
    "tpu.trace_stop"() : () -> ()
    %638 = vector.shape_cast %637 : vector<2x8x8xf32> to vector<16x8xf32>
    %639 = arith.truncf %638 : vector<16x8xf32> to vector<16x8xbf16>
    %640 = vector.extract_strided_slice %597 {offsets = [8, 0], sizes = [8, 32], strides = [1, 1]} : vector<32x32xbf16> to vector<8x32xbf16>
    %cst_265 = arith.constant dense<0.000000e+00> : vector<16x32xf32>
    %641 = tpu.matmul %639, %640, %cst_265 {dimension_numbers = #tpu.dot_dimension_numbers<[1], [0], [0], [1], [0, 0, 1, 1], [], []>} : vector<16x8xbf16>, vector<8x32xbf16>, vector<16x32xf32> -> vector<16x32xf32>
    %642 = arith.addf %620, %641 : vector<16x32xf32>
    %643 = vector.extract_strided_slice %595 {offsets = [0, 0, 16], sizes = [2, 8, 8], strides = [1, 1, 1]} : vector<2x8x96xf32> to vector<2x8x8xf32>
    %644 = vector.extract_strided_slice %595 {offsets = [0, 0, 48], sizes = [2, 8, 8], strides = [1, 1, 1]} : vector<2x8x96xf32> to vector<2x8x8xf32>
    %645 = vector.extract_strided_slice %595 {offsets = [0, 0, 80], sizes = [2, 8, 8], strides = [1, 1, 1]} : vector<2x8x96xf32> to vector<2x8x8xf32>
    "tpu.trace_start"() <{level = 10 : i32, message = "bqd,bkd->bqk"}> : () -> ()
    %cst_266 = arith.constant dense<0.000000e+00> : vector<2x8x8xf32>
    %646 = tpu.matmul %643, %644, %cst_266 {dimension_numbers = #tpu.dot_dimension_numbers<[2], [2], [1], [1], [0, 0, 0, 1, 1, 1], [0], [0]>} : vector<2x8x8xf32>, vector<2x8x8xf32>, vector<2x8x8xf32> -> vector<2x8x8xf32>
    "tpu.trace_stop"() : () -> ()
    %cst_267 = arith.constant 0.353553385 : f32
    %647 = vector.broadcast %cst_267 : f32 to vector<2x8x8xf32>
    %648 = arith.mulf %646, %647 : vector<2x8x8xf32>
    %649 = arith.addf %648, %25 : vector<2x8x8xf32>
    %cst_268 = arith.constant dense<0xFF800000> : vector<2x8xf32>
    %650 = vector.multi_reduction <maximumf>, %649, %cst_268 [2] : vector<2x8x8xf32> to vector<2x8xf32>
    %651 = vector.shape_cast %650 : vector<2x8xf32> to vector<2x8x1xf32>
    %652 = vector.broadcast %651 : vector<2x8x1xf32> to vector<2x8x8xf32>
    %653 = arith.subf %649, %652 : vector<2x8x8xf32>
    %654 = math.exp %653 : vector<2x8x8xf32>
    %cst_269 = arith.constant dense<0.000000e+00> : vector<2x8xf32>
    %655 = vector.multi_reduction <add>, %654, %cst_269 [2] : vector<2x8x8xf32> to vector<2x8xf32>
    %656 = vector.shape_cast %655 : vector<2x8xf32> to vector<2x8x1xf32>
    %657 = vector.broadcast %656 : vector<2x8x1xf32> to vector<2x8x8xf32>
    %658 = arith.divf %654, %657 : vector<2x8x8xf32>
    "tpu.trace_start"() <{level = 10 : i32, message = "bqk,bkd->bqd"}> : () -> ()
    %cst_270 = arith.constant dense<0.000000e+00> : vector<2x8x8xf32>
    %659 = tpu.matmul %658, %645, %cst_270 {dimension_numbers = #tpu.dot_dimension_numbers<[2], [1], [1], [2], [0, 0, 0, 1, 1, 2], [0], [0]>} : vector<2x8x8xf32>, vector<2x8x8xf32>, vector<2x8x8xf32> -> vector<2x8x8xf32>
    "tpu.trace_stop"() : () -> ()
    %660 = vector.shape_cast %659 : vector<2x8x8xf32> to vector<16x8xf32>
    %661 = arith.truncf %660 : vector<16x8xf32> to vector<16x8xbf16>
    %662 = vector.extract_strided_slice %597 {offsets = [16, 0], sizes = [8, 32], strides = [1, 1]} : vector<32x32xbf16> to vector<8x32xbf16>
    %cst_271 = arith.constant dense<0.000000e+00> : vector<16x32xf32>
    %663 = tpu.matmul %661, %662, %cst_271 {dimension_numbers = #tpu.dot_dimension_numbers<[1], [0], [0], [1], [0, 0, 1, 1], [], []>} : vector<16x8xbf16>, vector<8x32xbf16>, vector<16x32xf32> -> vector<16x32xf32>
    %664 = arith.addf %642, %663 : vector<16x32xf32>
    %665 = vector.extract_strided_slice %595 {offsets = [0, 0, 24], sizes = [2, 8, 8], strides = [1, 1, 1]} : vector<2x8x96xf32> to vector<2x8x8xf32>
    %666 = vector.extract_strided_slice %595 {offsets = [0, 0, 56], sizes = [2, 8, 8], strides = [1, 1, 1]} : vector<2x8x96xf32> to vector<2x8x8xf32>
    %667 = vector.extract_strided_slice %595 {offsets = [0, 0, 88], sizes = [2, 8, 8], strides = [1, 1, 1]} : vector<2x8x96xf32> to vector<2x8x8xf32>
    "tpu.trace_start"() <{level = 10 : i32, message = "bqd,bkd->bqk"}> : () -> ()
    %cst_272 = arith.constant dense<0.000000e+00> : vector<2x8x8xf32>
    %668 = tpu.matmul %665, %666, %cst_272 {dimension_numbers = #tpu.dot_dimension_numbers<[2], [2], [1], [1], [0, 0, 0, 1, 1, 1], [0], [0]>} : vector<2x8x8xf32>, vector<2x8x8xf32>, vector<2x8x8xf32> -> vector<2x8x8xf32>
    "tpu.trace_stop"() : () -> ()
    %cst_273 = arith.constant 0.353553385 : f32
    %669 = vector.broadcast %cst_273 : f32 to vector<2x8x8xf32>
    %670 = arith.mulf %668, %669 : vector<2x8x8xf32>
    %671 = arith.addf %670, %25 : vector<2x8x8xf32>
    %cst_274 = arith.constant dense<0xFF800000> : vector<2x8xf32>
    %672 = vector.multi_reduction <maximumf>, %671, %cst_274 [2] : vector<2x8x8xf32> to vector<2x8xf32>
    %673 = vector.shape_cast %672 : vector<2x8xf32> to vector<2x8x1xf32>
    %674 = vector.broadcast %673 : vector<2x8x1xf32> to vector<2x8x8xf32>
    %675 = arith.subf %671, %674 : vector<2x8x8xf32>
    %676 = math.exp %675 : vector<2x8x8xf32>
    %cst_275 = arith.constant dense<0.000000e+00> : vector<2x8xf32>
    %677 = vector.multi_reduction <add>, %676, %cst_275 [2] : vector<2x8x8xf32> to vector<2x8xf32>
    %678 = vector.shape_cast %677 : vector<2x8xf32> to vector<2x8x1xf32>
    %679 = vector.broadcast %678 : vector<2x8x1xf32> to vector<2x8x8xf32>
    %680 = arith.divf %676, %679 : vector<2x8x8xf32>
    "tpu.trace_start"() <{level = 10 : i32, message = "bqk,bkd->bqd"}> : () -> ()
    %cst_276 = arith.constant dense<0.000000e+00> : vector<2x8x8xf32>
    %681 = tpu.matmul %680, %667, %cst_276 {dimension_numbers = #tpu.dot_dimension_numbers<[2], [1], [1], [2], [0, 0, 0, 1, 1, 2], [0], [0]>} : vector<2x8x8xf32>, vector<2x8x8xf32>, vector<2x8x8xf32> -> vector<2x8x8xf32>
    "tpu.trace_stop"() : () -> ()
    %682 = vector.shape_cast %681 : vector<2x8x8xf32> to vector<16x8xf32>
    %683 = arith.truncf %682 : vector<16x8xf32> to vector<16x8xbf16>
    %684 = vector.extract_strided_slice %597 {offsets = [24, 0], sizes = [8, 32], strides = [1, 1]} : vector<32x32xbf16> to vector<8x32xbf16>
    %cst_277 = arith.constant dense<0.000000e+00> : vector<16x32xf32>
    %685 = tpu.matmul %683, %684, %cst_277 {dimension_numbers = #tpu.dot_dimension_numbers<[1], [0], [0], [1], [0, 0, 1, 1], [], []>} : vector<16x8xbf16>, vector<8x32xbf16>, vector<16x32xf32> -> vector<16x32xf32>
    %686 = arith.addf %664, %685 : vector<16x32xf32>
    %c3_278 = arith.constant 3 : index
    %c0_279 = arith.constant 0 : index
    %c0_280 = arith.constant 0 : index
    %687 = vector.load %arg7[%c3_278, %c0_279, %c0_280] : memref<4x1x32xf32, #tpu.memory_space<vmem>>, vector<1x1x32xf32>
    %688 = vector.shape_cast %687 : vector<1x1x32xf32> to vector<1x32xf32>
    %689 = vector.broadcast %688 : vector<1x32xf32> to vector<16x32xf32>
    %690 = arith.addf %686, %689 : vector<16x32xf32>
    %691 = arith.addf %586, %690 : vector<16x32xf32>
    %c3_281 = arith.constant 3 : index
    %c0_282 = arith.constant 0 : index
    %c0_283 = arith.constant 0 : index
    %692 = vector.load %arg8[%c3_281, %c0_282, %c0_283] : memref<4x1x32xf32, #tpu.memory_space<vmem>>, vector<1x1x32xf32>
    %693 = vector.shape_cast %692 : vector<1x1x32xf32> to vector<1x32xf32>
    %c3_284 = arith.constant 3 : index
    %c0_285 = arith.constant 0 : index
    %c0_286 = arith.constant 0 : index
    %694 = vector.load %arg9[%c3_284, %c0_285, %c0_286] : memref<4x1x32xf32, #tpu.memory_space<vmem>>, vector<1x1x32xf32>
    %695 = vector.shape_cast %694 : vector<1x1x32xf32> to vector<1x32xf32>
    %cst_287 = arith.constant dense<0.000000e+00> : vector<16xf32>
    %696 = vector.multi_reduction <add>, %691, %cst_287 [1] : vector<16x32xf32> to vector<16xf32>
    %697 = vector.shape_cast %696 : vector<16xf32> to vector<16x1xf32>
    %cst_288 = arith.constant 3.200000e+01 : f32
    %698 = vector.broadcast %cst_288 : f32 to vector<16x1xf32>
    %699 = arith.divf %697, %698 : vector<16x1xf32>
    %700 = vector.broadcast %699 : vector<16x1xf32> to vector<16x32xf32>
    %701 = arith.subf %691, %700 : vector<16x32xf32>
    %702 = arith.mulf %701, %701 : vector<16x32xf32>
    %cst_289 = arith.constant dense<0.000000e+00> : vector<16xf32>
    %703 = vector.multi_reduction <add>, %702, %cst_289 [1] : vector<16x32xf32> to vector<16xf32>
    %704 = vector.shape_cast %703 : vector<16xf32> to vector<16x1xf32>
    %cst_290 = arith.constant 3.200000e+01 : f32
    %705 = vector.broadcast %cst_290 : f32 to vector<16x1xf32>
    %706 = arith.divf %704, %705 : vector<16x1xf32>
    %707 = vector.broadcast %699 : vector<16x1xf32> to vector<16x32xf32>
    %708 = arith.subf %691, %707 : vector<16x32xf32>
    %cst_291 = arith.constant 9.99999996E-13 : f32
    %709 = vector.broadcast %cst_291 : f32 to vector<16x1xf32>
    %710 = arith.addf %706, %709 : vector<16x1xf32>
    %711 = math.rsqrt %710 : vector<16x1xf32>
    %712 = vector.broadcast %711 : vector<16x1xf32> to vector<16x32xf32>
    %713 = arith.mulf %708, %712 : vector<16x32xf32>
    %714 = vector.broadcast %693 : vector<1x32xf32> to vector<16x32xf32>
    %715 = arith.mulf %713, %714 : vector<16x32xf32>
    %716 = vector.broadcast %695 : vector<1x32xf32> to vector<16x32xf32>
    %717 = arith.addf %715, %716 : vector<16x32xf32>
    %718 = arith.truncf %717 : vector<16x32xf32> to vector<16x32xbf16>
    %c3_292 = arith.constant 3 : index
    %c0_293 = arith.constant 0 : index
    %c0_294 = arith.constant 0 : index
    %719 = vector.load %arg10[%c3_292, %c0_293, %c0_294] : memref<4x32x128xbf16, #tpu.memory_space<vmem>>, vector<1x32x128xbf16>
    %720 = vector.shape_cast %719 : vector<1x32x128xbf16> to vector<32x128xbf16>
    %cst_295 = arith.constant dense<0.000000e+00> : vector<16x128xf32>
    %721 = tpu.matmul %718, %720, %cst_295 {dimension_numbers = #tpu.dot_dimension_numbers<[1], [0], [0], [1], [0, 0, 1, 1], [], []>} : vector<16x32xbf16>, vector<32x128xbf16>, vector<16x128xf32> -> vector<16x128xf32>
    %c3_296 = arith.constant 3 : index
    %c0_297 = arith.constant 0 : index
    %c0_298 = arith.constant 0 : index
    %722 = vector.load %arg11[%c3_296, %c0_297, %c0_298] : memref<4x1x128xf32, #tpu.memory_space<vmem>>, vector<1x1x128xf32>
    %723 = vector.shape_cast %722 : vector<1x1x128xf32> to vector<1x128xf32>
    %724 = vector.broadcast %723 : vector<1x128xf32> to vector<16x128xf32>
    %725 = arith.addf %721, %724 : vector<16x128xf32>
    %cst_299 = arith.constant 5.000000e-01 : f32
    %726 = vector.broadcast %cst_299 : f32 to vector<16x128xf32>
    %727 = arith.mulf %726, %725 : vector<16x128xf32>
    %cst_300 = arith.constant 4.471500e-02 : f32
    %728 = vector.broadcast %cst_300 : f32 to vector<16x128xf32>
    %729 = arith.mulf %728, %725 : vector<16x128xf32>
    %730 = arith.mulf %729, %725 : vector<16x128xf32>
    %731 = arith.mulf %730, %725 : vector<16x128xf32>
    %732 = arith.addf %725, %731 : vector<16x128xf32>
    %cst_301 = arith.constant 0.797884583 : f32
    %733 = vector.broadcast %cst_301 : f32 to vector<16x128xf32>
    %734 = arith.mulf %733, %732 : vector<16x128xf32>
    %735 = math.tanh %734 : vector<16x128xf32>
    %cst_302 = arith.constant 1.000000e+00 : f32
    %736 = vector.broadcast %cst_302 : f32 to vector<16x128xf32>
    %737 = arith.addf %736, %735 : vector<16x128xf32>
    %738 = arith.mulf %727, %737 : vector<16x128xf32>
    %739 = arith.truncf %738 : vector<16x128xf32> to vector<16x128xbf16>
    %c3_303 = arith.constant 3 : index
    %c0_304 = arith.constant 0 : index
    %c0_305 = arith.constant 0 : index
    %740 = vector.load %arg12[%c3_303, %c0_304, %c0_305] : memref<4x128x32xbf16, #tpu.memory_space<vmem>>, vector<1x128x32xbf16>
    %741 = vector.shape_cast %740 : vector<1x128x32xbf16> to vector<128x32xbf16>
    %cst_306 = arith.constant dense<0.000000e+00> : vector<16x32xf32>
    %742 = tpu.matmul %739, %741, %cst_306 {dimension_numbers = #tpu.dot_dimension_numbers<[1], [0], [0], [1], [0, 0, 1, 1], [], []>} : vector<16x128xbf16>, vector<128x32xbf16>, vector<16x32xf32> -> vector<16x32xf32>
    %c3_307 = arith.constant 3 : index
    %c0_308 = arith.constant 0 : index
    %c0_309 = arith.constant 0 : index
    %743 = vector.load %arg13[%c3_307, %c0_308, %c0_309] : memref<4x1x32xf32, #tpu.memory_space<vmem>>, vector<1x1x32xf32>
    %744 = vector.shape_cast %743 : vector<1x1x32xf32> to vector<1x32xf32>
    %745 = vector.broadcast %744 : vector<1x32xf32> to vector<16x32xf32>
    %746 = arith.addf %742, %745 : vector<16x32xf32>
    %747 = arith.addf %717, %746 : vector<16x32xf32>
    %c3_310 = arith.constant 3 : index
    %c0_311 = arith.constant 0 : index
    %c0_312 = arith.constant 0 : index
    %748 = vector.load %arg14[%c3_310, %c0_311, %c0_312] : memref<4x1x32xf32, #tpu.memory_space<vmem>>, vector<1x1x32xf32>
    %749 = vector.shape_cast %748 : vector<1x1x32xf32> to vector<1x32xf32>
    %c3_313 = arith.constant 3 : index
    %c0_314 = arith.constant 0 : index
    %c0_315 = arith.constant 0 : index
    %750 = vector.load %arg15[%c3_313, %c0_314, %c0_315] : memref<4x1x32xf32, #tpu.memory_space<vmem>>, vector<1x1x32xf32>
    %751 = vector.shape_cast %750 : vector<1x1x32xf32> to vector<1x32xf32>
    %cst_316 = arith.constant dense<0.000000e+00> : vector<16xf32>
    %752 = vector.multi_reduction <add>, %747, %cst_316 [1] : vector<16x32xf32> to vector<16xf32>
    %753 = vector.shape_cast %752 : vector<16xf32> to vector<16x1xf32>
    %cst_317 = arith.constant 3.200000e+01 : f32
    %754 = vector.broadcast %cst_317 : f32 to vector<16x1xf32>
    %755 = arith.divf %753, %754 : vector<16x1xf32>
    %756 = vector.broadcast %755 : vector<16x1xf32> to vector<16x32xf32>
    %757 = arith.subf %747, %756 : vector<16x32xf32>
    %758 = arith.mulf %757, %757 : vector<16x32xf32>
    %cst_318 = arith.constant dense<0.000000e+00> : vector<16xf32>
    %759 = vector.multi_reduction <add>, %758, %cst_318 [1] : vector<16x32xf32> to vector<16xf32>
    %760 = vector.shape_cast %759 : vector<16xf32> to vector<16x1xf32>
    %cst_319 = arith.constant 3.200000e+01 : f32
    %761 = vector.broadcast %cst_319 : f32 to vector<16x1xf32>
    %762 = arith.divf %760, %761 : vector<16x1xf32>
    %763 = vector.broadcast %755 : vector<16x1xf32> to vector<16x32xf32>
    %764 = arith.subf %747, %763 : vector<16x32xf32>
    %cst_320 = arith.constant 9.99999996E-13 : f32
    %765 = vector.broadcast %cst_320 : f32 to vector<16x1xf32>
    %766 = arith.addf %762, %765 : vector<16x1xf32>
    %767 = math.rsqrt %766 : vector<16x1xf32>
    %768 = vector.broadcast %767 : vector<16x1xf32> to vector<16x32xf32>
    %769 = arith.mulf %764, %768 : vector<16x32xf32>
    %770 = vector.broadcast %749 : vector<1x32xf32> to vector<16x32xf32>
    %771 = arith.mulf %769, %770 : vector<16x32xf32>
    %772 = vector.broadcast %751 : vector<1x32xf32> to vector<16x32xf32>
    %773 = arith.addf %771, %772 : vector<16x32xf32>
    %c0_321 = arith.constant 0 : index
    %c0_322 = arith.constant 0 : index
    %774 = vector.load %arg18[%c0_321, %c0_322] : memref<16x32xf32, #tpu.memory_space<vmem>>, vector<16x32xf32>
    tpu.vector_store %arg18[%c0_321, %c0_322], %773 {strides = array<i32>} : memref<16x32xf32, #tpu.memory_space<vmem>>, vector<16x32xf32>,
    %775 = vector.shape_cast %773 : vector<16x32xf32> to vector<2x8x32xf32>
    %776 = vector.extract_strided_slice %775 {offsets = [0, 0, 0], sizes = [2, 1, 32], strides = [1, 1, 1]} : vector<2x8x32xf32> to vector<2x1x32xf32>
    %777 = vector.shape_cast %776 : vector<2x1x32xf32> to vector<2x32xf32>
    %778 = arith.truncf %777 : vector<2x32xf32> to vector<2x32xbf16>
    %c0_323 = arith.constant 0 : index
    %c0_324 = arith.constant 0 : index
    %779 = vector.load %arg16[%c0_323, %c0_324] : memref<32x32xbf16, #tpu.memory_space<vmem>>, vector<32x32xbf16>
    %cst_325 = arith.constant dense<0.000000e+00> : vector<2x32xf32>
    %780 = tpu.matmul %778, %779, %cst_325 {dimension_numbers = #tpu.dot_dimension_numbers<[1], [0], [0], [1], [0, 0, 1, 1], [], []>} : vector<2x32xbf16>, vector<32x32xbf16>, vector<2x32xf32> -> vector<2x32xf32>
    %c0_326 = arith.constant 0 : index
    %c0_327 = arith.constant 0 : index
    %781 = vector.load %arg17[%c0_326, %c0_327] : memref<1x32xf32, #tpu.memory_space<vmem>>, vector<1x32xf32>
    %782 = vector.broadcast %781 : vector<1x32xf32> to vector<2x32xf32>
    %783 = arith.addf %780, %782 : vector<2x32xf32>
    %784 = math.tanh %783 : vector<2x32xf32>
    %c0_328 = arith.constant 0 : index
    %c0_329 = arith.constant 0 : index
    %785 = vector.load %arg19[%c0_328, %c0_329] : memref<2x32xf32, #tpu.memory_space<vmem>>, vector<2x32xf32>
    tpu.vector_store %arg19[%c0_328, %c0_329], %784 {strides = array<i32>} : memref<2x32xf32, #tpu.memory_space<vmem>>, vector<2x32xf32>,
    return
  }
}

</mosaic_0001>

<bundles_post_ra>
// kernel: _knowbert_core.1
= control target key start
LH: loop header
LB: loop body
LE: loop exit
PB: predicated region body
PF: predicated region fallthrough
CT: control target
= control target key end

     0   :  { %s6257_s0 = inlined_call_operand.vmem [shape: f32[16,32], index: 0, kind: input, shape index: {}]   ;;  %s6258_s1 = inlined_call_operand.vmem [shape: f32[2,8,8], index: 1, kind: input, shape index: {}]   ;;  %s6259_s2 = inlined_call_operand.vmem [shape: f32[1,32], index: 2, kind: input, shape index: {}]   ;;  %s6260_s3 = inlined_call_operand.vmem [shape: f32[1,32], index: 3, kind: input, shape index: {}]   ;;  %s6261_s4 = inlined_call_operand.vmem [shape: bf16[4,32,96], index: 4, kind: input, shape index: {}]   ;;  %s6262_s5 = inlined_call_operand.vmem [shape: f32[4,1,96], index: 5, kind: input, shape index: {}]   ;;  %s6263_s6 = inlined_call_operand.vmem [shape: bf16[4,32,32], index: 6, kind: input, shape index: {}]   ;;  %s6264_s7 = inlined_call_operand.vmem [shape: f32[4,1,32], index: 7, kind: input, shape index: {}]   ;;  %s6265_s8 = inlined_call_operand.vmem [shape: f32[4,1,32], index: 8, kind: input, shape index: {}]   ;;  %s6266_s9 = inlined_call_operand.vmem [shape: f32[4,1,32], index: 9, kind: input, shape index: {}]   ;;  %s6267_s10 = inlined_call_operand.vmem [shape: bf16[4,32,128], index: 10, kind: input, shape index: {}]   ;;  %s6268_s11 = inlined_call_operand.vmem [shape: f32[4,1,128], index: 11, kind: input, shape index: {}]   ;;  %s6269_s12 = inlined_call_operand.vmem [shape: bf16[4,128,32], index: 12, kind: input, shape index: {}]   ;;  %s6270_s13 = inlined_call_operand.vmem [shape: f32[4,1,32], index: 13, kind: input, shape index: {}]   ;;  %s6271_s14 = inlined_call_operand.vmem [shape: f32[4,1,32], index: 14, kind: input, shape index: {}]   ;;  %s6272_s15 = inlined_call_operand.vmem [shape: f32[4,1,32], index: 15, kind: input, shape index: {}]   ;;  %s6273_s16 = inlined_call_operand.vmem [shape: bf16[32,32], index: 16, kind: input, shape index: {}]   ;;  %s6274_s17 = inlined_call_operand.vmem [shape: f32[1,32], index: 17, kind: input, shape index: {}]   ;;  %s6275_s18 = inlined_call_operand.hbm [shape: f32[16,32], index: 18, kind: output, shape index: {0}]   ;;  %s6276_s19 = inlined_call_operand.hbm [shape: f32[2,32], index: 19, kind: output, shape index: {1}]  }
   0x1   :  { %6306 = sst [smem:[#allocation8_spill]] %s6257_s0 }
   0x2   :  { %6307 = sst [smem:[#allocation9_spill]] %s6258_s1 }
   0x3   :  { %6308 = sst [smem:[#allocation10_spill]] %s6259_s2 }
   0x4   :  { %6309 = sst [smem:[#allocation11_spill]] %s6260_s3 }
   0x5   :  { %6310 = sst [smem:[#allocation12_spill]] %s6265_s8 }
   0x6   :  { %6311 = sst [smem:[#allocation13_spill]] %s6266_s9 }
   0x7   :  { %6312 = sst [smem:[#allocation14_spill]] %s6267_s10 }
   0x8   :  { %6313 = sst [smem:[#allocation15_spill]] %s6273_s16 }
   0x9   :  { %6314 = sst [smem:[#allocation16_spill]] %s6274_s17 }
   0xa   :  { %6315 = sst [smem:[#allocation17_spill]] %s6275_s18 }
   0xb   :  { %6316 = sst [smem:[#allocation18_spill]] %s6276_s19 }
   0xc   :  { %25 = vsyncpa [#allocation3], 0  ;;  %s6317_s20 = sld [smem:[#allocation8_spill]]  ;;  %vm68_vm0 = vcmask 261120  }
  0x12   :  { %v64_v0 = vld [vmem:[%s6317_s20] sm:$0xff]  ;;  %v65_v1 = vld [vmem:[%s6317_s20 + $0x8] sm:$0xff] }
  0x13   :  { %v69_v2 = vsel %vm68_vm0, %v64_v0, 0.0  ;;  %v72_v3 = vsel %vm68_vm0, %v65_v1, 0.0 }
  0x14   :  { %70 = vadd.xlane.f32.xlu0 %v69_v2 }
  0x1c   :  { %73 = vadd.xlane.f32.xlu0 %v72_v3 }
  0x1d   :  { %26 = vsyncpa [#allocation5], 0  ;;  %v5163_v4 = vmov 32.0   ;;  %v4801_v21 = vld [vmem:[%s6261_s4 + $0x8] sm:$0xff]  ;;  %v4800_v23 = vld [vmem:[%s6261_s4] sm:$0xff]  ;;  %s6318_s26 = sld [smem:[#allocation10_spill]] }
  0x1e   :  { %4921 = vrcp.f32 %v5163_v4  ;;  %162 = vmatpush.bf16.msra.mxu0 %v4801_v21  ;;  %s6319_s29 = sld [smem:[#allocation11_spill]]  ;;  %v4888_v52 = vld [vmem:[%s6262_s5] ss:$0 sm:$0xff]  ;;  %s6295_s20 = smov 120   ;;  %vm177_vm8 = vcmask 64512  }
  0x1f   :  { %s6299_s21 = smov 88   ;;  %s6297_s1 = smov 96  }
  0x20   :  { %s6320_s23 = sld [smem:[#allocation9_spill]]  ;;  %s6293_s3 = smov 64  }
  0x21   :  { %s6287_s27 = smov 112   ;;  %s6291_s28 = smov 80  }
  0x22   :  { %163 = vmatpush.bf16.msra.mxu0 %v4800_v23  ;;  %s6283_s30 = smov 48   ;;  %s6281_s22 = smov 104  }
  0x23   :  { %v4886_v42 = vld [vmem:[%s6318_s26] ss:$0 sm:$0xff]  ;;  %s6289_s26 = smov 56   ;;  %s6285_s2 = smov 72  }
  0x24   :  { %v4922_v5 = vpop.eup %4921  ;;  %v4887_v47 = vld [vmem:[%s6319_s29] ss:$0 sm:$0xff]  ;;  %s6279_s29 = smov 40   ;;  %s6322_s0 = smov 56  }
  0x25   :  { %v76_v6 = vmul.f32 32.0, %v4922_v5  ;;  %vm80_vm1 = vweird.f32 %v4922_v5  ;;  %s6324_s24 = smov 72   ;;  %s6334_s16 = sld [smem:[#allocation13_spill]] }
  0x26   :  { %v5340_v62 = vld [vmem:[%s6320_s23] sm:$0xff]  ;;  %v5347_v3 = vld [vmem:[%s6320_s23 + $0x8] sm:$0xff]  ;;  %s6335_s25 = sld [smem:[#allocation15_spill]]  ;;  %s5176_s17 = smov 128  }
  0x27   :  { %v77_v7 = vsub.f32 1.0, %v76_v6 }
  0x29   :  { %v78_v8 = vmul.f32 %v4922_v5, %v77_v7 }
  0x2b   :  { %v79_v9 = vadd.f32 %v4922_v5, %v78_v8 }
  0x2d   :  { %v5287_v10 = vsel %vm80_vm1, %v4922_v5, %v79_v9 }
  0x87   :  { %v71_v11 = vpop.xlane.xlu0 %70 }
  0x88   :  { %v82_v12 = vmul.f32 %v5287_v10, %v71_v11 }
  0x8a   :  { %v84_v13 = vsub.f32 %v64_v0, %v82_v12 }
  0x8c   :  { %v86_v14 = vmul.f32 %v84_v13, %v84_v13 }
  0x8e   :  { %v88_v15 = vsel %vm68_vm0, %v86_v14, 0.0 }
  0x8f   :  { %89 = vadd.xlane.f32.xlu1 %v88_v15  ;;  %v74_v16 = vpop.xlane.xlu0 %73 }
  0x90   :  { %v83_v17 = vmul.f32 %v5287_v10, %v74_v16 }
  0x92   :  { %v85_v18 = vsub.f32 %v65_v1, %v83_v17 }
  0x94   :  { %v87_v19 = vmul.f32 %v85_v18, %v85_v18 }
  0x96   :  { %v91_v20 = vsel %vm68_vm0, %v87_v19, 0.0 }
  0x97   :  { %92 = vadd.xlane.f32.xlu1 %v91_v20 }
 0x102   :  { %v90_v22 = vpop.xlane.xlu1 %89 }
 0x103   :  { %v94_v24 = vmul.f32 %v90_v22, %v5287_v10 }
 0x105   :  { %v96_v25 = vadd.f32 1e-12, %v94_v24 }
 0x107   :  { %4923 = vrsqrt.f32 %v96_v25  ;;  %vm104_vm3 = vweird.f32 %v96_v25 }
 0x10a   :  { %v93_v26 = vpop.xlane.xlu1 %92 }
 0x10b   :  { %v95_v27 = vmul.f32 %v93_v26, %v5287_v10 }
 0x10d   :  { %v4924_v28 = vpop.eup %4923  ;;  %v97_v29 = vadd.f32 1e-12, %v95_v27 }
 0x10e   :  { %v99_v30 = vmul.f32 %v4924_v28, %v96_v25  ;;  %vm105_vm2 = vweird.f32 %v4924_v28 }
 0x10f   :  { %4925 = vrsqrt.f32 %v97_v29  ;;  %vm106_vm4 = vmor %vm104_vm3, %vm105_vm2  ;;  %vm114_vm6 = vweird.f32 %v97_v29 }
 0x110   :  { %v100_v31 = vmul.f32 %v4924_v28, %v99_v30 }
 0x112   :  { %v101_v32 = vmul.f32 0.5, %v100_v31 }
 0x114   :  { %v102_v33 = vsub.f32 1.5, %v101_v32 }
 0x115   :  { %v4926_v34 = vpop.eup %4925 }
 0x116   :  { %v103_v35 = vmul.f32 %v4924_v28, %v102_v33  ;;  %v109_v36 = vmul.f32 %v4926_v34, %v97_v29  ;;  %vm115_vm5 = vweird.f32 %v4926_v34 }
 0x117   :  { %vm116_vm7 = vmor %vm114_vm6, %vm115_vm5  ;;  %vm498_vm6 = vcmask 1043456  }
 0x118   :  { %v110_v37 = vmul.f32 %v4926_v34, %v109_v36  ;;  %v107_v38 = vsel %vm106_vm4, %v4924_v28, %v103_v35 }
 0x119   :  { %v118_v41 = vmul.f32 %v107_v38, %v84_v13 }
 0x11a   :  { %v111_v39 = vmul.f32 0.5, %v110_v37 }
 0x11b   :  { %v123_v46 = vmul.f32 %v4886_v42, %v118_v41 }
 0x11c   :  { %v112_v40 = vsub.f32 1.5, %v111_v39 }
 0x11d   :  { %v5307_v49 = vadd.f32 %v4887_v47, %v123_v46 }
 0x11e   :  { %v113_v43 = vmul.f32 %v4926_v34, %v112_v40 }
 0x120   :  { %v117_v44 = vsel %vm116_vm7, %v4926_v34, %v113_v43 }
 0x121   :  { %v119_v45 = vmul.f32 %v117_v44, %v85_v18 }
 0x123   :  { %v124_v48 = vmul.f32 %v4886_v42, %v119_v45 }
 0x125   :  { %v5309_v50 = vadd.f32 %v4887_v47, %v124_v48 }
 0x127   :  { %v132_v51 = vpack.c.bf16 %v5309_v50, %v5307_v49 }
 0x129   :  { %4379 = vmatmul.msk.bf16.vlgmr.msra.gmra.mxu0 %vm68_vm0, %v132_v51 }
 0x1a6   :  { %v165_v53 = vpop.f32.mrf.mxu0 }
 0x1a7   :  { %v5317_v54 = vadd.f32 %v4888_v52, %v165_v53 }
 0x1a9   :  { %334 = vrot.lane.b32.xlu1 %v5317_v54, %s6295_s20  ;;  %336 = vrot.lane.b32.xlu0 %v5317_v54, %s6299_s21 }
 0x1aa   :  { %175 = vrot.lane.b32.xlu2 %v5317_v54, %s6297_s1 }
 0x1ae   :  { %v167_v55 = vpop.f32.mrf.mxu0 }
 0x1af   :  { %v5325_v56 = vadd.f32 %v4888_v52, %v167_v55 }
 0x1b2   :  { %203 = vrot.lane.b32.xlu2 %v5325_v56, %s6297_s1 }
 0x204   :  { %v176_v57 = vpop.permute.xlu2 %175 }
 0x205   :  { %4380 = vmatpush.xpose.msk.msra.mxu1 %vm177_vm8, %v176_v57 }
 0x208   :  { %4381 = vmatmul.msk.f32.vlgmr.msra.gmra.mxu1 %vm177_vm8, %v5317_v54 }
 0x20c   :  { %v204_v58 = vpop.permute.xlu2 %203 }
 0x20d   :  { %4382 = vmatpush.xpose.msk.msra.mxu3 %vm177_vm8, %v204_v58 }
 0x210   :  { %4383 = vmatmul.msk.f32.vlgmr.msra.gmra.mxu3 %vm177_vm8, %v5325_v56 }
 0x21b   :  { %v337_v59 = vpop.permute.xlu0 %336  ;;  %v335_v60 = vpop.permute.xlu1 %334 }
 0x21c   :  { %4386 = vmatpush.xpose.msk.msrb.mxu1 %vm177_vm8, %v337_v59 }
 0x21f   :  { %4387 = vmatmul.msk.f32.vlgmr.msrb.gmra.mxu1 %vm177_vm8, %v335_v60 }
 0x285   :  { %v199_v61 = vpop.f32.mrf.mxu1 }
 0x286   :  { %v229_v63 = vmul.f32 0.35355338, %v199_v61 }
 0x288   :  { %v231_v0 = vadd.f32 %v229_v63, %v5340_v62 }
 0x28a   :  { %v233_v1 = vsel %vm177_vm8, %v231_v0, -inf }
 0x28b   :  { %234 = vmax.xlane.f32.xlu2 %v233_v1 }
 0x293   :  { %v226_v2 = vpop.f32.mrf.mxu3 }
 0x294   :  { %v230_v4 = vmul.f32 0.35355338, %v226_v2 }
 0x296   :  { %v232_v5 = vadd.f32 %v230_v4, %v5347_v3 }
 0x298   :  { %v236_v6 = vsel %vm177_vm8, %v232_v5, -inf }
 0x299   :  { %237 = vmax.xlane.f32.xlu0 %v236_v6 }
 0x29c   :  { %v359_v7 = vpop.f32.mrf.mxu1 }
 0x29d   :  { %v390_v8 = vmul.f32 0.35355338, %v359_v7 }
 0x29f   :  { %v392_v9 = vadd.f32 %v390_v8, %v5340_v62 }
 0x2a1   :  { %v394_v11 = vsel %vm177_vm8, %v392_v9, -inf }
 0x2a2   :  { %395 = vmax.xlane.f32.xlu1 %v394_v11 }
 0x2a3   :  { %307 = vrot.lane.b32.xlu2 %v5325_v56, %s6293_s3 }
 0x2ad   :  { %281 = vrot.lane.b32.xlu0 %v5317_v54, %s6293_s3 }
 0x2b5   :  { %364 = vrot.lane.b32.xlu0 %v5325_v56, %s6299_s21 }
 0x2bb   :  { %442 = vrot.lane.b32.xlu1 %v5317_v54, %s6289_s26 }
 0x2bd   :  { %362 = vrot.lane.b32.xlu0 %v5325_v56, %s6295_s20 }
 0x2c3   :  { %536 = vrot.lane.b32.xlu1 %v5317_v54, %s6287_s27 }
 0x2fe   :  { %v235_v12 = vpop.xlane.xlu2 %234 }
 0x2ff   :  { %v239_v13 = vsub.f32 %v231_v0, %v235_v12 }
 0x301   :  { %v241_v14 = vmul.f32 1.442695, %v239_v13 }
 0x303   :  { %4927 = vpow2.f32 %v241_v14 }
 0x306   :  { %v308_v25 = vpop.permute.xlu2 %307 }
 0x309   :  { %v4928_v15 = vpop.eup %4927 }
 0x30a   :  { %v245_v16 = vsel %vm177_vm8, %v4928_v15, 0.0 }
 0x30b   :  { %246 = vadd.xlane.f32.xlu2 %v245_v16 }
 0x30c   :  { %v238_v17 = vpop.xlane.xlu0 %237 }
 0x30d   :  { %v240_v20 = vsub.f32 %v232_v5, %v238_v17  ;;  %v170_v17 = vld [vmem:[%s6263_s6] sm:$0xf] }
 0x30f   :  { %v243_v22 = vmul.f32 1.442695, %v240_v20 }
 0x315   :  { %v396_v18 = vpop.xlane.xlu1 %395 }
 0x316   :  { %v400_v19 = vsub.f32 %v392_v9, %v396_v18  ;;  %v520_v18 = vsel %vm498_vm6, %v170_v17, 0 }
 0x317   :  { %529 = vmatpush.bf16.msrb.mxu0 %v520_v18 }
 0x318   :  { %v402_v21 = vmul.f32 1.442695, %v400_v19 }
 0x31a   :  { %4929 = vpow2.f32 %v402_v21 }
 0x31b   :  { %4931 = vpow2.f32 %v243_v22 }
 0x31f   :  { %v282_v23 = vpop.permute.xlu0 %281 }
 0x320   :  { %v5366_v24 = vpop.eup %4929  ;;  %302 = vmatpush.msrb.mxu3 %v282_v23 }
 0x321   :  { %v406_v26 = vsel %vm177_vm8, %v5366_v24, 0.0  ;;  %v4932_v27 = vpop.eup %4931 }
 0x322   :  { %328 = vmatpush.msra.mxu3 %v308_v25  ;;  %407 = vadd.xlane.f32.xlu2 %v406_v26  ;;  %v248_v29 = vsel %vm177_vm8, %v4932_v27, 0.0 }
 0x327   :  { %v365_v28 = vpop.permute.xlu0 %364 }
 0x328   :  { %4388 = vmatpush.xpose.msk.msra.mxu2 %vm177_vm8, %v365_v28 }
 0x32a   :  { %249 = vadd.xlane.f32.xlu2 %v248_v29 }
 0x32d   :  { %v443_v43 = vpop.permute.xlu1 %442 }
 0x32f   :  { %v363_v30 = vpop.permute.xlu0 %362 }
 0x330   :  { %4389 = vmatmul.msk.f32.vlgmr.msra.gmra.mxu2 %vm177_vm8, %v363_v30 }
 0x335   :  { %v537_v16 = vpop.permute.xlu1 %536 }
 0x342   :  { %538 = vrot.lane.b32.xlu2 %v5317_v54, %s6291_s28 }
 0x37e   :  { %v247_v31 = vpop.xlane.xlu2 %246 }
 0x37f   :  { %4933 = vrcp.f32 %v247_v31  ;;  %v262_v35 = vand.u32 2147483648, %v247_v31  ;;  %v260_v37 = vand.u32 2147483647, %v247_v31  ;;  %vm256_vm10 = vweird.f32 %v247_v31 }
 0x381   :  { %v263_v39 = vor.u32 1.1754944e-38, %v262_v35  ;;  %vm261_vm12 = vcmp.eq.f32.partialorder %v260_v37, 8.507059e+37 }
 0x385   :  { %v4934_v32 = vpop.eup %4933 }
 0x386   :  { %v252_v33 = vmul.f32 %v4934_v32, %v247_v31  ;;  %vm257_vm9 = vweird.f32 %v4934_v32 }
 0x387   :  { %vm258_vm11 = vmor %vm256_vm10, %vm257_vm9 }
 0x388   :  { %v253_v34 = vsub.f32 1.0, %v252_v33 }
 0x38a   :  { %v254_v36 = vmul.f32 %v4934_v32, %v253_v34 }
 0x38c   :  { %v255_v38 = vadd.f32 %v4934_v32, %v254_v36 }
 0x38e   :  { %v259_v40 = vsel %vm258_vm11, %v4934_v32, %v255_v38 }
 0x38f   :  { %v264_v41 = vsel %vm261_vm12, %v263_v39, %v259_v40 }
 0x390   :  { %v265_v42 = vmul.f32 %v4928_v15, %v264_v41 }
 0x392   :  { %4384 = vmatmul.msk.f32.vlgmr.msrb.gmra.mxu3 %vm177_vm8, %v265_v42 }
 0x393   :  { %463 = vmatpush.msrb.mxu3 %v443_v43 }
 0x395   :  { %v408_v44 = vpop.xlane.xlu2 %407 }
 0x396   :  { %4935 = vrcp.f32 %v408_v44  ;;  %v423_v1 = vand.u32 2147483648, %v408_v44  ;;  %vm417_vm3 = vweird.f32 %v408_v44  ;;  %v421_v4 = vand.u32 2147483647, %v408_v44 }
 0x398   :  { %v424_v8 = vor.u32 1.1754944e-38, %v423_v1  ;;  %vm422_vm5 = vcmp.eq.f32.partialorder %v421_v4, 8.507059e+37 }
 0x39c   :  { %v4936_v46 = vpop.eup %4935 }
 0x39d   :  { %v250_v45 = vpop.xlane.xlu2 %249  ;;  %v413_v47 = vmul.f32 %v4936_v46, %v408_v44  ;;  %vm418_vm1 = vweird.f32 %v4936_v46 }
 0x39e   :  { %4937 = vrcp.f32 %v250_v45  ;;  %v277_v55 = vand.u32 2147483648, %v250_v45  ;;  %v275_v59 = vand.u32 2147483647, %v250_v45  ;;  %vm271_vm14 = vweird.f32 %v250_v45  ;;  %vm419_vm4 = vmor %vm417_vm3, %vm418_vm1 }
 0x39f   :  { %v414_v51 = vsub.f32 1.0, %v413_v47 }
 0x3a0   :  { %v278_v61 = vor.u32 1.1754944e-38, %v277_v55  ;;  %vm276_vm2 = vcmp.eq.f32.partialorder %v275_v59, 8.507059e+37 }
 0x3a1   :  { %v415_v57 = vmul.f32 %v4936_v46, %v414_v51 }
 0x3a3   :  { %v416_v63 = vadd.f32 %v4936_v46, %v415_v57 }
 0x3a4   :  { %v4938_v48 = vpop.eup %4937 }
 0x3a5   :  { %v267_v52 = vmul.f32 %v4938_v48, %v250_v45  ;;  %vm272_vm13 = vweird.f32 %v4938_v48  ;;  %v420_v6 = vsel %vm419_vm4, %v4936_v46, %v416_v63  ;;  %v539_v7 = vpop.permute.xlu2 %538 }
 0x3a6   :  { %vm273_vm15 = vmor %vm271_vm14, %vm272_vm13  ;;  %v425_v12 = vsel %vm422_vm5, %v424_v8, %v420_v6 }
 0x3a7   :  { %v268_v53 = vsub.f32 1.0, %v267_v52  ;;  %v426_v14 = vmul.f32 %v5366_v24, %v425_v12 }
 0x3a9   :  { %v269_v58 = vmul.f32 %v4938_v48, %v268_v53 }
 0x3ab   :  { %v270_v60 = vadd.f32 %v4938_v48, %v269_v58  ;;  %v171_v58 = vld [vmem:[%s6263_s6 + $0x4] sm:$0xf] }
 0x3ac   :  { %v500_v59 = vsel %vm498_vm6, %v171_v58, 0 }
 0x3ad   :  { %v274_v0 = vsel %vm273_vm15, %v4938_v48, %v270_v60  ;;  %509 = vmatpush.bf16.msrb.mxu2 %v500_v59  ;;  %v4866_v59 = vpack.i.bf16 %v5325_v56, %v5317_v54 }
 0x3ae   :  { %v279_v2 = vsel %vm276_vm2, %v278_v61, %v274_v0 }
 0x3af   :  { %v280_v5 = vmul.f32 %v4932_v27, %v279_v2 }
 0x3b1   :  { %4385 = vmatmul.msk.f32.vlgmr.msra.gmra.mxu3 %vm177_vm8, %v280_v5 }
 0x3b2   :  { %4394 = vmatpush.xpose.msk.msra.mxu3 %vm177_vm8, %v539_v7 }
 0x3b3   :  { %v387_v9 = vpop.f32.mrf.mxu2 }
 0x3b4   :  { %v391_v11 = vmul.f32 0.35355338, %v387_v9 }
 0x3b6   :  { %v393_v13 = vadd.f32 %v391_v11, %v5347_v3 }
 0x3b8   :  { %v397_v15 = vsel %vm177_vm8, %v393_v13, -inf }
 0x3b9   :  { %398 = vmax.xlane.f32.xlu2 %v397_v15  ;;  %4390 = vmatmul.msk.f32.vlgmr.msrb.gmra.mxu3 %vm177_vm8, %v426_v14 }
 0x3c1   :  { %4395 = vmatmul.msk.f32.vlgmr.msra.gmra.mxu3 %vm177_vm8, %v537_v16 }
 0x3d1   :  { %566 = vrot.lane.b32.xlu2 %v5325_v56, %s6291_s28  ;;  %s6333_s28 = sld [smem:[#allocation12_spill]] }
 0x415   :  { %v304_v19 = vpop.f32.mrf.mxu3 }
 0x42c   :  { %v399_v20 = vpop.xlane.xlu2 %398 }
 0x42d   :  { %v401_v21 = vsub.f32 %v393_v13, %v399_v20 }
 0x42f   :  { %v404_v22 = vmul.f32 1.442695, %v401_v21 }
 0x431   :  { %4939 = vpow2.f32 %v404_v22 }
 0x434   :  { %v330_v23 = vpop.f32.mrf.mxu3  ;;  %v567_v53 = vpop.permute.xlu2 %566 }
 0x435   :  { %v333_v24 = vpack.c.bf16 %v330_v23, %v304_v19 }
 0x437   :  { %v4940_v25 = vpop.eup %4939  ;;  %4393 = vmatmul.msk.bf16.vlgmr.msrb.gmra.mxu0 %vm177_vm8, %v333_v24 }
 0x438   :  { %v409_v26 = vsel %vm177_vm8, %v4940_v25, 0.0 }
 0x439   :  { %410 = vadd.xlane.f32.xlu1 %v409_v26 }
 0x43c   :  { %v5391_v27 = vpop.f32.mrf.mxu3 }
 0x444   :  { %v561_v28 = vpop.f32.mrf.mxu3 }
 0x445   :  { %v592_v29 = vmul.f32 0.35355338, %v561_v28 }
 0x447   :  { %v594_v30 = vadd.f32 %v592_v29, %v5340_v62 }
 0x449   :  { %v596_v31 = vsel %vm177_vm8, %v594_v30, -inf }
 0x44a   :  { %597 = vmax.xlane.f32.xlu0 %v596_v31 }
 0x452   :  { %644 = vrot.lane.b32.xlu1 %v5317_v54, %s6283_s30 }
 0x45a   :  { %564 = vrot.lane.b32.xlu1 %v5325_v56, %s6287_s27  ;;  %s6323_s27 = smov 112  }
 0x45e   :  { %468 = vrot.lane.b32.xlu0 %v5325_v56, %s6289_s26  ;;  %s6327_s26 = smov 40  }
 0x462   :  { %719 = vrot.lane.b32.xlu1 %v5317_v54, %s6281_s22 }
 0x466   :  { %749 = vrot.lane.b32.xlu0 %v5325_v56, %s6285_s2 }
 0x46e   :  { %747 = vrot.lane.b32.xlu0 %v5325_v56, %s6281_s22  ;;  %s6325_s22 = smov 48  }
 0x4ac   :  { %v411_v32 = vpop.xlane.xlu1 %410 }
 0x4ad   :  { %4941 = vrcp.f32 %v411_v32  ;;  %v438_v42 = vand.u32 2147483648, %v411_v32  ;;  %vm432_vm9 = vweird.f32 %v411_v32  ;;  %v436_v44 = vand.u32 2147483647, %v411_v32 }
 0x4af   :  { %v439_v47 = vor.u32 1.1754944e-38, %v438_v42  ;;  %vm437_vm11 = vcmp.eq.f32.partialorder %v436_v44, 8.507059e+37 }
 0x4b3   :  { %v4942_v33 = vpop.eup %4941 }
 0x4b4   :  { %v428_v34 = vmul.f32 %v4942_v33, %v411_v32  ;;  %vm433_vm7 = vweird.f32 %v4942_v33  ;;  %v5426_v20 = vpop.f32.mrf.mxu0 }
 0x4b5   :  { %vm434_vm10 = vmor %vm432_vm9, %vm433_vm7 }
 0x4b6   :  { %v429_v36 = vsub.f32 1.0, %v428_v34 }
 0x4b8   :  { %v430_v39 = vmul.f32 %v4942_v33, %v429_v36 }
 0x4ba   :  { %v431_v41 = vadd.f32 %v4942_v33, %v430_v39 }
 0x4bc   :  { %v435_v46 = vsel %vm434_vm10, %v4942_v33, %v431_v41  ;;  %v5428_v21 = vpop.f32.mrf.mxu0 }
 0x4bd   :  { %v598_v35 = vpop.xlane.xlu0 %597  ;;  %v440_v48 = vsel %vm437_vm11, %v439_v47, %v435_v46 }
 0x4be   :  { %v602_v37 = vsub.f32 %v594_v30, %v598_v35  ;;  %v441_v52 = vmul.f32 %v4940_v25, %v440_v48 }
 0x4c0   :  { %v604_v38 = vmul.f32 1.442695, %v602_v37 }
 0x4c2   :  { %4943 = vpow2.f32 %v604_v38 }
 0x4c4   :  { %v645_v40 = vpop.permute.xlu1 %644 }
 0x4c5   :  { %665 = vmatpush.msrb.mxu3 %v645_v40 }
 0x4c8   :  { %v4944_v43 = vpop.eup %4943 }
 0x4c9   :  { %v608_v45 = vsel %vm177_vm8, %v4944_v43, 0.0 }
 0x4ca   :  { %609 = vadd.xlane.f32.xlu2 %v608_v45 }
 0x4cc   :  { %v565_v57 = vpop.permute.xlu1 %564 }
 0x4d0   :  { %v469_v51 = vpop.permute.xlu0 %468 }
 0x4d1   :  { %489 = vmatpush.msra.mxu1 %v469_v51 }
 0x4d2   :  { %4391 = vmatmul.msk.f32.vlgmr.msra.gmra.mxu1 %vm177_vm8, %v441_v52 }
 0x4d3   :  { %4396 = vmatpush.xpose.msk.msrb.mxu1 %vm177_vm8, %v567_v53 }
 0x4d4   :  { %v720_v2 = vpop.permute.xlu1 %719 }
 0x4d8   :  { %v750_v55 = vpop.permute.xlu0 %749 }
 0x4d9   :  { %4403 = vmatpush.xpose.msk.msra.mxu3 %vm177_vm8, %v750_v55 }
 0x4da   :  { %4397 = vmatmul.msk.f32.vlgmr.msrb.gmra.mxu1 %vm177_vm8, %v565_v57 }
 0x4e0   :  { %v748_v16 = vpop.permute.xlu0 %747 }
 0x4e2   :  { %721 = vrot.lane.b32.xlu2 %v5317_v54, %s6285_s2  ;;  %s6321_s2 = smov 80  }
 0x53d   :  { %v610_v60 = vpop.xlane.xlu2 %609 }
 0x53e   :  { %4945 = vrcp.f32 %v610_v60  ;;  %v625_v4 = vand.u32 2147483648, %v610_v60  ;;  %v623_v6 = vand.u32 2147483647, %v610_v60  ;;  %vm619_vm13 = vweird.f32 %v610_v60 }
 0x540   :  { %v626_v8 = vor.u32 1.1754944e-38, %v625_v4  ;;  %vm624_vm15 = vcmp.eq.f32.partialorder %v623_v6, 8.507059e+37 }
 0x544   :  { %v4946_v61 = vpop.eup %4945 }
 0x545   :  { %v615_v63 = vmul.f32 %v4946_v61, %v610_v60  ;;  %v722_v0 = vpop.permute.xlu2 %721  ;;  %vm620_vm12 = vweird.f32 %v4946_v61 }
 0x546   :  { %4401 = vmatpush.xpose.msk.msra.mxu0 %vm177_vm8, %v722_v0  ;;  %vm621_vm14 = vmor %vm619_vm13, %vm620_vm12  ;;  %v172_v0 = vld [vmem:[%s6263_s6 + $0x8] sm:$0xf] }
 0x547   :  { %v616_v1 = vsub.f32 1.0, %v615_v63 }
 0x549   :  { %v617_v5 = vmul.f32 %v4946_v61, %v616_v1  ;;  %4402 = vmatmul.msk.f32.vlgmr.msra.gmra.mxu0 %vm177_vm8, %v720_v2  ;;  %v701_v1 = vsel %vm498_vm6, %v172_v0, 0 }
 0x54a   :  { %710 = vmatpush.bf16.msra.mxu2 %v701_v1 }
 0x54b   :  { %v618_v7 = vadd.f32 %v4946_v61, %v617_v5 }
 0x54d   :  { %v622_v9 = vsel %vm621_vm14, %v4946_v61, %v618_v7 }
 0x54e   :  { %v627_v11 = vsel %vm624_vm15, %v626_v8, %v622_v9 }
 0x54f   :  { %v491_v12 = vpop.f32.mrf.mxu1  ;;  %v628_v13 = vmul.f32 %v4944_v43, %v627_v11 }
 0x550   :  { %v494_v14 = vpack.c.bf16 %v491_v12, %v5391_v27 }
 0x551   :  { %4398 = vmatmul.msk.f32.vlgmr.msrb.gmra.mxu3 %vm177_vm8, %v628_v13 }
 0x552   :  { %4392 = vmatmul.msk.bf16.vlgmr.msrb.gmra.mxu2 %vm177_vm8, %v494_v14 }
 0x557   :  { %v589_v15 = vpop.f32.mrf.mxu1 }
 0x558   :  { %v593_v17 = vmul.f32 0.35355338, %v589_v15 }
 0x559   :  { %4404 = vmatmul.msk.f32.vlgmr.msra.gmra.mxu3 %vm177_vm8, %v748_v16 }
 0x55a   :  { %v595_v18 = vadd.f32 %v593_v17, %v5347_v3 }
 0x55c   :  { %v599_v19 = vsel %vm177_vm8, %v595_v18, -inf }
 0x55d   :  { %600 = vmax.xlane.f32.xlu0 %v599_v19 }
 0x5c6   :  { %v744_v22 = vpop.f32.mrf.mxu0 }
 0x5c7   :  { %v775_v23 = vmul.f32 0.35355338, %v744_v22 }
 0x5c9   :  { %v777_v24 = vadd.f32 %v775_v23, %v5340_v62 }
 0x5cb   :  { %v779_v25 = vsel %vm177_vm8, %v777_v24, -inf }
 0x5cc   :  { %780 = vmax.xlane.f32.xlu2 %v779_v25 }
 0x5d0   :  { %v601_v26 = vpop.xlane.xlu0 %600 }
 0x5d1   :  { %v603_v27 = vsub.f32 %v595_v18, %v601_v26 }
 0x5d3   :  { %v606_v28 = vmul.f32 1.442695, %v603_v27 }
 0x5d4   :  { %v5432_v29 = vpop.f32.mrf.mxu3 }
 0x5d5   :  { %4947 = vpow2.f32 %v606_v28 }
 0x5db   :  { %v4948_v30 = vpop.eup %4947 }
 0x5dc   :  { %v772_v31 = vpop.f32.mrf.mxu3  ;;  %v611_v32 = vsel %vm177_vm8, %v4948_v30, 0.0 }
 0x5dd   :  { %v776_v33 = vmul.f32 0.35355338, %v772_v31  ;;  %612 = vadd.xlane.f32.xlu0 %v611_v32 }
 0x5df   :  { %v778_v34 = vadd.f32 %v776_v33, %v5347_v3  ;;  %v173_v33 = vld [vmem:[%s6263_s6 + $0xc] sm:$0xf] }
 0x5e1   :  { %v782_v35 = vsel %vm177_vm8, %v778_v34, -inf }
 0x5e2   :  { %783 = vmax.xlane.f32.xlu1 %v782_v35 }
 0x5f1   :  { %670 = vrot.lane.b32.xlu0 %v5325_v56, %s6283_s30  ;;  %s6329_s30 = smov 96  }
 0x63f   :  { %v781_v62 = vpop.xlane.xlu2 %780 }
 0x640   :  { %v785_v36 = vsub.f32 %v777_v24, %v781_v62 }
 0x642   :  { %v787_v37 = vmul.f32 1.442695, %v785_v36  ;;  %v511_v36 = vpop.f32.mrf.mxu2 }
 0x644   :  { %4949 = vpow2.f32 %v787_v37 }
 0x64a   :  { %v4950_v38 = vpop.eup %4949  ;;  %v513_v37 = vpop.f32.mrf.mxu2 }
 0x64b   :  { %v791_v39 = vsel %vm177_vm8, %v4950_v38, 0.0 }
 0x64c   :  { %792 = vadd.xlane.f32.xlu2 %v791_v39  ;;  %v532_v39 = vadd.f32 %v5426_v20, %v511_v36  ;;  %v4808_v36 = vld [vmem:[%s6269_s12 + $0x20] sm:$0xff] }
 0x650   :  { %v613_v40 = vpop.xlane.xlu0 %612 }
 0x651   :  { %4951 = vrcp.f32 %v613_v40  ;;  %v640_v46 = vand.u32 2147483648, %v613_v40  ;;  %v638_v48 = vand.u32 2147483647, %v613_v40  ;;  %vm634_vm2 = vweird.f32 %v613_v40 }
 0x653   :  { %v641_v52 = vor.u32 1.1754944e-38, %v640_v46  ;;  %vm639_vm4 = vcmp.eq.f32.partialorder %v638_v48, 8.507059e+37 }
 0x655   :  { %v784_v41 = vpop.xlane.xlu1 %783 }
 0x656   :  { %v786_v42 = vsub.f32 %v778_v34, %v784_v41  ;;  %v884_v34 = vsel %vm498_vm6, %v173_v33, 0  ;;  %v4889_v41 = vld [vmem:[%s6264_s7] ss:$0 sm:$0xff] }
 0x657   :  { %v4952_v43 = vpop.eup %4951  ;;  %893 = vmatpush.bf16.msrb.mxu3 %v884_v34 }
 0x658   :  { %v630_v3 = vmul.f32 %v4952_v43, %v613_v40  ;;  %v789_v44 = vmul.f32 1.442695, %v786_v42  ;;  %vm635_vm1 = vweird.f32 %v4952_v43 }
 0x659   :  { %vm636_vm3 = vmor %vm634_vm2, %vm635_vm1 }
 0x65a   :  { %v631_v45 = vsub.f32 1.0, %v630_v3  ;;  %4953 = vpow2.f32 %v789_v44 }
 0x65c   :  { %v632_v47 = vmul.f32 %v4952_v43, %v631_v45  ;;  %v534_v45 = vadd.f32 %v5428_v21, %v513_v37  ;;  %v4807_v37 = vld [vmem:[%s6269_s12 + $0x18] sm:$0xff] }
 0x65e   :  { %v633_v51 = vadd.f32 %v4952_v43, %v632_v47 }
 0x660   :  { %v4954_v53 = vpop.eup %4953  ;;  %v637_v55 = vsel %vm636_vm3, %v4952_v43, %v633_v51 }
 0x661   :  { %v794_v57 = vsel %vm177_vm8, %v4954_v53, 0.0  ;;  %v642_v58 = vsel %vm639_vm4, %v641_v52, %v637_v55 }
 0x662   :  { %795 = vadd.xlane.f32.xlu1 %v794_v57  ;;  %v643_v60 = vmul.f32 %v4948_v30, %v642_v58 }
 0x663   :  { %v671_v61 = vpop.permute.xlu0 %670 }
 0x664   :  { %691 = vmatpush.msra.mxu1 %v671_v61  ;;  %4867 = vrot.lane.b32.xlu2 %v4866_v59, %s6279_s29  ;;  %s6326_s29 = smov 104  }
 0x665   :  { %4399 = vmatmul.msk.f32.vlgmr.msra.gmra.mxu1 %vm177_vm8, %v643_v60 }
 0x6bf   :  { %v793_v63 = vpop.xlane.xlu2 %792 }
 0x6c0   :  { %4955 = vrcp.f32 %v793_v63  ;;  %v808_v7 = vand.u32 2147483648, %v793_v63  ;;  %v806_v9 = vand.u32 2147483647, %v793_v63  ;;  %vm802_vm7 = vweird.f32 %v793_v63 }
 0x6c2   :  { %v809_v12 = vor.u32 1.1754944e-38, %v808_v7  ;;  %vm807_vm10 = vcmp.eq.f32.partialorder %v806_v9, 8.507059e+37 }
 0x6c6   :  { %v4956_v2 = vpop.eup %4955 }
 0x6c7   :  { %v798_v4 = vmul.f32 %v4956_v2, %v793_v63  ;;  %v4868_v54 = vpop.permute.xlu2 %4867  ;;  %vm803_vm5 = vweird.f32 %v4956_v2 }
 0x6c8   :  { %v4870_v56 = vunpack.i.h.bf16 %v4868_v54  ;;  %v4869_v5 = vunpack.i.l.bf16 %v4868_v54  ;;  %vm804_vm9 = vmor %vm802_vm7, %vm803_vm5 }
 0x6c9   :  { %v799_v6 = vsub.f32 1.0, %v798_v4 }
 0x6ca   :  { %848 = vmatpush.msrb.mxu1 %v4869_v5  ;;  %874 = vmatpush.msrb.mxu0 %v4870_v56  ;;  %v4802_v56 = vld [vmem:[%s6267_s10] sm:$0xff] }
 0x6cb   :  { %v800_v8 = vmul.f32 %v4956_v2, %v799_v6 }
 0x6cd   :  { %v801_v11 = vadd.f32 %v4956_v2, %v800_v8 }
 0x6cf   :  { %v805_v13 = vsel %vm804_vm9, %v4956_v2, %v801_v11  ;;  %v4803_v2 = vld [vmem:[%s6267_s10 + $0x8] sm:$0xff] }
 0x6d0   :  { %v810_v14 = vsel %vm807_vm10, %v809_v12, %v805_v13  ;;  %996 = vmatpush.bf16.msra.mxu1 %v4803_v2 }
 0x6d1   :  { %v811_v15 = vmul.f32 %v4950_v38, %v810_v14 }
 0x6d3   :  { %4405 = vmatmul.msk.f32.vlgmr.msrb.gmra.mxu1 %vm177_vm8, %v811_v15 }
 0x6d4   :  { %997 = vmatpush.bf16.msra.mxu1 %v4802_v56 }
 0x6d5   :  { %v796_v16 = vpop.xlane.xlu1 %795 }
 0x6d6   :  { %4957 = vrcp.f32 %v796_v16  ;;  %v823_v22 = vand.u32 2147483648, %v796_v16  ;;  %v821_v24 = vand.u32 2147483647, %v796_v16  ;;  %vm817_vm12 = vweird.f32 %v796_v16 }
 0x6d8   :  { %v824_v28 = vor.u32 1.1754944e-38, %v823_v22  ;;  %vm822_vm14 = vcmp.eq.f32.partialorder %v821_v24, 8.507059e+37 }
 0x6dc   :  { %v4958_v17 = vpop.eup %4957 }
 0x6dd   :  { %v813_v18 = vmul.f32 %v4958_v17, %v796_v16  ;;  %vm818_vm11 = vweird.f32 %v4958_v17 }
 0x6de   :  { %vm819_vm13 = vmor %vm817_vm12, %vm818_vm11 }
 0x6df   :  { %v814_v19 = vsub.f32 1.0, %v813_v18 }
 0x6e1   :  { %v815_v23 = vmul.f32 %v4958_v17, %v814_v19 }
 0x6e2   :  { %v693_v25 = vpop.f32.mrf.mxu1 }
 0x6e3   :  { %v816_v26 = vadd.f32 %v4958_v17, %v815_v23  ;;  %v696_v27 = vpack.c.bf16 %v693_v25, %v5432_v29  ;;  %v4890_v23 = vld [vmem:[%s6265_s8] ss:$0 sm:$0xff] }
 0x6e5   :  { %v820_v30 = vsel %vm819_vm13, %v4958_v17, %v816_v26  ;;  %4400 = vmatmul.msk.bf16.vlgmr.msra.gmra.mxu2 %vm177_vm8, %v696_v27 }
 0x6e6   :  { %v825_v31 = vsel %vm822_vm14, %v824_v28, %v820_v30  ;;  %v4891_v28 = vld [vmem:[%s6266_s9] ss:$0 sm:$0xff] }
 0x6e7   :  { %v826_v32 = vmul.f32 %v4954_v53, %v825_v31 }
 0x6e9   :  { %4406 = vmatmul.msk.f32.vlgmr.msrb.gmra.mxu0 %vm177_vm8, %v826_v32 }
 0x750   :  { %v850_v35 = vpop.f32.mrf.mxu1 }
 0x766   :  { %v876_v62 = vpop.f32.mrf.mxu0 }
 0x767   :  { %v879_v29 = vpack.c.bf16 %v876_v62, %v850_v35  ;;  %v4811_v35 = vld [vmem:[%s6269_s12 + $0x38] sm:$0xff]  ;;  %v4810_v62 = vld [vmem:[%s6269_s12 + $0x30] sm:$0xff] }
 0x768   :  { %v712_v38 = vpop.f32.mrf.mxu2  ;;  %1091 = vmatpush.bf16.msrb.mxu2 %v4811_v35 }
 0x769   :  { %4407 = vmatmul.msk.bf16.vlgmr.msrb.gmra.mxu3 %vm177_vm8, %v879_v29  ;;  %v717_v40 = vadd.f32 %v712_v38, %v532_v39  ;;  %v4809_v29 = vld [vmem:[%s6269_s12 + $0x28] sm:$0xff]  ;;  %v4806_v38 = vld [vmem:[%s6269_s12 + $0x10] sm:$0xff] }
 0x76a   :  { %v4805_v39 = vld [vmem:[%s6269_s12 + $0x8] sm:$0xff] }
 0x76c   :  { %1092 = vmatpush.bf16.msrb.mxu2 %v4810_v62 }
 0x770   :  { %v714_v44 = vpop.f32.mrf.mxu2  ;;  %1093 = vmatpush.bf16.msrb.mxu2 %v4809_v29 }
 0x771   :  { %v718_v47 = vadd.f32 %v714_v44, %v534_v45 }
 0x774   :  { %1094 = vmatpush.bf16.msrb.mxu2 %v4808_v36 }
 0x778   :  { %1095 = vmatpush.bf16.msrb.mxu2 %v4807_v37 }
 0x77c   :  { %1096 = vmatpush.bf16.msrb.mxu2 %v4806_v38 }
 0x780   :  { %1097 = vmatpush.bf16.msrb.mxu2 %v4805_v39 }
 0x7ec   :  { %v895_v42 = vpop.f32.mrf.mxu3 }
 0x7ed   :  { %v900_v43 = vadd.f32 %v895_v42, %v717_v40  ;;  %v4892_v40 = vld [vmem:[%s6268_s11] ss:$0 sm:$0xff] }
 0x7ef   :  { %v906_v3 = vadd.f32 %v4889_v41, %v900_v43 }
 0x7f1   :  { %v908_v46 = vadd.f32 %v906_v3, %v5307_v49 }
 0x7f3   :  { %v912_v48 = vsel %vm68_vm0, %v908_v46, 0.0 }
 0x7f4   :  { %913 = vadd.xlane.f32.xlu1 %v912_v48  ;;  %v897_v51 = vpop.f32.mrf.mxu3 }
 0x7f5   :  { %v901_v52 = vadd.f32 %v897_v51, %v718_v47 }
 0x7f7   :  { %v907_v20 = vadd.f32 %v4889_v41, %v901_v52  ;;  %v4804_v41 = vld [vmem:[%s6269_s12] sm:$0xff] }
 0x7f8   :  { %1098 = vmatpush.bf16.msrb.mxu2 %v4804_v41  ;;  %v4894_v41 = vld [vmem:[%s6271_s14] ss:$0 sm:$0xff] }
 0x7f9   :  { %v909_v53 = vadd.f32 %v907_v20, %v5309_v50 }
 0x7fb   :  { %v915_v55 = vsel %vm68_vm0, %v909_v53, 0.0 }
 0x7fc   :  { %916 = vadd.xlane.f32.xlu1 %v915_v55 }
 0x867   :  { %v914_v57 = vpop.xlane.xlu1 %913 }
 0x868   :  { %v918_v58 = vmul.f32 %v914_v57, %v5287_v10 }
 0x86a   :  { %v920_v59 = vsub.f32 %v908_v46, %v918_v58 }
 0x86c   :  { %v922_v60 = vmul.f32 %v920_v59, %v920_v59 }
 0x86e   :  { %v924_v21 = vsel %vm68_vm0, %v922_v60, 0.0 }
 0x86f   :  { %925 = vadd.xlane.f32.xlu0 %v924_v21  ;;  %v917_v49 = vpop.xlane.xlu1 %916 }
 0x870   :  { %v919_v61 = vmul.f32 %v917_v49, %v5287_v10 }
 0x872   :  { %v921_v63 = vsub.f32 %v909_v53, %v919_v61 }
 0x874   :  { %v923_v0 = vmul.f32 %v921_v63, %v921_v63 }
 0x876   :  { %v927_v1 = vsel %vm68_vm0, %v923_v0, 0.0 }
 0x877   :  { %928 = vadd.xlane.f32.xlu1 %v927_v1 }
 0x8e2   :  { %v926_v50 = vpop.xlane.xlu0 %925 }
 0x8e3   :  { %v930_v4 = vmul.f32 %v926_v50, %v5287_v10  ;;  %v4893_v50 = vld [vmem:[%s6270_s13] ss:$0 sm:$0xff] }
 0x8e5   :  { %v932_v54 = vadd.f32 1e-12, %v930_v4 }
 0x8e7   :  { %4959 = vrsqrt.f32 %v932_v54  ;;  %vm940_vm1 = vweird.f32 %v932_v54 }
 0x8ea   :  { %v929_v5 = vpop.xlane.xlu1 %928 }
 0x8eb   :  { %v931_v6 = vmul.f32 %v929_v5, %v5287_v10 }
 0x8ed   :  { %v4960_v7 = vpop.eup %4959  ;;  %v933_v8 = vadd.f32 1e-12, %v931_v6 }
 0x8ee   :  { %v935_v9 = vmul.f32 %v4960_v7, %v932_v54  ;;  %vm941_vm15 = vweird.f32 %v4960_v7 }
 0x8ef   :  { %4961 = vrsqrt.f32 %v933_v8  ;;  %vm942_vm2 = vmor %vm940_vm1, %vm941_vm15  ;;  %vm950_vm4 = vweird.f32 %v933_v8 }
 0x8f0   :  { %v936_v11 = vmul.f32 %v4960_v7, %v935_v9 }
 0x8f2   :  { %v937_v12 = vmul.f32 0.5, %v936_v11 }
 0x8f4   :  { %v938_v13 = vsub.f32 1.5, %v937_v12 }
 0x8f5   :  { %v4962_v14 = vpop.eup %4961 }
 0x8f6   :  { %v939_v15 = vmul.f32 %v4960_v7, %v938_v13  ;;  %v945_v16 = vmul.f32 %v4962_v14, %v933_v8  ;;  %vm951_vm3 = vweird.f32 %v4962_v14 }
 0x8f7   :  { %vm952_vm5 = vmor %vm950_vm4, %vm951_vm3 }
 0x8f8   :  { %v946_v17 = vmul.f32 %v4962_v14, %v945_v16  ;;  %v943_v18 = vsel %vm942_vm2, %v4960_v7, %v939_v15 }
 0x8f9   :  { %v954_v24 = vmul.f32 %v943_v18, %v920_v59 }
 0x8fa   :  { %v947_v19 = vmul.f32 0.5, %v946_v17 }
 0x8fb   :  { %v959_v27 = vmul.f32 %v4890_v23, %v954_v24 }
 0x8fc   :  { %v948_v22 = vsub.f32 1.5, %v947_v19 }
 0x8fd   :  { %v964_v33 = vadd.f32 %v4891_v28, %v959_v27 }
 0x8fe   :  { %v949_v25 = vmul.f32 %v4962_v14, %v948_v22 }
 0x900   :  { %v953_v26 = vsel %vm952_vm5, %v4962_v14, %v949_v25 }
 0x901   :  { %v955_v30 = vmul.f32 %v953_v26, %v921_v63  ;;  %v4812_v26 = vld [vmem:[%s6261_s4 + $0x10] sm:$0xff] }
 0x903   :  { %v960_v31 = vmul.f32 %v4890_v23, %v955_v30  ;;  %v4813_v23 = vld [vmem:[%s6261_s4 + $0x18] sm:$0xff] }
 0x904   :  { %1195 = vmatpush.bf16.msra.mxu0 %v4813_v23 }
 0x905   :  { %v965_v32 = vadd.f32 %v4891_v28, %v960_v31 }
 0x907   :  { %v966_v34 = vpack.c.bf16 %v965_v32, %v964_v33 }
 0x908   :  { %1196 = vmatpush.bf16.msra.mxu0 %v4812_v26 }
 0x909   :  { %4416 = vmatmul.msk.bf16.vlgmr.msra.gmra.mxu1 %vm68_vm0, %v966_v34 }
 0x986   :  { %v999_v42 = vpop.f32.mrf.mxu1 }
 0x987   :  { %v1000_v43 = vadd.f32 %v4892_v40, %v999_v42 }
 0x989   :  { %v1006_v3 = vmul.f32 0.044715, %v1000_v43  ;;  %v1004_v21 = vmul.f32 0.5, %v1000_v43 }
 0x98b   :  { %v1008_v44 = vmul.f32 %v1006_v3, %v1000_v43 }
 0x98d   :  { %v1010_v45 = vmul.f32 %v1008_v44, %v1000_v43  ;;  %v4895_v44 = vld [vmem:[%s6272_s15] ss:$0 sm:$0xff] }
 0x98e   :  { %v1001_v46 = vpop.f32.mrf.mxu1 }
 0x98f   :  { %v1012_v47 = vadd.f32 %v1010_v45, %v1000_v43  ;;  %v1002_v48 = vadd.f32 %v4892_v40, %v1001_v46 }
 0x991   :  { %v1007_v51 = vmul.f32 0.044715, %v1002_v48  ;;  %v1014_v52 = vmul.f32 0.7978846, %v1012_v47  ;;  %v1005_v49 = vmul.f32 0.5, %v1002_v48 }
 0x993   :  { %v1009_v20 = vmul.f32 %v1007_v51, %v1002_v48  ;;  %4963 = vtanh.f32 %v1014_v52 }
 0x995   :  { %v1011_v53 = vmul.f32 %v1009_v20, %v1002_v48  ;;  %v4896_v20 = vld [vmem:[%s6262_s5 + $0x1] ss:$0 sm:$0xff] }
 0x997   :  { %v1013_v55 = vadd.f32 %v1011_v53, %v1002_v48 }
 0x999   :  { %v1015_v57 = vmul.f32 0.7978846, %v1013_v55  ;;  %v4964_v58 = vpop.eup %4963 }
 0x99a   :  { %v1018_v59 = vadd.f32 1.0, %v4964_v58 }
 0x99b   :  { %4965 = vtanh.f32 %v1015_v57 }
 0x99c   :  { %v1020_v63 = vmul.f32 %v1018_v59, %v1004_v21 }
 0x9a1   :  { %v4966_v60 = vpop.eup %4965 }
 0x9a2   :  { %v1019_v61 = vadd.f32 1.0, %v4966_v60 }
 0x9a4   :  { %v1021_v0 = vmul.f32 %v1019_v61, %v1005_v49 }
 0x9a6   :  { %v1022_v1 = vpack.c.bf16 %v1021_v0, %v1020_v63 }
 0x9a8   :  { %1099 = vmatmul.bf16.vlgmr.msrb.gmra.mxu2 %v1022_v1 }
 0xa2b   :  { %v1100_v2 = vpop.f32.mrf.mxu2 }
 0xa2c   :  { %v1101_v4 = vadd.f32 %v4893_v50, %v1100_v2  ;;  %v5571_v2 = vld [vmem:[%s6320_s23] sm:$0xff] }
 0xa2e   :  { %v1105_v54 = vadd.f32 %v1101_v4, %v964_v33 }
 0xa30   :  { %v1109_v56 = vsel %vm68_vm0, %v1105_v54, 0.0 }
 0xa31   :  { %1110 = vadd.xlane.f32.xlu2 %v1109_v56  ;;  %v5578_v56 = vld [vmem:[%s6320_s23 + $0x8] sm:$0xff] }
 0xa33   :  { %v1102_v5 = vpop.f32.mrf.mxu2 }
 0xa34   :  { %v1103_v6 = vadd.f32 %v4893_v50, %v1102_v5 }
 0xa36   :  { %v1106_v7 = vadd.f32 %v1103_v6, %v965_v32 }
 0xa38   :  { %v1112_v8 = vsel %vm68_vm0, %v1106_v7, 0.0 }
 0xa39   :  { %1113 = vadd.xlane.f32.xlu1 %v1112_v8 }
 0xaa4   :  { %v1111_v9 = vpop.xlane.xlu2 %1110 }
 0xaa5   :  { %v1115_v11 = vmul.f32 %v1111_v9, %v5287_v10 }
 0xaa7   :  { %v1117_v12 = vsub.f32 %v1105_v54, %v1115_v11 }
 0xaa9   :  { %v1119_v13 = vmul.f32 %v1117_v12, %v1117_v12 }
 0xaab   :  { %v1121_v14 = vsel %vm68_vm0, %v1119_v13, 0.0 }
 0xaac   :  { %v1114_v15 = vpop.xlane.xlu1 %1113  ;;  %1122 = vadd.xlane.f32.xlu1 %v1121_v14 }
 0xaad   :  { %v1116_v16 = vmul.f32 %v1114_v15, %v5287_v10 }
 0xaaf   :  { %v1118_v17 = vsub.f32 %v1106_v7, %v1116_v16 }
 0xab1   :  { %v1120_v18 = vmul.f32 %v1118_v17, %v1118_v17 }
 0xab3   :  { %v1124_v19 = vsel %vm68_vm0, %v1120_v18, 0.0 }
 0xab4   :  { %1125 = vadd.xlane.f32.xlu1 %v1124_v19 }
 0xb1f   :  { %v1123_v22 = vpop.xlane.xlu1 %1122 }
 0xb20   :  { %v1127_v24 = vmul.f32 %v1123_v22, %v5287_v10 }
 0xb22   :  { %v1129_v25 = vadd.f32 1e-12, %v1127_v24 }
 0xb24   :  { %4967 = vrsqrt.f32 %v1129_v25  ;;  %vm1137_vm9 = vweird.f32 %v1129_v25 }
 0xb27   :  { %v1126_v27 = vpop.xlane.xlu1 %1125 }
 0xb28   :  { %v1128_v28 = vmul.f32 %v1126_v27, %v5287_v10 }
 0xb2a   :  { %v4968_v30 = vpop.eup %4967  ;;  %v1130_v31 = vadd.f32 1e-12, %v1128_v28 }
 0xb2b   :  { %v1132_v32 = vmul.f32 %v4968_v30, %v1129_v25  ;;  %vm1138_vm7 = vweird.f32 %v4968_v30 }
 0xb2c   :  { %4969 = vrsqrt.f32 %v1130_v31  ;;  %vm1139_vm10 = vmor %vm1137_vm9, %vm1138_vm7  ;;  %vm1147_vm12 = vweird.f32 %v1130_v31 }
 0xb2d   :  { %v1133_v33 = vmul.f32 %v4968_v30, %v1132_v32 }
 0xb2f   :  { %v1134_v34 = vmul.f32 0.5, %v1133_v33 }
 0xb31   :  { %v1135_v35 = vsub.f32 1.5, %v1134_v34 }
 0xb32   :  { %v4970_v62 = vpop.eup %4969 }
 0xb33   :  { %v1136_v29 = vmul.f32 %v4968_v30, %v1135_v35  ;;  %v1142_v36 = vmul.f32 %v4970_v62, %v1130_v31  ;;  %vm1148_vm11 = vweird.f32 %v4970_v62 }
 0xb34   :  { %vm1149_vm13 = vmor %vm1147_vm12, %vm1148_vm11 }
 0xb35   :  { %v1143_v37 = vmul.f32 %v4970_v62, %v1142_v36  ;;  %v1140_v38 = vsel %vm1139_vm10, %v4968_v30, %v1136_v29 }
 0xb36   :  { %v1151_v42 = vmul.f32 %v1140_v38, %v1117_v12 }
 0xb37   :  { %v1144_v39 = vmul.f32 0.5, %v1143_v37 }
 0xb38   :  { %v1156_v45 = vmul.f32 %v4894_v41, %v1151_v42 }
 0xb39   :  { %v1145_v40 = vsub.f32 1.5, %v1144_v39 }
 0xb3a   :  { %v5536_v48 = vadd.f32 %v4895_v44, %v1156_v45 }
 0xb3b   :  { %v1146_v43 = vmul.f32 %v4970_v62, %v1145_v40 }
 0xb3d   :  { %v1150_v3 = vsel %vm1149_vm13, %v4970_v62, %v1146_v43 }
 0xb3e   :  { %v1152_v46 = vmul.f32 %v1150_v3, %v1118_v17 }
 0xb40   :  { %v1157_v47 = vmul.f32 %v4894_v41, %v1152_v46 }
 0xb42   :  { %v5538_v51 = vadd.f32 %v4895_v44, %v1157_v47 }
 0xb44   :  { %v1163_v52 = vpack.c.bf16 %v5538_v51, %v5536_v48 }
 0xb46   :  { %4462 = vmatmul.msk.bf16.vlgmr.msra.gmra.mxu0 %vm68_vm0, %v1163_v52 }
 0xbc3   :  { %v1198_v53 = vpop.f32.mrf.mxu0 }
 0xbc4   :  { %v5546_v55 = vadd.f32 %v4896_v20, %v1198_v53 }
 0xbc6   :  { %1369 = vrot.lane.b32.xlu2 %v5546_v55, %s6299_s21  ;;  %1209 = vrot.lane.b32.xlu0 %v5546_v55, %s6297_s1 }
 0xbcb   :  { %v1200_v57 = vpop.f32.mrf.mxu0 }
 0xbcc   :  { %v5552_v58 = vadd.f32 %v4896_v20, %v1200_v57 }
 0xbce   :  { %1236 = vrot.lane.b32.xlu1 %v5552_v58, %s6297_s1  ;;  %1340 = vrot.lane.b32.xlu0 %v5552_v58, %s6293_s3  ;;  %s6330_s1 = smov 120  }
 0xbd6   :  { %1367 = vrot.lane.b32.xlu1 %v5546_v55, %s6295_s20 }
 0xc20   :  { %v1370_v49 = vpop.permute.xlu2 %1369 }
 0xc38   :  { %v1210_v59 = vpop.permute.xlu0 %1209 }
 0xc39   :  { %4467 = vmatpush.xpose.msk.msra.mxu3 %vm177_vm8, %v1210_v59 }
 0xc3c   :  { %4468 = vmatmul.msk.f32.vlgmr.msra.gmra.mxu3 %vm177_vm8, %v5546_v55 }
 0xc40   :  { %v1237_v60 = vpop.permute.xlu1 %1236  ;;  %v1341_v21 = vpop.permute.xlu0 %1340 }
 0xc41   :  { %4469 = vmatpush.xpose.msk.msrb.mxu1 %vm177_vm8, %v1237_v60  ;;  %1361 = vmatpush.msrb.mxu3 %v1341_v21 }
 0xc44   :  { %4470 = vmatmul.msk.f32.vlgmr.msrb.gmra.mxu1 %vm177_vm8, %v5552_v58 }
 0xc45   :  { %4473 = vmatpush.xpose.msk.msra.mxu1 %vm177_vm8, %v1370_v49 }
 0xc48   :  { %v1368_v61 = vpop.permute.xlu1 %1367 }
 0xc4c   :  { %4474 = vmatmul.msk.f32.vlgmr.msra.gmra.mxu1 %vm177_vm8, %v1368_v61 }
 0xcbf   :  { %v1232_v63 = vpop.f32.mrf.mxu3 }
 0xcc0   :  { %v1262_v0 = vmul.f32 0.35355338, %v1232_v63 }
 0xcc1   :  { %v1259_v1 = vpop.f32.mrf.mxu1 }
 0xcc2   :  { %v1263_v50 = vmul.f32 0.35355338, %v1259_v1  ;;  %v1264_v4 = vadd.f32 %v5571_v2, %v1262_v0 }
 0xcc4   :  { %v1266_v54 = vsel %vm177_vm8, %v1264_v4, -inf  ;;  %v1265_v5 = vadd.f32 %v5578_v56, %v1263_v50 }
 0xcc5   :  { %1267 = vmax.xlane.f32.xlu2 %v1266_v54 }
 0xcc6   :  { %v1269_v6 = vsel %vm177_vm8, %v1265_v5, -inf }
 0xcc7   :  { %1270 = vmax.xlane.f32.xlu0 %v1269_v6 }
 0xcc9   :  { %v1392_v7 = vpop.f32.mrf.mxu1 }
 0xcca   :  { %v1423_v8 = vmul.f32 0.35355338, %v1392_v7 }
 0xccc   :  { %v1425_v9 = vadd.f32 %v5571_v2, %v1423_v8 }
 0xcce   :  { %v1427_v11 = vsel %vm177_vm8, %v1425_v9, -inf }
 0xccf   :  { %1428 = vmax.xlane.f32.xlu1 %v1427_v11 }
 0xcdb   :  { %1570 = vrot.lane.b32.xlu0 %v5546_v55, %s6321_s2 }
 0xcdd   :  { %1314 = vrot.lane.b32.xlu2 %v5546_v55, %s6293_s3 }
 0xce8   :  { %1475 = vrot.lane.b32.xlu1 %v5546_v55, %s6322_s0 }
 0xd38   :  { %v1268_v12 = vpop.xlane.xlu2 %1267 }
 0xd39   :  { %v1272_v13 = vsub.f32 %v1264_v4, %v1268_v12 }
 0xd3a   :  { %v1271_v14 = vpop.xlane.xlu0 %1270 }
 0xd3b   :  { %v1274_v15 = vmul.f32 1.442695, %v1272_v13  ;;  %v1273_v16 = vsub.f32 %v1265_v5, %v1271_v14  ;;  %v4463_v13 = vld [vmem:[%s6263_s6 + $0x10] sm:$0xf] }
 0xd3c   :  { %v1552_v14 = vsel %vm498_vm6, %v4463_v13, 0 }
 0xd3d   :  { %4971 = vpow2.f32 %v1274_v15  ;;  %v1276_v17 = vmul.f32 1.442695, %v1273_v16 }
 0xd3f   :  { %4973 = vpow2.f32 %v1276_v17 }
 0xd40   :  { %v1315_v18 = vpop.permute.xlu2 %1314 }
 0xd41   :  { %1335 = vmatpush.msrb.mxu0 %v1315_v18 }
 0xd42   :  { %v1429_v19 = vpop.xlane.xlu1 %1428 }
 0xd43   :  { %v4972_v22 = vpop.eup %4971  ;;  %v1433_v23 = vsub.f32 %v1425_v9, %v1429_v19 }
 0xd44   :  { %v1278_v24 = vsel %vm177_vm8, %v4972_v22, 0.0 }
 0xd45   :  { %v4974_v25 = vpop.eup %4973  ;;  %v1435_v26 = vmul.f32 1.442695, %v1433_v23  ;;  %1279 = vadd.xlane.f32.xlu2 %v1278_v24 }
 0xd46   :  { %v1281_v27 = vsel %vm177_vm8, %v4974_v25, 0.0 }
 0xd47   :  { %4975 = vpow2.f32 %v1435_v26  ;;  %1282 = vadd.xlane.f32.xlu0 %v1281_v27 }
 0xd4d   :  { %v5592_v28 = vpop.eup %4975  ;;  %v1571_v32 = vpop.permute.xlu0 %1570 }
 0xd4e   :  { %v1439_v30 = vsel %vm177_vm8, %v5592_v28, 0.0 }
 0xd4f   :  { %1440 = vadd.xlane.f32.xlu1 %v1439_v30 }
 0xd5a   :  { %v1476_v31 = vpop.permute.xlu1 %1475 }
 0xd5b   :  { %1496 = vmatpush.msra.mxu3 %v1476_v31  ;;  %1568 = vrot.lane.b32.xlu0 %v5546_v55, %s6323_s27 }
 0xd5d   :  { %1395 = vrot.lane.b32.xlu2 %v5552_v58, %s6295_s20  ;;  %s6328_s20 = smov 88  }
 0xd65   :  { %1501 = vrot.lane.b32.xlu2 %v5552_v58, %s6322_s0 }
 0xd68   :  { %1397 = vrot.lane.b32.xlu1 %v5552_v58, %s6299_s21  ;;  %s6331_s21 = smov 64  }
 0xd6d   :  { %1781 = vrot.lane.b32.xlu2 %v5552_v58, %s6324_s24 }
 0xdb8   :  { %v1280_v33 = vpop.xlane.xlu2 %1279 }
 0xdb9   :  { %4977 = vrcp.f32 %v1280_v33  ;;  %v1295_v40 = vand.u32 2147483648, %v1280_v33  ;;  %v1293_v42 = vand.u32 2147483647, %v1280_v33  ;;  %vm1289_vm15 = vweird.f32 %v1280_v33 }
 0xdba   :  { %v1283_v34 = vpop.xlane.xlu0 %1282 }
 0xdbb   :  { %4979 = vrcp.f32 %v1283_v34  ;;  %v1310_v3 = vand.u32 2147483648, %v1283_v34  ;;  %v1308_v46 = vand.u32 2147483647, %v1283_v34  ;;  %v1296_v47 = vor.u32 1.1754944e-38, %v1295_v40 }
 0xdbc   :  { %vm1294_vm3 = vcmp.eq.f32.partialorder %v1293_v42, 8.507059e+37  ;;  %vm1304_vm4 = vweird.f32 %v1283_v34 }
 0xdbd   :  { %v1311_v60 = vor.u32 1.1754944e-38, %v1310_v3  ;;  %vm1309_vm7 = vcmp.eq.f32.partialorder %v1308_v46, 8.507059e+37 }
 0xdbf   :  { %v4978_v35 = vpop.eup %4977 }
 0xdc0   :  { %v1285_v62 = vmul.f32 %v4978_v35, %v1280_v33  ;;  %v1396_v29 = vpop.permute.xlu2 %1395  ;;  %vm1290_vm14 = vweird.f32 %v4978_v35 }
 0xdc1   :  { %v4980_v36 = vpop.eup %4979  ;;  %vm1291_vm2 = vmor %vm1289_vm15, %vm1290_vm14 }
 0xdc2   :  { %v1286_v37 = vsub.f32 1.0, %v1285_v62  ;;  %v1300_v38 = vmul.f32 %v4980_v36, %v1283_v34  ;;  %v1441_v39 = vpop.xlane.xlu1 %1440  ;;  %vm1305_vm1 = vweird.f32 %v4980_v36 }
 0xdc3   :  { %4981 = vrcp.f32 %v1441_v39  ;;  %vm1306_vm5 = vmor %vm1304_vm4, %vm1305_vm1  ;;  %v1456_v50 = vand.u32 2147483648, %v1441_v39  ;;  %v1454_v54 = vand.u32 2147483647, %v1441_v39  ;;  %vm1450_vm10 = vweird.f32 %v1441_v39 }
 0xdc4   :  { %v1287_v41 = vmul.f32 %v4978_v35, %v1286_v37  ;;  %v1301_v43 = vsub.f32 1.0, %v1300_v38 }
 0xdc5   :  { %v1457_v6 = vor.u32 1.1754944e-38, %v1456_v50  ;;  %vm1455_vm12 = vcmp.eq.f32.partialorder %v1454_v54, 8.507059e+37 }
 0xdc6   :  { %v1288_v44 = vadd.f32 %v4978_v35, %v1287_v41  ;;  %v1302_v45 = vmul.f32 %v4980_v36, %v1301_v43 }
 0xdc8   :  { %v1292_v52 = vsel %vm1291_vm2, %v4978_v35, %v1288_v44  ;;  %v1303_v20 = vadd.f32 %v4980_v36, %v1302_v45  ;;  %v1502_v53 = vpop.permute.xlu2 %1501 }
 0xdc9   :  { %v4982_v57 = vpop.eup %4981  ;;  %v1297_v59 = vsel %vm1294_vm3, %v1296_v47, %v1292_v52  ;;  %1522 = vmatpush.msrb.mxu1 %v1502_v53 }
 0xdca   :  { %v1307_v21 = vsel %vm1306_vm5, %v4980_v36, %v1303_v20  ;;  %v1446_v49 = vmul.f32 %v4982_v57, %v1441_v39  ;;  %v1298_v61 = vmul.f32 %v4972_v22, %v1297_v59  ;;  %vm1451_vm9 = vweird.f32 %v4982_v57 }
 0xdcb   :  { %v1312_v63 = vsel %vm1309_vm7, %v1311_v60, %v1307_v21  ;;  %vm1452_vm11 = vmor %vm1450_vm10, %vm1451_vm9 }
 0xdcc   :  { %v1447_v0 = vsub.f32 1.0, %v1446_v49  ;;  %4471 = vmatmul.msk.f32.vlgmr.msrb.gmra.mxu0 %vm177_vm8, %v1298_v61  ;;  %v1313_v1 = vmul.f32 %v4974_v25, %v1312_v63 }
 0xdcd   :  { %v1569_v12 = vpop.permute.xlu0 %1568 }
 0xdce   :  { %v1448_v4 = vmul.f32 %v4982_v57, %v1447_v0  ;;  %4472 = vmatmul.msk.f32.vlgmr.msrb.gmra.mxu3 %vm177_vm8, %v1313_v1 }
 0xdcf   :  { %4481 = vmatpush.xpose.msk.msrb.mxu3 %vm177_vm8, %v1571_v32 }
 0xdd0   :  { %v1449_v5 = vadd.f32 %v4982_v57, %v1448_v4  ;;  %v1782_v40 = vpop.permute.xlu2 %1781 }
 0xdd2   :  { %v1453_v7 = vsel %vm1452_vm11, %v4982_v57, %v1449_v5 }
 0xdd3   :  { %v1458_v8 = vsel %vm1455_vm12, %v1457_v6, %v1453_v7 }
 0xdd4   :  { %v1459_v9 = vmul.f32 %v5592_v28, %v1458_v8 }
 0xdd6   :  { %4477 = vmatmul.msk.f32.vlgmr.msra.gmra.mxu3 %vm177_vm8, %v1459_v9 }
 0xdda   :  { %v1398_v11 = vpop.permute.xlu1 %1397 }
 0xddb   :  { %4475 = vmatpush.xpose.msk.msra.mxu0 %vm177_vm8, %v1398_v11  ;;  %v4464_v11 = vld [vmem:[%s6263_s6 + $0x14] sm:$0xf] }
 0xdde   :  { %4476 = vmatmul.msk.f32.vlgmr.msra.gmra.mxu0 %vm177_vm8, %v1396_v29  ;;  %4482 = vmatmul.msk.f32.vlgmr.msrb.gmra.mxu3 %vm177_vm8, %v1569_v12  ;;  %v1532_v12 = vsel %vm498_vm6, %v4464_v11, 0 }
 0xddf   :  { %1561 = vmatpush.bf16.msrb.mxu0 %v1552_v14  ;;  %1541 = vmatpush.bf16.msra.mxu2 %v1532_v12 }
 0xe49   :  { %v1337_v15 = vpop.f32.mrf.mxu0 }
 0xe51   :  { %v1363_v16 = vpop.f32.mrf.mxu3 }
 0xe52   :  { %v1366_v17 = vpack.c.bf16 %v1363_v16, %v1337_v15 }
 0xe54   :  { %4480 = vmatmul.msk.bf16.vlgmr.msrb.gmra.mxu0 %vm177_vm8, %v1366_v17 }
 0xe59   :  { %v5619_v18 = vpop.f32.mrf.mxu3 }
 0xe5b   :  { %v1420_v19 = vpop.f32.mrf.mxu0 }
 0xe5c   :  { %v1424_v22 = vmul.f32 0.35355338, %v1420_v19 }
 0xe5e   :  { %v1426_v23 = vadd.f32 %v5578_v56, %v1424_v22 }
 0xe60   :  { %v1430_v24 = vsel %vm177_vm8, %v1426_v23, -inf }
 0xe61   :  { %1431 = vmax.xlane.f32.xlu0 %v1430_v24  ;;  %v1593_v25 = vpop.f32.mrf.mxu3 }
 0xe62   :  { %v1624_v26 = vmul.f32 0.35355338, %v1593_v25 }
 0xe64   :  { %v1626_v27 = vadd.f32 %v5571_v2, %v1624_v26 }
 0xe66   :  { %v1628_v28 = vsel %vm177_vm8, %v1626_v27, -inf }
 0xe67   :  { %1629 = vmax.xlane.f32.xlu1 %v1628_v28 }
 0xe75   :  { %1598 = vrot.lane.b32.xlu0 %v5552_v58, %s6321_s2 }
 0xe7d   :  { %1596 = vrot.lane.b32.xlu0 %v5552_v58, %s6323_s27 }
 0xe80   :  { %1676 = vrot.lane.b32.xlu1 %v5546_v55, %s6325_s22 }
 0xe88   :  { %1779 = vrot.lane.b32.xlu1 %v5552_v58, %s6326_s29 }
 0xed1   :  { %v5651_v13 = vpop.f32.mrf.mxu0 }
 0xed4   :  { %v1432_v30 = vpop.xlane.xlu0 %1431 }
 0xed5   :  { %v1434_v31 = vsub.f32 %v1426_v23, %v1432_v30 }
 0xed7   :  { %v1437_v32 = vmul.f32 1.442695, %v1434_v31 }
 0xed9   :  { %4983 = vpow2.f32 %v1437_v32  ;;  %v5653_v14 = vpop.f32.mrf.mxu0 }
 0xeda   :  { %v1630_v33 = vpop.xlane.xlu1 %1629 }
 0xedb   :  { %v1634_v34 = vsub.f32 %v1626_v27, %v1630_v33 }
 0xedd   :  { %v1636_v35 = vmul.f32 1.442695, %v1634_v34 }
 0xedf   :  { %v4984_v62 = vpop.eup %4983  ;;  %4985 = vpow2.f32 %v1636_v35 }
 0xee0   :  { %v1442_v29 = vsel %vm177_vm8, %v4984_v62, 0.0 }
 0xee1   :  { %1443 = vadd.xlane.f32.xlu2 %v1442_v29 }
 0xee5   :  { %v4986_v36 = vpop.eup %4985 }
 0xee6   :  { %v1640_v37 = vsel %vm177_vm8, %v4986_v36, 0.0 }
 0xee7   :  { %1641 = vadd.xlane.f32.xlu0 %v1640_v37  ;;  %v1599_v38 = vpop.permute.xlu0 %1598 }
 0xee8   :  { %4483 = vmatpush.xpose.msk.msra.mxu1 %vm177_vm8, %v1599_v38 }
 0xeef   :  { %v1597_v41 = vpop.permute.xlu0 %1596 }
 0xef2   :  { %v1677_v39 = vpop.permute.xlu1 %1676 }
 0xef3   :  { %1697 = vmatpush.msra.mxu3 %v1677_v39 }
 0xef5   :  { %4490 = vmatpush.xpose.msk.msrb.mxu3 %vm177_vm8, %v1782_v40 }
 0xef9   :  { %1753 = vrot.lane.b32.xlu2 %v5546_v55, %s6324_s24 }
 0xefa   :  { %v1780_v9 = vpop.permute.xlu1 %1779 }
 0xefb   :  { %1751 = vrot.lane.b32.xlu0 %v5546_v55, %s6326_s29 }
 0xf54   :  { %v1444_v42 = vpop.xlane.xlu2 %1443 }
 0xf55   :  { %4987 = vrcp.f32 %v1444_v42  ;;  %v1471_v47 = vand.u32 2147483648, %v1444_v42  ;;  %v1469_v20 = vand.u32 2147483647, %v1444_v42  ;;  %vm1465_vm14 = vweird.f32 %v1444_v42 }
 0xf57   :  { %v1472_v60 = vor.u32 1.1754944e-38, %v1471_v47  ;;  %vm1470_vm1 = vcmp.eq.f32.partialorder %v1469_v20, 8.507059e+37 }
 0xf5a   :  { %v1642_v43 = vpop.xlane.xlu0 %1641 }
 0xf5b   :  { %v4988_v3 = vpop.eup %4987  ;;  %4989 = vrcp.f32 %v1642_v43  ;;  %v1657_v63 = vand.u32 2147483648, %v1642_v43  ;;  %v1655_v1 = vand.u32 2147483647, %v1642_v43  ;;  %vm1651_vm3 = vweird.f32 %v1642_v43 }
 0xf5c   :  { %v1461_v44 = vmul.f32 %v4988_v3, %v1444_v42  ;;  %v1754_v45 = vpop.permute.xlu2 %1753  ;;  %vm1466_vm13 = vweird.f32 %v4988_v3 }
 0xf5d   :  { %4488 = vmatpush.xpose.msk.msra.mxu0 %vm177_vm8, %v1754_v45  ;;  %vm1467_vm15 = vmor %vm1465_vm14, %vm1466_vm13  ;;  %v1658_v54 = vor.u32 1.1754944e-38, %v1657_v63  ;;  %vm1656_vm5 = vcmp.eq.f32.partialorder %v1655_v1, 8.507059e+37 }
 0xf5e   :  { %v1462_v46 = vsub.f32 1.0, %v1461_v44 }
 0xf60   :  { %v1463_v52 = vmul.f32 %v4988_v3, %v1462_v46 }
 0xf61   :  { %v4990_v53 = vpop.eup %4989 }
 0xf62   :  { %v1464_v57 = vadd.f32 %v4988_v3, %v1463_v52  ;;  %v1647_v59 = vmul.f32 %v4990_v53, %v1642_v43  ;;  %vm1652_vm2 = vweird.f32 %v4990_v53 }
 0xf63   :  { %vm1653_vm4 = vmor %vm1651_vm3, %vm1652_vm2 }
 0xf64   :  { %v1468_v21 = vsel %vm1467_vm15, %v4988_v3, %v1464_v57  ;;  %v1648_v49 = vsub.f32 1.0, %v1647_v59  ;;  %v4871_v3 = vpack.i.bf16 %v5552_v58, %v5546_v55 }
 0xf65   :  { %v1473_v61 = vsel %vm1470_vm1, %v1472_v60, %v1468_v21 }
 0xf66   :  { %v1649_v0 = vmul.f32 %v4990_v53, %v1648_v49  ;;  %v1474_v50 = vmul.f32 %v4984_v62, %v1473_v61 }
 0xf68   :  { %v1650_v4 = vadd.f32 %v4990_v53, %v1649_v0  ;;  %4478 = vmatmul.msk.f32.vlgmr.msrb.gmra.mxu1 %vm177_vm8, %v1474_v50 }
 0xf6a   :  { %v1654_v5 = vsel %vm1653_vm4, %v4990_v53, %v1650_v4 }
 0xf6b   :  { %v1659_v6 = vsel %vm1656_vm5, %v1658_v54, %v1654_v5 }
 0xf6c   :  { %v1660_v7 = vmul.f32 %v4986_v36, %v1659_v6 }
 0xf6d   :  { %v1752_v8 = vpop.permute.xlu0 %1751 }
 0xf6e   :  { %4485 = vmatmul.msk.f32.vlgmr.msra.gmra.mxu3 %vm177_vm8, %v1660_v7  ;;  %4489 = vmatmul.msk.f32.vlgmr.msra.gmra.mxu0 %vm177_vm8, %v1752_v8 }
 0xf70   :  { %4484 = vmatmul.msk.f32.vlgmr.msra.gmra.mxu1 %vm177_vm8, %v1597_v41 }
 0xf76   :  { %4491 = vmatmul.msk.f32.vlgmr.msrb.gmra.mxu3 %vm177_vm8, %v1780_v9 }
 0xfe5   :  { %v1524_v15 = vpop.f32.mrf.mxu1 }
 0xfe6   :  { %v1527_v16 = vpack.c.bf16 %v1524_v15, %v5619_v18 }
 0xfe8   :  { %4479 = vmatmul.msk.bf16.vlgmr.msra.gmra.mxu2 %vm177_vm8, %v1527_v16 }
 0xfeb   :  { %v1776_v17 = vpop.f32.mrf.mxu0 }
 0xfec   :  { %v1807_v19 = vmul.f32 0.35355338, %v1776_v17 }
 0xfed   :  { %v1621_v22 = vpop.f32.mrf.mxu1 }
 0xfee   :  { %v1625_v23 = vmul.f32 0.35355338, %v1621_v22  ;;  %v1809_v24 = vadd.f32 %v5571_v2, %v1807_v19 }
 0xff0   :  { %v1811_v25 = vsel %vm177_vm8, %v1809_v24, -inf  ;;  %v1627_v26 = vadd.f32 %v5578_v56, %v1625_v23 }
 0xff1   :  { %v5660_v27 = vpop.f32.mrf.mxu3  ;;  %1812 = vmax.xlane.f32.xlu2 %v1811_v25 }
 0xff2   :  { %v1631_v28 = vsel %vm177_vm8, %v1627_v26, -inf }
 0xff3   :  { %1632 = vmax.xlane.f32.xlu1 %v1631_v28 }
 0xff9   :  { %v1804_v30 = vpop.f32.mrf.mxu3 }
 0xffa   :  { %v1808_v18 = vmul.f32 0.35355338, %v1804_v30 }
 0xffc   :  { %v1810_v31 = vadd.f32 %v5578_v56, %v1808_v18 }
 0xffe   :  { %v1814_v32 = vsel %vm177_vm8, %v1810_v31, -inf }
 0xfff   :  { %1815 = vmax.xlane.f32.xlu0 %v1814_v32 }
0x1064   :  { %v1813_v33 = vpop.xlane.xlu2 %1812 }
0x1065   :  { %v1817_v34 = vsub.f32 %v1809_v24, %v1813_v33  ;;  %v4466_v33 = vld [vmem:[%s6263_s6 + $0x1c] sm:$0xf] }
0x1066   :  { %v1633_v2 = vpop.xlane.xlu1 %1632 }
0x1067   :  { %v1819_v35 = vmul.f32 1.442695, %v1817_v34  ;;  %v1635_v62 = vsub.f32 %v1627_v26, %v1633_v2  ;;  %v1916_v34 = vsel %vm498_vm6, %v4466_v33, 0 }
0x1068   :  { %1925 = vmatpush.bf16.msra.mxu3 %v1916_v34 }
0x1069   :  { %4991 = vpow2.f32 %v1819_v35  ;;  %v1638_v29 = vmul.f32 1.442695, %v1635_v62 }
0x106b   :  { %4993 = vpow2.f32 %v1638_v29 }
0x106f   :  { %v5665_v36 = vpop.eup %4991 }
0x1070   :  { %v1823_v37 = vsel %vm177_vm8, %v5665_v36, 0.0 }
0x1071   :  { %v4994_v38 = vpop.eup %4993  ;;  %1824 = vadd.xlane.f32.xlu2 %v1823_v37  ;;  %v1543_v37 = vpop.f32.mrf.mxu2 }
0x1072   :  { %v1816_v39 = vpop.xlane.xlu0 %1815  ;;  %v1643_v56 = vsel %vm177_vm8, %v4994_v38, 0.0 }
0x1073   :  { %v1818_v40 = vsub.f32 %v1810_v31, %v1816_v39  ;;  %1644 = vadd.xlane.f32.xlu1 %v1643_v56  ;;  %v4465_v31 = vld [vmem:[%s6263_s6 + $0x18] sm:$0xf]  ;;  %v1564_v56 = vadd.f32 %v5651_v13, %v1543_v37  ;;  %v4820_v37 = vld [vmem:[%s6269_s12 + $0x60] sm:$0xff] }
0x1074   :  { %v1733_v32 = vsel %vm498_vm6, %v4465_v31, 0 }
0x1075   :  { %v1821_v41 = vmul.f32 1.442695, %v1818_v40  ;;  %1742 = vmatpush.bf16.msrb.mxu2 %v1733_v32 }
0x1077   :  { %4995 = vpow2.f32 %v1821_v41  ;;  %v4897_v41 = vld [vmem:[%s6264_s7 + $0x1] ss:$0 sm:$0xff] }
0x107d   :  { %v5670_v42 = vpop.eup %4995 }
0x107e   :  { %v1826_v43 = vsel %vm177_vm8, %v5670_v42, 0.0 }
0x107f   :  { %1827 = vadd.xlane.f32.xlu0 %v1826_v43 }
0x1089   :  { %4872 = vrot.lane.b32.xlu2 %v4871_v3, %s6327_s26 }
0x108c   :  { %1702 = vrot.lane.b32.xlu1 %v5552_v58, %s6325_s22 }
0x10e4   :  { %v1825_v44 = vpop.xlane.xlu2 %1824 }
0x10e5   :  { %4997 = vrcp.f32 %v1825_v44  ;;  %vm1834_vm13 = vweird.f32 %v1825_v44  ;;  %v1838_v7 = vand.u32 2147483647, %v1825_v44  ;;  %v1840_v8 = vand.u32 2147483648, %v1825_v44 }
0x10e6   :  { %v1645_v45 = vpop.xlane.xlu1 %1644 }
0x10e7   :  { %4999 = vrcp.f32 %v1645_v45  ;;  %v1672_v61 = vand.u32 2147483648, %v1645_v45  ;;  %vm1666_vm9 = vweird.f32 %v1645_v45  ;;  %v1670_v58 = vand.u32 2147483647, %v1645_v45 }
0x10e8   :  { %v1841_v23 = vor.u32 1.1754944e-38, %v1840_v8  ;;  %vm1839_vm3 = vcmp.eq.f32.partialorder %v1838_v7, 8.507059e+37 }
0x10e9   :  { %v1673_v50 = vor.u32 1.1754944e-38, %v1672_v61  ;;  %vm1671_vm11 = vcmp.eq.f32.partialorder %v1670_v58, 8.507059e+37 }
0x10eb   :  { %v4998_v46 = vpop.eup %4997 }
0x10ec   :  { %v4873_v47 = vpop.permute.xlu2 %4872  ;;  %v1830_v57 = vmul.f32 %v4998_v46, %v1825_v44  ;;  %vm1835_vm12 = vweird.f32 %v4998_v46 }
0x10ed   :  { %v5000_v52 = vpop.eup %4999  ;;  %v4875_v20 = vunpack.i.h.bf16 %v4873_v47  ;;  %vm1836_vm15 = vmor %vm1834_vm13, %vm1835_vm12  ;;  %v4874_v17 = vunpack.i.l.bf16 %v4873_v47 }
0x10ee   :  { %v1662_v53 = vmul.f32 %v5000_v52, %v1645_v45  ;;  %v1831_v55 = vsub.f32 1.0, %v1830_v57  ;;  %vm1667_vm7 = vweird.f32 %v5000_v52 }
0x10ef   :  { %1906 = vmatpush.msrb.mxu0 %v4875_v20  ;;  %vm1668_vm10 = vmor %vm1666_vm9, %vm1667_vm7 }
0x10f0   :  { %v1663_v59 = vsub.f32 1.0, %v1662_v53  ;;  %v1832_v63 = vmul.f32 %v4998_v46, %v1831_v55 }
0x10f2   :  { %v1664_v60 = vmul.f32 %v5000_v52, %v1663_v59  ;;  %v1828_v21 = vpop.xlane.xlu0 %1827  ;;  %v1833_v5 = vadd.f32 %v4998_v46, %v1832_v63 }
0x10f3   :  { %5001 = vrcp.f32 %v1828_v21  ;;  %v1855_v9 = vand.u32 2147483648, %v1828_v21  ;;  %v1853_v12 = vand.u32 2147483647, %v1828_v21  ;;  %vm1849_vm1 = vweird.f32 %v1828_v21 }
0x10f4   :  { %v1665_v49 = vadd.f32 %v5000_v52, %v1664_v60  ;;  %v1837_v19 = vsel %vm1836_vm15, %v4998_v46, %v1833_v5 }
0x10f5   :  { %v1856_v24 = vor.u32 1.1754944e-38, %v1855_v9  ;;  %vm1854_vm4 = vcmp.eq.f32.partialorder %v1853_v12, 8.507059e+37  ;;  %v1842_v26 = vsel %vm1839_vm3, %v1841_v23, %v1837_v19 }
0x10f6   :  { %v1669_v0 = vsel %vm1668_vm10, %v5000_v52, %v1665_v49  ;;  %v1843_v18 = vmul.f32 %v5665_v36, %v1842_v26 }
0x10f7   :  { %v1674_v54 = vsel %vm1671_vm11, %v1673_v50, %v1669_v0  ;;  %v4815_v0 = vld [vmem:[%s6267_s10 + $0x18] sm:$0xff] }
0x10f8   :  { %v1675_v16 = vmul.f32 %v4994_v38, %v1674_v54  ;;  %v1545_v38 = vpop.f32.mrf.mxu2 }
0x10f9   :  { %v5002_v1 = vpop.eup %5001  ;;  %v1566_v44 = vadd.f32 %v5653_v14, %v1545_v38  ;;  %v4819_v38 = vld [vmem:[%s6269_s12 + $0x58] sm:$0xff] }
0x10fa   :  { %v1845_v4 = vmul.f32 %v5002_v1, %v1828_v21  ;;  %vm1850_vm14 = vweird.f32 %v5002_v1 }
0x10fb   :  { %vm1851_vm2 = vmor %vm1849_vm1, %vm1850_vm14 }
0x10fc   :  { %v1846_v6 = vsub.f32 1.0, %v1845_v4  ;;  %v4814_v4 = vld [vmem:[%s6267_s10 + $0x10] sm:$0xff] }
0x10fe   :  { %v1847_v11 = vmul.f32 %v5002_v1, %v1846_v6  ;;  %v1703_v15 = vpop.permute.xlu1 %1702 }
0x10ff   :  { %1723 = vmatpush.msrb.mxu1 %v1703_v15 }
0x1100   :  { %v1848_v22 = vadd.f32 %v5002_v1, %v1847_v11  ;;  %4486 = vmatmul.msk.f32.vlgmr.msrb.gmra.mxu1 %vm177_vm8, %v1675_v16 }
0x1101   :  { %1880 = vmatpush.msra.mxu1 %v4874_v17 }
0x1102   :  { %v1852_v25 = vsel %vm1851_vm2, %v5002_v1, %v1848_v22 }
0x1103   :  { %v1857_v28 = vsel %vm1854_vm4, %v1856_v24, %v1852_v25  ;;  %2033 = vmatpush.bf16.msrb.mxu1 %v4815_v0  ;;  %v4898_v25 = vld [vmem:[%s6265_s8 + $0x1] ss:$0 sm:$0xff] }
0x1104   :  { %v1858_v30 = vmul.f32 %v5670_v42, %v1857_v28 }
0x1106   :  { %4493 = vmatmul.msk.f32.vlgmr.msrb.gmra.mxu0 %vm177_vm8, %v1858_v30 }
0x1107   :  { %2034 = vmatpush.bf16.msrb.mxu1 %v4814_v4 }
0x1108   :  { %4492 = vmatmul.msk.f32.vlgmr.msra.gmra.mxu1 %vm177_vm8, %v1843_v18  ;;  %v4899_v18 = vld [vmem:[%s6266_s9 + $0x1] ss:$0 sm:$0xff] }
0x117d   :  { %v1725_v2 = vpop.f32.mrf.mxu1 }
0x117e   :  { %v1728_v35 = vpack.c.bf16 %v1725_v2, %v5660_v27 }
0x1180   :  { %4487 = vmatmul.msk.bf16.vlgmr.msrb.gmra.mxu2 %vm177_vm8, %v1728_v35 }
0x1183   :  { %v1908_v62 = vpop.f32.mrf.mxu0 }
0x1185   :  { %v1882_v29 = vpop.f32.mrf.mxu1 }
0x1186   :  { %v1911_v36 = vpack.c.bf16 %v1908_v62, %v1882_v29  ;;  %v4823_v62 = vld [vmem:[%s6269_s12 + $0x78] sm:$0xff]  ;;  %v4822_v29 = vld [vmem:[%s6269_s12 + $0x70] sm:$0xff] }
0x1187   :  { %2130 = vmatpush.bf16.msra.mxu2 %v4823_v62 }
0x1188   :  { %4494 = vmatmul.msk.bf16.vlgmr.msra.gmra.mxu3 %vm177_vm8, %v1911_v36  ;;  %v4821_v36 = vld [vmem:[%s6269_s12 + $0x68] sm:$0xff] }
0x118b   :  { %2131 = vmatpush.bf16.msra.mxu2 %v4822_v29 }
0x118f   :  { %2132 = vmatpush.bf16.msra.mxu2 %v4821_v36 }
0x1193   :  { %2133 = vmatpush.bf16.msra.mxu2 %v4820_v37 }
0x1197   :  { %2134 = vmatpush.bf16.msra.mxu2 %v4819_v38 }
0x1203   :  { %v1744_v39 = vpop.f32.mrf.mxu2 }
0x1204   :  { %v1749_v40 = vadd.f32 %v1744_v39, %v1564_v56  ;;  %v4818_v39 = vld [vmem:[%s6269_s12 + $0x50] sm:$0xff]  ;;  %v4817_v56 = vld [vmem:[%s6269_s12 + $0x48] sm:$0xff] }
0x1205   :  { %2135 = vmatpush.bf16.msra.mxu2 %v4818_v39 }
0x1209   :  { %2136 = vmatpush.bf16.msra.mxu2 %v4817_v56 }
0x120b   :  { %v1927_v42 = vpop.f32.mrf.mxu3  ;;  %v1746_v3 = vpop.f32.mrf.mxu2 }
0x120c   :  { %v1932_v43 = vadd.f32 %v1927_v42, %v1749_v40  ;;  %v1750_v46 = vadd.f32 %v1746_v3, %v1566_v44  ;;  %v4900_v40 = vld [vmem:[%s6268_s11 + $0x1] ss:$0 sm:$0xff] }
0x120e   :  { %v1939_v27 = vadd.f32 %v4897_v41, %v1932_v43 }
0x1210   :  { %v1941_v45 = vadd.f32 %v1939_v27, %v5536_v48 }
0x1212   :  { %v1947_v47 = vsel %vm68_vm0, %v1941_v45, 0.0 }
0x1213   :  { %1948 = vadd.xlane.f32.xlu0 %v1947_v47  ;;  %v1929_v52 = vpop.f32.mrf.mxu3 }
0x1214   :  { %v1933_v20 = vadd.f32 %v1929_v52, %v1750_v46 }
0x1216   :  { %v1940_v13 = vadd.f32 %v4897_v41, %v1933_v20  ;;  %v4816_v41 = vld [vmem:[%s6269_s12 + $0x40] sm:$0xff] }
0x1217   :  { %2137 = vmatpush.bf16.msra.mxu2 %v4816_v41  ;;  %v4902_v41 = vld [vmem:[%s6271_s14 + $0x1] ss:$0 sm:$0xff] }
0x1218   :  { %v1942_v53 = vadd.f32 %v1940_v13, %v5538_v51 }
0x121a   :  { %v1950_v57 = vsel %vm68_vm0, %v1942_v53, 0.0 }
0x121b   :  { %1951 = vadd.xlane.f32.xlu0 %v1950_v57 }
0x1286   :  { %v1949_v59 = vpop.xlane.xlu0 %1948 }
0x1287   :  { %v1953_v60 = vmul.f32 %v1949_v59, %v5287_v10 }
0x1289   :  { %v1955_v21 = vsub.f32 %v1941_v45, %v1953_v60 }
0x128b   :  { %v1957_v55 = vmul.f32 %v1955_v21, %v1955_v21 }
0x128d   :  { %v1959_v14 = vsel %vm68_vm0, %v1957_v55, 0.0 }
0x128e   :  { %1960 = vadd.xlane.f32.xlu0 %v1959_v14  ;;  %v1952_v48 = vpop.xlane.xlu0 %1951 }
0x128f   :  { %v1954_v49 = vmul.f32 %v1952_v48, %v5287_v10 }
0x1291   :  { %v1956_v61 = vsub.f32 %v1942_v53, %v1954_v49 }
0x1293   :  { %v1958_v58 = vmul.f32 %v1956_v61, %v1956_v61 }
0x1295   :  { %v1962_v63 = vsel %vm68_vm0, %v1958_v58, 0.0 }
0x1296   :  { %1963 = vadd.xlane.f32.xlu1 %v1962_v63 }
0x1301   :  { %v1961_v51 = vpop.xlane.xlu0 %1960 }
0x1302   :  { %v1965_v1 = vmul.f32 %v1961_v51, %v5287_v10  ;;  %v4901_v51 = vld [vmem:[%s6270_s13 + $0x1] ss:$0 sm:$0xff] }
0x1304   :  { %v1967_v50 = vadd.f32 1e-12, %v1965_v1 }
0x1306   :  { %5003 = vrsqrt.f32 %v1967_v50  ;;  %vm1975_vm7 = vweird.f32 %v1967_v50 }
0x1309   :  { %v1964_v54 = vpop.xlane.xlu1 %1963 }
0x130a   :  { %v1966_v5 = vmul.f32 %v1964_v54, %v5287_v10 }
0x130c   :  { %v5004_v6 = vpop.eup %5003  ;;  %v1968_v7 = vadd.f32 1e-12, %v1966_v5 }
0x130d   :  { %v1970_v8 = vmul.f32 %v5004_v6, %v1967_v50  ;;  %vm1976_vm5 = vweird.f32 %v5004_v6 }
0x130e   :  { %5005 = vrsqrt.f32 %v1968_v7  ;;  %vm1977_vm9 = vmor %vm1975_vm7, %vm1976_vm5  ;;  %vm1985_vm11 = vweird.f32 %v1968_v7 }
0x130f   :  { %v1971_v9 = vmul.f32 %v5004_v6, %v1970_v8 }
0x1311   :  { %v1972_v11 = vmul.f32 0.5, %v1971_v9 }
0x1313   :  { %v1973_v12 = vsub.f32 1.5, %v1972_v11 }
0x1314   :  { %v5006_v15 = vpop.eup %5005 }
0x1315   :  { %v1974_v16 = vmul.f32 %v5004_v6, %v1973_v12  ;;  %v1980_v17 = vmul.f32 %v5006_v15, %v1968_v7  ;;  %vm1986_vm10 = vweird.f32 %v5006_v15 }
0x1316   :  { %vm1987_vm12 = vmor %vm1985_vm11, %vm1986_vm10 }
0x1317   :  { %v1981_v19 = vmul.f32 %v5006_v15, %v1980_v17  ;;  %v1978_v22 = vsel %vm1977_vm9, %v5004_v6, %v1974_v16 }
0x1318   :  { %v1989_v26 = vmul.f32 %v1978_v22, %v1955_v21 }
0x1319   :  { %v1982_v23 = vmul.f32 0.5, %v1981_v19 }
0x131a   :  { %v1994_v31 = vmul.f32 %v4898_v25, %v1989_v26 }
0x131b   :  { %v1983_v24 = vsub.f32 1.5, %v1982_v23 }
0x131c   :  { %v1999_v34 = vadd.f32 %v4899_v18, %v1994_v31 }
0x131d   :  { %v1984_v28 = vmul.f32 %v5006_v15, %v1983_v24 }
0x131f   :  { %v1988_v30 = vsel %vm1987_vm12, %v5006_v15, %v1984_v28 }
0x1320   :  { %v1990_v32 = vmul.f32 %v1988_v30, %v1956_v61  ;;  %v4824_v30 = vld [vmem:[%s6261_s4 + $0x20] sm:$0xff] }
0x1322   :  { %v1995_v33 = vmul.f32 %v4898_v25, %v1990_v32  ;;  %v4825_v25 = vld [vmem:[%s6261_s4 + $0x28] sm:$0xff] }
0x1323   :  { %2236 = vmatpush.bf16.msra.mxu0 %v4825_v25 }
0x1324   :  { %v2000_v2 = vadd.f32 %v4899_v18, %v1995_v33 }
0x1326   :  { %v2001_v35 = vpack.c.bf16 %v2000_v2, %v1999_v34 }
0x1327   :  { %2237 = vmatpush.bf16.msra.mxu0 %v4824_v30 }
0x1328   :  { %4511 = vmatmul.msk.bf16.vlgmr.msrb.gmra.mxu1 %vm68_vm0, %v2001_v35 }
0x13a5   :  { %v2036_v42 = vpop.f32.mrf.mxu1 }
0x13a6   :  { %v2037_v43 = vadd.f32 %v4900_v40, %v2036_v42 }
0x13a8   :  { %v2043_v27 = vmul.f32 0.044715, %v2037_v43  ;;  %v2041_v14 = vmul.f32 0.5, %v2037_v43 }
0x13aa   :  { %v2045_v3 = vmul.f32 %v2043_v27, %v2037_v43 }
0x13ac   :  { %v2047_v44 = vmul.f32 %v2045_v3, %v2037_v43  ;;  %v4903_v3 = vld [vmem:[%s6272_s15 + $0x1] ss:$0 sm:$0xff] }
0x13ad   :  { %v2038_v45 = vpop.f32.mrf.mxu1 }
0x13ae   :  { %v2049_v46 = vadd.f32 %v2047_v44, %v2037_v43  ;;  %v2039_v47 = vadd.f32 %v4900_v40, %v2038_v45 }
0x13b0   :  { %v2044_v52 = vmul.f32 0.044715, %v2039_v47  ;;  %v2051_v20 = vmul.f32 0.7978846, %v2049_v46  ;;  %v2042_v48 = vmul.f32 0.5, %v2039_v47 }
0x13b2   :  { %v2046_v13 = vmul.f32 %v2044_v52, %v2039_v47  ;;  %5007 = vtanh.f32 %v2051_v20 }
0x13b4   :  { %v2048_v53 = vmul.f32 %v2046_v13, %v2039_v47  ;;  %v4904_v13 = vld [vmem:[%s6262_s5 + $0x2] ss:$0 sm:$0xff] }
0x13b6   :  { %v2050_v57 = vadd.f32 %v2048_v53, %v2039_v47 }
0x13b8   :  { %v2052_v59 = vmul.f32 0.7978846, %v2050_v57  ;;  %v5008_v60 = vpop.eup %5007 }
0x13b9   :  { %v2055_v21 = vadd.f32 1.0, %v5008_v60 }
0x13ba   :  { %5009 = vtanh.f32 %v2052_v59 }
0x13bb   :  { %v2057_v61 = vmul.f32 %v2055_v21, %v2041_v14 }
0x13c0   :  { %v5010_v55 = vpop.eup %5009 }
0x13c1   :  { %v2056_v49 = vadd.f32 1.0, %v5010_v55 }
0x13c3   :  { %v2058_v58 = vmul.f32 %v2056_v49, %v2042_v48 }
0x13c5   :  { %v2059_v63 = vpack.c.bf16 %v2058_v58, %v2057_v61 }
0x13c7   :  { %2138 = vmatmul.bf16.vlgmr.msra.gmra.mxu2 %v2059_v63 }
0x144a   :  { %v2139_v0 = vpop.f32.mrf.mxu2 }
0x144b   :  { %v2140_v1 = vadd.f32 %v4901_v51, %v2139_v0 }
0x144d   :  { %v2144_v50 = vadd.f32 %v2140_v1, %v1999_v34 }
0x144f   :  { %v2150_v4 = vsel %vm68_vm0, %v2144_v50, 0.0 }
0x1450   :  { %2151 = vadd.xlane.f32.xlu2 %v2150_v4 }
0x1452   :  { %v2141_v54 = vpop.f32.mrf.mxu2 }
0x1453   :  { %v2142_v5 = vadd.f32 %v4901_v51, %v2141_v54  ;;  %v5806_v51 = vld [vmem:[%s6320_s23] sm:$0xff] }
0x1455   :  { %v2145_v6 = vadd.f32 %v2142_v5, %v2000_v2 }
0x1457   :  { %v2153_v7 = vsel %vm68_vm0, %v2145_v6, 0.0 }
0x1458   :  { %2154 = vadd.xlane.f32.xlu0 %v2153_v7 }
0x14c3   :  { %v2152_v8 = vpop.xlane.xlu2 %2151 }
0x14c4   :  { %v2156_v9 = vmul.f32 %v2152_v8, %v5287_v10 }
0x14c6   :  { %v2158_v11 = vsub.f32 %v2144_v50, %v2156_v9  ;;  %v5813_v50 = vld [vmem:[%s6320_s23 + $0x8] sm:$0xff] }
0x14c8   :  { %v2160_v12 = vmul.f32 %v2158_v11, %v2158_v11 }
0x14ca   :  { %v2162_v15 = vsel %vm68_vm0, %v2160_v12, 0.0 }
0x14cb   :  { %v2155_v16 = vpop.xlane.xlu0 %2154  ;;  %2163 = vadd.xlane.f32.xlu0 %v2162_v15 }
0x14cc   :  { %v2157_v17 = vmul.f32 %v2155_v16, %v5287_v10 }
0x14ce   :  { %v2159_v19 = vsub.f32 %v2145_v6, %v2157_v17 }
0x14d0   :  { %v2161_v22 = vmul.f32 %v2159_v19, %v2159_v19 }
0x14d2   :  { %v2165_v23 = vsel %vm68_vm0, %v2161_v22, 0.0 }
0x14d3   :  { %2166 = vadd.xlane.f32.xlu0 %v2165_v23 }
0x153e   :  { %v2164_v24 = vpop.xlane.xlu0 %2163 }
0x153f   :  { %v2168_v26 = vmul.f32 %v2164_v24, %v5287_v10 }
0x1541   :  { %v2170_v28 = vadd.f32 1e-12, %v2168_v26 }
0x1543   :  { %5011 = vrsqrt.f32 %v2170_v28  ;;  %vm2178_vm14 = vweird.f32 %v2170_v28 }
0x1546   :  { %v2167_v18 = vpop.xlane.xlu0 %2166 }
0x1547   :  { %v2169_v31 = vmul.f32 %v2167_v18, %v5287_v10 }
0x1549   :  { %v5012_v32 = vpop.eup %5011  ;;  %v2171_v33 = vadd.f32 1e-12, %v2169_v31 }
0x154a   :  { %v2173_v34 = vmul.f32 %v5012_v32, %v2170_v28  ;;  %vm2179_vm13 = vweird.f32 %v5012_v32 }
0x154b   :  { %5013 = vrsqrt.f32 %v2171_v33  ;;  %vm2180_vm15 = vmor %vm2178_vm14, %vm2179_vm13  ;;  %vm2188_vm2 = vweird.f32 %v2171_v33 }
0x154c   :  { %v2174_v2 = vmul.f32 %v5012_v32, %v2173_v34 }
0x154e   :  { %v2175_v35 = vmul.f32 0.5, %v2174_v2 }
0x1550   :  { %v2176_v62 = vsub.f32 1.5, %v2175_v35 }
0x1551   :  { %v5014_v29 = vpop.eup %5013 }
0x1552   :  { %v2177_v36 = vmul.f32 %v5012_v32, %v2176_v62  ;;  %v2183_v37 = vmul.f32 %v5014_v29, %v2171_v33  ;;  %vm2189_vm1 = vweird.f32 %v5014_v29 }
0x1553   :  { %vm2190_vm3 = vmor %vm2188_vm2, %vm2189_vm1 }
0x1554   :  { %v2184_v38 = vmul.f32 %v5014_v29, %v2183_v37  ;;  %v2181_v39 = vsel %vm2180_vm15, %v5012_v32, %v2177_v36 }
0x1555   :  { %v2192_v42 = vmul.f32 %v2181_v39, %v2158_v11 }
0x1556   :  { %v2185_v56 = vmul.f32 0.5, %v2184_v38 }
0x1557   :  { %v2197_v44 = vmul.f32 %v4902_v41, %v2192_v42 }
0x1558   :  { %v2186_v40 = vsub.f32 1.5, %v2185_v56 }
0x1559   :  { %v5773_v47 = vadd.f32 %v4903_v3, %v2197_v44 }
0x155a   :  { %v2187_v43 = vmul.f32 %v5014_v29, %v2186_v40 }
0x155c   :  { %v2191_v27 = vsel %vm2190_vm3, %v5014_v29, %v2187_v43 }
0x155d   :  { %v2193_v45 = vmul.f32 %v2191_v27, %v2159_v19 }
0x155f   :  { %v2198_v46 = vmul.f32 %v4902_v41, %v2193_v45 }
0x1561   :  { %v5775_v52 = vadd.f32 %v4903_v3, %v2198_v46 }
0x1563   :  { %v2204_v20 = vpack.c.bf16 %v5775_v52, %v5773_v47 }
0x1565   :  { %4576 = vmatmul.msk.bf16.vlgmr.msra.gmra.mxu0 %vm68_vm0, %v2204_v20 }
0x15e2   :  { %v2239_v53 = vpop.f32.mrf.mxu0 }
0x15e3   :  { %v5783_v57 = vadd.f32 %v4904_v13, %v2239_v53 }
0x15e5   :  { %2410 = vrot.lane.b32.xlu2 %v5783_v57, %s6328_s20  ;;  %2250 = vrot.lane.b32.xlu1 %v5783_v57, %s6329_s30 }
0x15ea   :  { %v2241_v59 = vpop.f32.mrf.mxu0 }
0x15eb   :  { %v5789_v60 = vadd.f32 %v4904_v13, %v2241_v59 }
0x15ed   :  { %2277 = vrot.lane.b32.xlu0 %v5789_v60, %s6329_s30 }
0x15f5   :  { %2408 = vrot.lane.b32.xlu0 %v5783_v57, %s6330_s1 }
0x163f   :  { %v2411_v14 = vpop.permute.xlu2 %2410 }
0x1657   :  { %v2251_v21 = vpop.permute.xlu1 %2250 }
0x1658   :  { %4581 = vmatpush.xpose.msk.msrb.mxu3 %vm177_vm8, %v2251_v21 }
0x165b   :  { %4582 = vmatmul.msk.f32.vlgmr.msrb.gmra.mxu3 %vm177_vm8, %v5783_v57 }
0x165f   :  { %v2278_v55 = vpop.permute.xlu0 %2277 }
0x1660   :  { %4583 = vmatpush.xpose.msk.msra.mxu1 %vm177_vm8, %v2278_v55 }
0x1663   :  { %4584 = vmatmul.msk.f32.vlgmr.msra.gmra.mxu1 %vm177_vm8, %v5789_v60 }
0x1664   :  { %4587 = vmatpush.xpose.msk.msrb.mxu1 %vm177_vm8, %v2411_v14 }
0x1667   :  { %v2409_v48 = vpop.permute.xlu0 %2408 }
0x166b   :  { %4588 = vmatmul.msk.f32.vlgmr.msrb.gmra.mxu1 %vm177_vm8, %v2409_v48 }
0x16de   :  { %v2273_v49 = vpop.f32.mrf.mxu3 }
0x16df   :  { %v2303_v61 = vmul.f32 0.35355338, %v2273_v49 }
0x16e0   :  { %v2300_v58 = vpop.f32.mrf.mxu1 }
0x16e1   :  { %v2304_v63 = vmul.f32 0.35355338, %v2300_v58  ;;  %v2305_v0 = vadd.f32 %v5806_v51, %v2303_v61 }
0x16e3   :  { %v2307_v1 = vsel %vm177_vm8, %v2305_v0, -inf  ;;  %v2306_v4 = vadd.f32 %v5813_v50, %v2304_v63 }
0x16e4   :  { %2308 = vmax.xlane.f32.xlu2 %v2307_v1 }
0x16e5   :  { %v2310_v54 = vsel %vm177_vm8, %v2306_v4, -inf }
0x16e6   :  { %2311 = vmax.xlane.f32.xlu0 %v2310_v54 }
0x16e8   :  { %v2433_v5 = vpop.f32.mrf.mxu1 }
0x16e9   :  { %v2464_v6 = vmul.f32 0.35355338, %v2433_v5 }
0x16eb   :  { %v2466_v7 = vadd.f32 %v5806_v51, %v2464_v6 }
0x16ed   :  { %v2468_v8 = vsel %vm177_vm8, %v2466_v7, -inf }
0x16ee   :  { %2469 = vmax.xlane.f32.xlu1 %v2468_v8 }
0x16fa   :  { %2516 = vrot.lane.b32.xlu0 %v5783_v57, %s6322_s0 }
0x16fc   :  { %2381 = vrot.lane.b32.xlu2 %v5789_v60, %s6331_s21 }
0x1704   :  { %2611 = vrot.lane.b32.xlu2 %v5783_v57, %s6321_s2 }
0x1707   :  { %2355 = vrot.lane.b32.xlu1 %v5783_v57, %s6331_s21 }
0x170c   :  { %2436 = vrot.lane.b32.xlu2 %v5789_v60, %s6330_s1 }
0x1714   :  { %2542 = vrot.lane.b32.xlu2 %v5789_v60, %s6322_s0 }
0x171c   :  { %2637 = vrot.lane.b32.xlu2 %v5789_v60, %s6323_s27 }
0x1757   :  { %v2309_v9 = vpop.xlane.xlu2 %2308 }
0x1758   :  { %v2313_v11 = vsub.f32 %v2305_v0, %v2309_v9 }
0x1759   :  { %v2312_v12 = vpop.xlane.xlu0 %2311 }
0x175a   :  { %v2315_v15 = vmul.f32 1.442695, %v2313_v11  ;;  %v2314_v16 = vsub.f32 %v2306_v4, %v2312_v12  ;;  %v4577_v12 = vld [vmem:[%s6263_s6 + $0x20] sm:$0xf] }
0x175c   :  { %5015 = vpow2.f32 %v2315_v15  ;;  %v2317_v17 = vmul.f32 1.442695, %v2314_v16  ;;  %v2593_v15 = vsel %vm498_vm6, %v4577_v12, 0 }
0x175e   :  { %5017 = vpow2.f32 %v2317_v17 }
0x175f   :  { %v2382_v19 = vpop.permute.xlu2 %2381 }
0x1760   :  { %2402 = vmatpush.msra.mxu3 %v2382_v19 }
0x1761   :  { %v2470_v22 = vpop.xlane.xlu1 %2469 }
0x1762   :  { %v5016_v23 = vpop.eup %5015  ;;  %v2474_v24 = vsub.f32 %v2466_v7, %v2470_v22 }
0x1763   :  { %v2319_v25 = vsel %vm177_vm8, %v5016_v23, 0.0 }
0x1764   :  { %v5018_v26 = vpop.eup %5017  ;;  %v2476_v28 = vmul.f32 1.442695, %v2474_v24  ;;  %2320 = vadd.xlane.f32.xlu1 %v2319_v25 }
0x1765   :  { %v2322_v30 = vsel %vm177_vm8, %v5018_v26, 0.0 }
0x1766   :  { %5019 = vpow2.f32 %v2476_v28  ;;  %2323 = vadd.xlane.f32.xlu0 %v2322_v30 }
0x1767   :  { %v2612_v18 = vpop.permute.xlu2 %2611 }
0x176c   :  { %v5835_v31 = vpop.eup %5019  ;;  %v2517_v32 = vpop.permute.xlu0 %2516 }
0x176d   :  { %2537 = vmatpush.msrb.mxu3 %v2517_v32  ;;  %v2480_v33 = vsel %vm177_vm8, %v5835_v31, 0.0 }
0x176e   :  { %2481 = vadd.xlane.f32.xlu0 %v2480_v33 }
0x176f   :  { %v5839_v34 = vpop.permute.xlu2 %2436 }
0x1777   :  { %v2543_v2 = vpop.permute.xlu2 %2542 }
0x1778   :  { %2563 = vmatpush.msra.mxu1 %v2543_v2 }
0x1779   :  { %v2356_v35 = vpop.permute.xlu1 %2355 }
0x177a   :  { %2376 = vmatpush.msrb.mxu0 %v2356_v35 }
0x177d   :  { %2438 = vrot.lane.b32.xlu1 %v5789_v60, %s6328_s20 }
0x1782   :  { %2609 = vrot.lane.b32.xlu0 %v5783_v57, %s6323_s27 }
0x17d7   :  { %v2321_v62 = vpop.xlane.xlu1 %2320 }
0x17d8   :  { %5021 = vrcp.f32 %v2321_v62  ;;  %v2336_v41 = vand.u32 2147483648, %v2321_v62  ;;  %v2334_v43 = vand.u32 2147483647, %v2321_v62  ;;  %vm2330_vm5 = vweird.f32 %v2321_v62 }
0x17d9   :  { %v2324_v29 = vpop.xlane.xlu0 %2323 }
0x17da   :  { %5023 = vrcp.f32 %v2324_v29  ;;  %v2351_v3 = vand.u32 2147483648, %v2324_v29  ;;  %v2349_v46 = vand.u32 2147483647, %v2324_v29  ;;  %v2337_v20 = vor.u32 1.1754944e-38, %v2336_v41  ;;  %v2638_v41 = vpop.permute.xlu2 %2637 }
0x17db   :  { %vm2335_vm10 = vcmp.eq.f32.partialorder %v2334_v43, 8.507059e+37  ;;  %vm2345_vm11 = vweird.f32 %v2324_v29 }
0x17dc   :  { %v2352_v55 = vor.u32 1.1754944e-38, %v2351_v3  ;;  %vm2350_vm13 = vcmp.eq.f32.partialorder %v2349_v46, 8.507059e+37 }
0x17de   :  { %v5022_v36 = vpop.eup %5021 }
0x17df   :  { %v2326_v37 = vmul.f32 %v5022_v36, %v2321_v62  ;;  %vm2331_vm4 = vweird.f32 %v5022_v36 }
0x17e0   :  { %v5024_v38 = vpop.eup %5023  ;;  %vm2332_vm9 = vmor %vm2330_vm5, %vm2331_vm4 }
0x17e1   :  { %v2327_v39 = vsub.f32 1.0, %v2326_v37  ;;  %v2341_v56 = vmul.f32 %v5024_v38, %v2324_v29  ;;  %v2482_v40 = vpop.xlane.xlu0 %2481  ;;  %vm2346_vm7 = vweird.f32 %v5024_v38 }
0x17e2   :  { %5025 = vrcp.f32 %v2482_v40  ;;  %vm2347_vm12 = vmor %vm2345_vm11, %vm2346_vm7  ;;  %v2497_v0 = vand.u32 2147483648, %v2482_v40  ;;  %v2495_v4 = vand.u32 2147483647, %v2482_v40  ;;  %vm2491_vm15 = vweird.f32 %v2482_v40 }
0x17e3   :  { %v2328_v42 = vmul.f32 %v5022_v36, %v2327_v39  ;;  %v2342_v27 = vsub.f32 1.0, %v2341_v56 }
0x17e4   :  { %v2498_v6 = vor.u32 1.1754944e-38, %v2497_v0  ;;  %vm2496_vm2 = vcmp.eq.f32.partialorder %v2495_v4, 8.507059e+37 }
0x17e5   :  { %v2329_v44 = vadd.f32 %v5022_v36, %v2328_v42  ;;  %v2343_v45 = vmul.f32 %v5024_v38, %v2342_v27 }
0x17e7   :  { %v2333_v13 = vsel %vm2332_vm9, %v5022_v36, %v2329_v44  ;;  %v2344_v53 = vadd.f32 %v5024_v38, %v2343_v45 }
0x17e8   :  { %v5026_v59 = vpop.eup %5025  ;;  %v2338_v21 = vsel %vm2335_vm10, %v2337_v20, %v2333_v13 }
0x17e9   :  { %v2348_v14 = vsel %vm2347_vm12, %v5024_v38, %v2344_v53  ;;  %v2487_v48 = vmul.f32 %v5026_v59, %v2482_v40  ;;  %v2339_v49 = vmul.f32 %v5016_v23, %v2338_v21  ;;  %vm2492_vm14 = vweird.f32 %v5026_v59 }
0x17ea   :  { %v2353_v61 = vsel %vm2350_vm13, %v2352_v55, %v2348_v14  ;;  %vm2493_vm1 = vmor %vm2491_vm15, %vm2492_vm14 }
0x17eb   :  { %v2488_v58 = vsub.f32 1.0, %v2487_v48  ;;  %4585 = vmatmul.msk.f32.vlgmr.msrb.gmra.mxu0 %vm177_vm8, %v2339_v49  ;;  %v2354_v63 = vmul.f32 %v5018_v26, %v2353_v61 }
0x17ed   :  { %v2489_v1 = vmul.f32 %v5026_v59, %v2488_v58  ;;  %4586 = vmatmul.msk.f32.vlgmr.msra.gmra.mxu3 %vm177_vm8, %v2354_v63 }
0x17ee   :  { %4595 = vmatpush.xpose.msk.msra.mxu3 %vm177_vm8, %v2612_v18 }
0x17ef   :  { %v2490_v54 = vadd.f32 %v5026_v59, %v2489_v1  ;;  %v2439_v5 = vpop.permute.xlu1 %2438 }
0x17f0   :  { %4589 = vmatpush.xpose.msk.msra.mxu0 %vm177_vm8, %v2439_v5 }
0x17f1   :  { %v2494_v7 = vsel %vm2493_vm1, %v5026_v59, %v2490_v54 }
0x17f2   :  { %v2499_v8 = vsel %vm2496_vm2, %v2498_v6, %v2494_v7 }
0x17f3   :  { %4590 = vmatmul.msk.f32.vlgmr.msra.gmra.mxu0 %vm177_vm8, %v5839_v34  ;;  %v2500_v9 = vmul.f32 %v5835_v31, %v2499_v8 }
0x17f4   :  { %v2610_v11 = vpop.permute.xlu0 %2609  ;;  %2602 = vmatpush.bf16.msrb.mxu0 %v2593_v15 }
0x17f5   :  { %4591 = vmatmul.msk.f32.vlgmr.msrb.gmra.mxu3 %vm177_vm8, %v2500_v9  ;;  %v4578_v9 = vld [vmem:[%s6263_s6 + $0x24] sm:$0xf] }
0x17fd   :  { %4596 = vmatmul.msk.f32.vlgmr.msra.gmra.mxu3 %vm177_vm8, %v2610_v11  ;;  %v2573_v11 = vsel %vm498_vm6, %v4578_v9, 0 }
0x17fe   :  { %2582 = vmatpush.bf16.msrb.mxu2 %v2573_v11 }
0x1868   :  { %v2378_v16 = vpop.f32.mrf.mxu0 }
0x1870   :  { %v2404_v17 = vpop.f32.mrf.mxu3  ;;  %v2461_v19 = vpop.f32.mrf.mxu0 }
0x1871   :  { %v2407_v22 = vpack.c.bf16 %v2404_v17, %v2378_v16  ;;  %v2465_v23 = vmul.f32 0.35355338, %v2461_v19 }
0x1873   :  { %4594 = vmatmul.msk.bf16.vlgmr.msrb.gmra.mxu0 %vm177_vm8, %v2407_v22  ;;  %v2467_v24 = vadd.f32 %v5813_v50, %v2465_v23 }
0x1875   :  { %v2471_v25 = vsel %vm177_vm8, %v2467_v24, -inf }
0x1876   :  { %2472 = vmax.xlane.f32.xlu0 %v2471_v25 }
0x1878   :  { %v5861_v26 = vpop.f32.mrf.mxu3 }
0x1880   :  { %v2634_v28 = vpop.f32.mrf.mxu3 }
0x1881   :  { %v2665_v30 = vmul.f32 0.35355338, %v2634_v28 }
0x1883   :  { %v2667_v18 = vadd.f32 %v5806_v51, %v2665_v30 }
0x1885   :  { %v2669_v31 = vsel %vm177_vm8, %v2667_v18, -inf }
0x1886   :  { %2670 = vmax.xlane.f32.xlu1 %v2669_v31 }
0x188a   :  { %2639 = vrot.lane.b32.xlu0 %v5789_v60, %s6321_s2 }
0x1892   :  { %2822 = vrot.lane.b32.xlu0 %v5789_v60, %s6324_s24 }
0x189f   :  { %2717 = vrot.lane.b32.xlu1 %v5783_v57, %s6325_s22 }
0x18a7   :  { %2820 = vrot.lane.b32.xlu1 %v5789_v60, %s6326_s29 }
0x18e9   :  { %v2473_v32 = vpop.xlane.xlu0 %2472 }
0x18ea   :  { %v2475_v33 = vsub.f32 %v2467_v24, %v2473_v32 }
0x18ec   :  { %v2478_v34 = vmul.f32 1.442695, %v2475_v33 }
0x18ee   :  { %5027 = vpow2.f32 %v2478_v34 }
0x18f0   :  { %v5891_v15 = vpop.f32.mrf.mxu0 }
0x18f4   :  { %v5028_v2 = vpop.eup %5027 }
0x18f5   :  { %v2483_v35 = vsel %vm177_vm8, %v5028_v2, 0.0 }
0x18f6   :  { %2484 = vadd.xlane.f32.xlu2 %v2483_v35 }
0x18f8   :  { %v5895_v22 = vpop.f32.mrf.mxu0 }
0x18f9   :  { %v2671_v62 = vpop.xlane.xlu1 %2670 }
0x18fa   :  { %v2675_v29 = vsub.f32 %v2667_v18, %v2671_v62 }
0x18fc   :  { %v2677_v36 = vmul.f32 1.442695, %v2675_v29  ;;  %v2640_v37 = vpop.permute.xlu0 %2639 }
0x18fd   :  { %4597 = vmatpush.xpose.msk.msrb.mxu1 %vm177_vm8, %v2640_v37 }
0x18fe   :  { %5029 = vpow2.f32 %v2677_v36 }
0x1904   :  { %v5030_v38 = vpop.eup %5029  ;;  %v2823_v40 = vpop.permute.xlu0 %2822 }
0x1905   :  { %v2681_v39 = vsel %vm177_vm8, %v5030_v38, 0.0 }
0x1906   :  { %2682 = vadd.xlane.f32.xlu0 %v2681_v39 }
0x190e   :  { %2792 = vrot.lane.b32.xlu2 %v5783_v57, %s6326_s29 }
0x1911   :  { %v2718_v56 = vpop.permute.xlu1 %2717 }
0x1912   :  { %2738 = vmatpush.msrb.mxu3 %v2718_v56 }
0x1914   :  { %4604 = vmatpush.xpose.msk.msra.mxu3 %vm177_vm8, %v2823_v40 }
0x1919   :  { %v2821_v8 = vpop.permute.xlu1 %2820 }
0x191a   :  { %2794 = vrot.lane.b32.xlu0 %v5783_v57, %s6324_s24 }
0x1969   :  { %v2485_v42 = vpop.xlane.xlu2 %2484 }
0x196a   :  { %5031 = vrcp.f32 %v2485_v42  ;;  %v2512_v44 = vand.u32 2147483648, %v2485_v42  ;;  %v2510_v46 = vand.u32 2147483647, %v2485_v42  ;;  %vm2506_vm4 = vweird.f32 %v2485_v42 }
0x196c   :  { %v2513_v13 = vor.u32 1.1754944e-38, %v2512_v44  ;;  %vm2511_vm7 = vcmp.eq.f32.partialorder %v2510_v46, 8.507059e+37 }
0x1970   :  { %v5032_v43 = vpop.eup %5031 }
0x1971   :  { %v2502_v27 = vmul.f32 %v5032_v43, %v2485_v42  ;;  %vm2507_vm3 = vweird.f32 %v5032_v43  ;;  %v2793_v7 = vpop.permute.xlu2 %2792 }
0x1972   :  { %vm2508_vm5 = vmor %vm2506_vm4, %vm2507_vm3 }
0x1973   :  { %v2503_v3 = vsub.f32 1.0, %v2502_v27  ;;  %v4876_v27 = vpack.i.bf16 %v5789_v60, %v5783_v57 }
0x1975   :  { %v2504_v45 = vmul.f32 %v5032_v43, %v2503_v3 }
0x1977   :  { %v2505_v20 = vadd.f32 %v5032_v43, %v2504_v45 }
0x1979   :  { %v2509_v53 = vsel %vm2508_vm5, %v5032_v43, %v2505_v20  ;;  %v2683_v59 = vpop.xlane.xlu0 %2682 }
0x197a   :  { %v2514_v21 = vsel %vm2511_vm7, %v2513_v13, %v2509_v53  ;;  %5033 = vrcp.f32 %v2683_v59  ;;  %v2698_v61 = vand.u32 2147483648, %v2683_v59  ;;  %v2696_v63 = vand.u32 2147483647, %v2683_v59 }
0x197b   :  { %v2515_v55 = vmul.f32 %v5028_v2, %v2514_v21  ;;  %vm2692_vm10 = vweird.f32 %v2683_v59 }
0x197c   :  { %v2699_v1 = vor.u32 1.1754944e-38, %v2698_v61  ;;  %vm2697_vm12 = vcmp.eq.f32.partialorder %v2696_v63, 8.507059e+37 }
0x197d   :  { %4592 = vmatmul.msk.f32.vlgmr.msra.gmra.mxu1 %vm177_vm8, %v2515_v55 }
0x1980   :  { %v5034_v14 = vpop.eup %5033 }
0x1981   :  { %v2688_v48 = vmul.f32 %v5034_v14, %v2683_v59  ;;  %vm2693_vm9 = vweird.f32 %v5034_v14 }
0x1982   :  { %vm2694_vm11 = vmor %vm2692_vm10, %vm2693_vm9 }
0x1983   :  { %v2689_v49 = vsub.f32 1.0, %v2688_v48 }
0x1985   :  { %v2690_v58 = vmul.f32 %v5034_v14, %v2689_v49  ;;  %4598 = vmatmul.msk.f32.vlgmr.msrb.gmra.mxu1 %vm177_vm8, %v2638_v41 }
0x1987   :  { %v2691_v0 = vadd.f32 %v5034_v14, %v2690_v58 }
0x1989   :  { %v2695_v4 = vsel %vm2694_vm11, %v5034_v14, %v2691_v0 }
0x198a   :  { %v2700_v54 = vsel %vm2697_vm12, %v2699_v1, %v2695_v4 }
0x198b   :  { %v2701_v5 = vmul.f32 %v5030_v38, %v2700_v54 }
0x198c   :  { %v2795_v6 = vpop.permute.xlu0 %2794 }
0x198d   :  { %4599 = vmatmul.msk.f32.vlgmr.msrb.gmra.mxu3 %vm177_vm8, %v2701_v5  ;;  %4602 = vmatpush.xpose.msk.msra.mxu0 %vm177_vm8, %v2795_v6 }
0x1990   :  { %4603 = vmatmul.msk.f32.vlgmr.msra.gmra.mxu0 %vm177_vm8, %v2793_v7 }
0x1995   :  { %4605 = vmatmul.msk.f32.vlgmr.msra.gmra.mxu3 %vm177_vm8, %v2821_v8 }
0x19fa   :  { %v2565_v12 = vpop.f32.mrf.mxu1 }
0x19fb   :  { %v2568_v16 = vpack.c.bf16 %v2565_v12, %v5861_v26 }
0x19fd   :  { %4593 = vmatmul.msk.bf16.vlgmr.msrb.gmra.mxu2 %vm177_vm8, %v2568_v16 }
0x1a02   :  { %v2662_v17 = vpop.f32.mrf.mxu1 }
0x1a03   :  { %v2666_v19 = vmul.f32 0.35355338, %v2662_v17 }
0x1a05   :  { %v2668_v23 = vadd.f32 %v5813_v50, %v2666_v19 }
0x1a07   :  { %v2672_v24 = vsel %vm177_vm8, %v2668_v23, -inf }
0x1a08   :  { %2673 = vmax.xlane.f32.xlu1 %v2672_v24 }
0x1a0d   :  { %v2817_v25 = vpop.f32.mrf.mxu0 }
0x1a0e   :  { %v2848_v28 = vmul.f32 0.35355338, %v2817_v25 }
0x1a10   :  { %v5899_v30 = vpop.f32.mrf.mxu3  ;;  %v2850_v18 = vadd.f32 %v5806_v51, %v2848_v28 }
0x1a12   :  { %v2852_v31 = vsel %vm177_vm8, %v2850_v18, -inf }
0x1a13   :  { %2853 = vmax.xlane.f32.xlu0 %v2852_v31 }
0x1a18   :  { %v2845_v26 = vpop.f32.mrf.mxu3 }
0x1a19   :  { %v2849_v32 = vmul.f32 0.35355338, %v2845_v26 }
0x1a1b   :  { %v2851_v33 = vadd.f32 %v5813_v50, %v2849_v32 }
0x1a1d   :  { %v2855_v34 = vsel %vm177_vm8, %v2851_v33, -inf }
0x1a1e   :  { %2856 = vmax.xlane.f32.xlu2 %v2855_v34 }
0x1a7b   :  { %v2674_v2 = vpop.xlane.xlu1 %2673 }
0x1a7c   :  { %v2676_v35 = vsub.f32 %v2668_v23, %v2674_v2  ;;  %v4580_v2 = vld [vmem:[%s6263_s6 + $0x2c] sm:$0xf] }
0x1a7e   :  { %v2679_v62 = vmul.f32 1.442695, %v2676_v35  ;;  %v2957_v35 = vsel %vm498_vm6, %v4580_v2, 0 }
0x1a7f   :  { %2966 = vmatpush.bf16.msrb.mxu3 %v2957_v35 }
0x1a80   :  { %5035 = vpow2.f32 %v2679_v62 }
0x1a86   :  { %v5036_v29 = vpop.eup %5035  ;;  %v2854_v36 = vpop.xlane.xlu0 %2853 }
0x1a87   :  { %v2858_v37 = vsub.f32 %v2850_v18, %v2854_v36  ;;  %v2684_v38 = vsel %vm177_vm8, %v5036_v29, 0.0 }
0x1a88   :  { %2685 = vadd.xlane.f32.xlu1 %v2684_v38 }
0x1a89   :  { %v2860_v51 = vmul.f32 1.442695, %v2858_v37 }
0x1a8b   :  { %5037 = vpow2.f32 %v2860_v51  ;;  %v2584_v51 = vpop.f32.mrf.mxu2 }
0x1a91   :  { %v5038_v39 = vpop.eup %5037  ;;  %v2857_v56 = vpop.xlane.xlu2 %2856 }
0x1a92   :  { %v2859_v40 = vsub.f32 %v2851_v33, %v2857_v56  ;;  %v2864_v50 = vsel %vm177_vm8, %v5038_v39, 0.0  ;;  %v4579_v33 = vld [vmem:[%s6263_s6 + $0x28] sm:$0xf] }
0x1a93   :  { %2865 = vadd.xlane.f32.xlu2 %v2864_v50  ;;  %v2774_v34 = vsel %vm498_vm6, %v4579_v33, 0 }
0x1a94   :  { %v2862_v41 = vmul.f32 1.442695, %v2859_v40  ;;  %2783 = vmatpush.bf16.msra.mxu2 %v2774_v34  ;;  %v2605_v40 = vadd.f32 %v5891_v15, %v2584_v51  ;;  %v4832_v51 = vld [vmem:[%s6269_s12 + $0xa0] sm:$0xff] }
0x1a96   :  { %5039 = vpow2.f32 %v2862_v41  ;;  %v4905_v41 = vld [vmem:[%s6264_s7 + $0x2] ss:$0 sm:$0xff] }
0x1a9c   :  { %v5907_v42 = vpop.eup %5039 }
0x1a9d   :  { %v2867_v43 = vsel %vm177_vm8, %v5907_v42, 0.0 }
0x1a9e   :  { %2868 = vadd.xlane.f32.xlu0 %v2867_v43 }
0x1aa1   :  { %2743 = vrot.lane.b32.xlu1 %v5789_v60, %s6325_s22 }
0x1aab   :  { %4877 = vrot.lane.b32.xlu2 %v4876_v27, %s6327_s26 }
0x1afb   :  { %v2686_v3 = vpop.xlane.xlu1 %2685 }
0x1afc   :  { %5041 = vrcp.f32 %v2686_v3  ;;  %v2713_v59 = vand.u32 2147483648, %v2686_v3  ;;  %vm2707_vm14 = vweird.f32 %v2686_v3  ;;  %v2711_v21 = vand.u32 2147483647, %v2686_v3 }
0x1afe   :  { %v2714_v48 = vor.u32 1.1754944e-38, %v2713_v59  ;;  %vm2712_vm1 = vcmp.eq.f32.partialorder %v2711_v21, 8.507059e+37 }
0x1b02   :  { %v5042_v44 = vpop.eup %5041 }
0x1b03   :  { %v2703_v45 = vmul.f32 %v5042_v44, %v2686_v3  ;;  %vm2708_vm13 = vweird.f32 %v5042_v44 }
0x1b04   :  { %vm2709_vm15 = vmor %vm2707_vm14, %vm2708_vm13 }
0x1b05   :  { %v2704_v46 = vsub.f32 1.0, %v2703_v45 }
0x1b06   :  { %v2866_v20 = vpop.xlane.xlu2 %2865 }
0x1b07   :  { %v2705_v13 = vmul.f32 %v5042_v44, %v2704_v46  ;;  %5043 = vrcp.f32 %v2866_v20  ;;  %v2881_v1 = vand.u32 2147483648, %v2866_v20  ;;  %v2879_v4 = vand.u32 2147483647, %v2866_v20 }
0x1b08   :  { %vm2875_vm3 = vweird.f32 %v2866_v20 }
0x1b09   :  { %v2706_v53 = vadd.f32 %v5042_v44, %v2705_v13  ;;  %v2882_v9 = vor.u32 1.1754944e-38, %v2881_v1  ;;  %vm2880_vm5 = vcmp.eq.f32.partialorder %v2879_v4, 8.507059e+37  ;;  %v4826_v1 = vld [vmem:[%s6267_s10 + $0x20] sm:$0xff] }
0x1b0b   :  { %v2710_v14 = vsel %vm2709_vm15, %v5042_v44, %v2706_v53 }
0x1b0c   :  { %v2715_v61 = vsel %vm2712_vm1, %v2714_v48, %v2710_v14 }
0x1b0d   :  { %v5044_v55 = vpop.eup %5043  ;;  %v2716_v5 = vmul.f32 %v5036_v29, %v2715_v61 }
0x1b0e   :  { %v2871_v57 = vmul.f32 %v5044_v55, %v2866_v20  ;;  %v4878_v60 = vpop.permute.xlu2 %4877  ;;  %vm2876_vm2 = vweird.f32 %v5044_v55 }
0x1b0f   :  { %v4880_v49 = vunpack.i.h.bf16 %v4878_v60  ;;  %v4879_v7 = vunpack.i.l.bf16 %v4878_v60  ;;  %vm2877_vm4 = vmor %vm2875_vm3, %vm2876_vm2 }
0x1b10   :  { %v2872_v58 = vsub.f32 1.0, %v2871_v57 }
0x1b11   :  { %v2869_v63 = vpop.xlane.xlu0 %2868  ;;  %2947 = vmatpush.msrb.mxu0 %v4880_v49 }
0x1b12   :  { %v2873_v0 = vmul.f32 %v5044_v55, %v2872_v58  ;;  %5045 = vrcp.f32 %v2869_v63  ;;  %v2896_v23 = vand.u32 2147483648, %v2869_v63  ;;  %v2894_v25 = vand.u32 2147483647, %v2869_v63  ;;  %v4827_v58 = vld [vmem:[%s6267_s10 + $0x28] sm:$0xff] }
0x1b13   :  { %v2744_v54 = vpop.permute.xlu1 %2743  ;;  %vm2890_vm9 = vweird.f32 %v2869_v63 }
0x1b14   :  { %v2874_v6 = vadd.f32 %v5044_v55, %v2873_v0  ;;  %2764 = vmatpush.msra.mxu1 %v2744_v54  ;;  %v2897_v18 = vor.u32 1.1754944e-38, %v2896_v23  ;;  %vm2895_vm11 = vcmp.eq.f32.partialorder %v2894_v25, 8.507059e+37 }
0x1b15   :  { %4600 = vmatmul.msk.f32.vlgmr.msra.gmra.mxu1 %vm177_vm8, %v2716_v5 }
0x1b16   :  { %v2878_v8 = vsel %vm2877_vm4, %v5044_v55, %v2874_v6  ;;  %2921 = vmatpush.msrb.mxu1 %v4879_v7 }
0x1b17   :  { %v2883_v12 = vsel %vm2880_vm5, %v2882_v9, %v2878_v8 }
0x1b18   :  { %v5046_v11 = vpop.eup %5045  ;;  %v2884_v19 = vmul.f32 %v5038_v39, %v2883_v12  ;;  %v2586_v39 = vpop.f32.mrf.mxu2  ;;  %3074 = vmatpush.bf16.msra.mxu1 %v4827_v58 }
0x1b19   :  { %v2886_v16 = vmul.f32 %v5046_v11, %v2869_v63  ;;  %vm2891_vm7 = vweird.f32 %v5046_v11  ;;  %v2607_v3 = vadd.f32 %v5895_v22, %v2586_v39  ;;  %v4831_v39 = vld [vmem:[%s6269_s12 + $0x98] sm:$0xff] }
0x1b1a   :  { %vm2892_vm10 = vmor %vm2890_vm9, %vm2891_vm7 }
0x1b1b   :  { %v2887_v17 = vsub.f32 1.0, %v2886_v16 }
0x1b1c   :  { %3075 = vmatpush.bf16.msra.mxu1 %v4826_v1 }
0x1b1d   :  { %v2888_v24 = vmul.f32 %v5046_v11, %v2887_v17  ;;  %4606 = vmatmul.msk.f32.vlgmr.msrb.gmra.mxu1 %vm177_vm8, %v2884_v19 }
0x1b1f   :  { %v2889_v28 = vadd.f32 %v5046_v11, %v2888_v24 }
0x1b21   :  { %v2893_v31 = vsel %vm2892_vm10, %v5046_v11, %v2889_v28  ;;  %v4906_v28 = vld [vmem:[%s6265_s8 + $0x2] ss:$0 sm:$0xff]  ;;  %s6336_s8 = sld [smem:[#allocation17_spill]] }
0x1b22   :  { %v2898_v26 = vsel %vm2895_vm11, %v2897_v18, %v2893_v31 }
0x1b23   :  { %v2899_v32 = vmul.f32 %v5907_v42, %v2898_v26 }
0x1b25   :  { %4607 = vmatmul.msk.f32.vlgmr.msrb.gmra.mxu0 %vm177_vm8, %v2899_v32  ;;  %v4907_v32 = vld [vmem:[%s6266_s9 + $0x2] ss:$0 sm:$0xff] }
0x1b92   :  { %v2766_v62 = vpop.f32.mrf.mxu1 }
0x1b93   :  { %v2769_v29 = vpack.c.bf16 %v2766_v62, %v5899_v30 }
0x1b95   :  { %4601 = vmatmul.msk.bf16.vlgmr.msra.gmra.mxu2 %vm177_vm8, %v2769_v29 }
0x1b9a   :  { %v2923_v36 = vpop.f32.mrf.mxu1 }
0x1ba2   :  { %v2949_v37 = vpop.f32.mrf.mxu0 }
0x1ba3   :  { %v2952_v38 = vpack.c.bf16 %v2949_v37, %v2923_v36  ;;  %v4835_v36 = vld [vmem:[%s6269_s12 + $0xb8] sm:$0xff]  ;;  %v4834_v37 = vld [vmem:[%s6269_s12 + $0xb0] sm:$0xff] }
0x1ba4   :  { %3171 = vmatpush.bf16.msrb.mxu2 %v4835_v36 }
0x1ba5   :  { %4608 = vmatmul.msk.bf16.vlgmr.msrb.gmra.mxu3 %vm177_vm8, %v2952_v38  ;;  %v4833_v38 = vld [vmem:[%s6269_s12 + $0xa8] sm:$0xff] }
0x1ba8   :  { %3172 = vmatpush.bf16.msrb.mxu2 %v4834_v37 }
0x1bac   :  { %3173 = vmatpush.bf16.msrb.mxu2 %v4833_v38 }
0x1bb0   :  { %3174 = vmatpush.bf16.msrb.mxu2 %v4832_v51 }
0x1bb4   :  { %3175 = vmatpush.bf16.msrb.mxu2 %v4831_v39 }
0x1c18   :  { %v2785_v56 = vpop.f32.mrf.mxu2 }
0x1c19   :  { %v2790_v50 = vadd.f32 %v2785_v56, %v2605_v40  ;;  %v4830_v56 = vld [vmem:[%s6269_s12 + $0x90] sm:$0xff]  ;;  %v4829_v40 = vld [vmem:[%s6269_s12 + $0x88] sm:$0xff] }
0x1c1a   :  { %3176 = vmatpush.bf16.msrb.mxu2 %v4830_v56 }
0x1c1e   :  { %3177 = vmatpush.bf16.msrb.mxu2 %v4829_v40 }
0x1c20   :  { %v2787_v27 = vpop.f32.mrf.mxu2 }
0x1c21   :  { %v2791_v45 = vadd.f32 %v2787_v27, %v2607_v3 }
0x1c28   :  { %v2968_v42 = vpop.f32.mrf.mxu3 }
0x1c29   :  { %v2973_v43 = vadd.f32 %v2968_v42, %v2790_v50  ;;  %v4908_v50 = vld [vmem:[%s6268_s11 + $0x2] ss:$0 sm:$0xff] }
0x1c2b   :  { %v2980_v30 = vadd.f32 %v4905_v41, %v2973_v43 }
0x1c2d   :  { %v2982_v44 = vadd.f32 %v2980_v30, %v5773_v47 }
0x1c2f   :  { %v2988_v46 = vsel %vm68_vm0, %v2982_v44, 0.0 }
0x1c30   :  { %v2970_v20 = vpop.f32.mrf.mxu3  ;;  %2989 = vadd.xlane.f32.xlu0 %v2988_v46 }
0x1c31   :  { %v2974_v13 = vadd.f32 %v2970_v20, %v2791_v45 }
0x1c33   :  { %v2981_v15 = vadd.f32 %v4905_v41, %v2974_v13  ;;  %v4828_v41 = vld [vmem:[%s6269_s12 + $0x80] sm:$0xff] }
0x1c34   :  { %3178 = vmatpush.bf16.msrb.mxu2 %v4828_v41  ;;  %v4910_v41 = vld [vmem:[%s6271_s14 + $0x2] ss:$0 sm:$0xff] }
0x1c35   :  { %v2983_v53 = vadd.f32 %v2981_v15, %v5775_v52 }
0x1c37   :  { %v2991_v59 = vsel %vm68_vm0, %v2983_v53, 0.0 }
0x1c38   :  { %2992 = vadd.xlane.f32.xlu0 %v2991_v59 }
0x1ca3   :  { %v2990_v21 = vpop.xlane.xlu0 %2989 }
0x1ca4   :  { %v2994_v55 = vmul.f32 %v2990_v21, %v5287_v10 }
0x1ca6   :  { %v2996_v14 = vsub.f32 %v2982_v44, %v2994_v55 }
0x1ca8   :  { %v2998_v48 = vmul.f32 %v2996_v14, %v2996_v14 }
0x1caa   :  { %v3000_v22 = vsel %vm68_vm0, %v2998_v48, 0.0 }
0x1cab   :  { %3001 = vadd.xlane.f32.xlu0 %v3000_v22  ;;  %v2993_v47 = vpop.xlane.xlu0 %2992 }
0x1cac   :  { %v2995_v57 = vmul.f32 %v2993_v47, %v5287_v10 }
0x1cae   :  { %v2997_v60 = vsub.f32 %v2983_v53, %v2995_v57 }
0x1cb0   :  { %v2999_v49 = vmul.f32 %v2997_v60, %v2997_v60 }
0x1cb2   :  { %v3003_v61 = vsel %vm68_vm0, %v2999_v49, 0.0 }
0x1cb3   :  { %3004 = vadd.xlane.f32.xlu1 %v3003_v61 }
0x1d1e   :  { %v3002_v52 = vpop.xlane.xlu0 %3001 }
0x1d1f   :  { %v3006_v63 = vmul.f32 %v3002_v52, %v5287_v10  ;;  %v4909_v52 = vld [vmem:[%s6270_s13 + $0x2] ss:$0 sm:$0xff] }
0x1d21   :  { %v3008_v0 = vadd.f32 1e-12, %v3006_v63 }
0x1d23   :  { %5047 = vrsqrt.f32 %v3008_v0  ;;  %vm3016_vm13 = vweird.f32 %v3008_v0 }
0x1d26   :  { %v3005_v4 = vpop.xlane.xlu1 %3004 }
0x1d27   :  { %v3007_v54 = vmul.f32 %v3005_v4, %v5287_v10 }
0x1d29   :  { %v5048_v5 = vpop.eup %5047  ;;  %v3009_v6 = vadd.f32 1e-12, %v3007_v54 }
0x1d2a   :  { %v3011_v7 = vmul.f32 %v5048_v5, %v3008_v0  ;;  %vm3017_vm12 = vweird.f32 %v5048_v5 }
0x1d2b   :  { %5049 = vrsqrt.f32 %v3009_v6  ;;  %vm3018_vm14 = vmor %vm3016_vm13, %vm3017_vm12  ;;  %vm3026_vm1 = vweird.f32 %v3009_v6 }
0x1d2c   :  { %v3012_v8 = vmul.f32 %v5048_v5, %v3011_v7 }
0x1d2e   :  { %v3013_v9 = vmul.f32 0.5, %v3012_v8 }
0x1d30   :  { %v3014_v11 = vsub.f32 1.5, %v3013_v9 }
0x1d31   :  { %v5050_v12 = vpop.eup %5049 }
0x1d32   :  { %v3015_v16 = vmul.f32 %v5048_v5, %v3014_v11  ;;  %v3021_v17 = vmul.f32 %v5050_v12, %v3009_v6  ;;  %vm3027_vm15 = vweird.f32 %v5050_v12 }
0x1d33   :  { %vm3028_vm2 = vmor %vm3026_vm1, %vm3027_vm15 }
0x1d34   :  { %v3022_v19 = vmul.f32 %v5050_v12, %v3021_v17  ;;  %v3019_v23 = vsel %vm3018_vm14, %v5048_v5, %v3015_v16 }
0x1d35   :  { %v3030_v18 = vmul.f32 %v3019_v23, %v2996_v14 }
0x1d36   :  { %v3023_v24 = vmul.f32 0.5, %v3022_v19 }
0x1d37   :  { %v3035_v33 = vmul.f32 %v4906_v28, %v3030_v18 }
0x1d38   :  { %v3024_v25 = vsub.f32 1.5, %v3023_v24 }
0x1d39   :  { %v3040_v35 = vadd.f32 %v4907_v32, %v3035_v33 }
0x1d3a   :  { %v3025_v31 = vmul.f32 %v5050_v12, %v3024_v25 }
0x1d3c   :  { %v3029_v26 = vsel %vm3028_vm2, %v5050_v12, %v3025_v31 }
0x1d3d   :  { %v3031_v34 = vmul.f32 %v3029_v26, %v2997_v60  ;;  %v4836_v26 = vld [vmem:[%s6261_s4 + $0x30] sm:$0xff] }
0x1d3f   :  { %v3036_v2 = vmul.f32 %v4906_v28, %v3031_v34  ;;  %v4837_v28 = vld [vmem:[%s6261_s4 + $0x38] sm:$0xff] }
0x1d40   :  { %3277 = vmatpush.bf16.msra.mxu0 %v4837_v28 }
0x1d41   :  { %v3041_v62 = vadd.f32 %v4907_v32, %v3036_v2 }
0x1d43   :  { %v3042_v29 = vpack.c.bf16 %v3041_v62, %v3040_v35 }
0x1d44   :  { %3278 = vmatpush.bf16.msra.mxu0 %v4836_v26 }
0x1d45   :  { %4625 = vmatmul.msk.bf16.vlgmr.msra.gmra.mxu1 %vm68_vm0, %v3042_v29 }
0x1dc2   :  { %v3077_v42 = vpop.f32.mrf.mxu1 }
0x1dc3   :  { %v3078_v43 = vadd.f32 %v4908_v50, %v3077_v42 }
0x1dc5   :  { %v3084_v30 = vmul.f32 0.044715, %v3078_v43  ;;  %v3082_v22 = vmul.f32 0.5, %v3078_v43 }
0x1dc7   :  { %v3086_v27 = vmul.f32 %v3084_v30, %v3078_v43 }
0x1dc9   :  { %v3088_v3 = vmul.f32 %v3086_v27, %v3078_v43  ;;  %v4911_v27 = vld [vmem:[%s6272_s15 + $0x2] ss:$0 sm:$0xff] }
0x1dca   :  { %v3079_v44 = vpop.f32.mrf.mxu1 }
0x1dcb   :  { %v3090_v45 = vadd.f32 %v3088_v3, %v3078_v43  ;;  %v3080_v46 = vadd.f32 %v4908_v50, %v3079_v44 }
0x1dcd   :  { %v3085_v20 = vmul.f32 0.044715, %v3080_v46  ;;  %v3092_v13 = vmul.f32 0.7978846, %v3090_v45  ;;  %v3083_v47 = vmul.f32 0.5, %v3080_v46 }
0x1dcf   :  { %v3087_v15 = vmul.f32 %v3085_v20, %v3080_v46  ;;  %5051 = vtanh.f32 %v3092_v13 }
0x1dd1   :  { %v3089_v53 = vmul.f32 %v3087_v15, %v3080_v46  ;;  %v4912_v15 = vld [vmem:[%s6262_s5 + $0x3] ss:$0 sm:$0xff]  ;;  %s4343_s5 = sshll.u32 %s6336_s8, 4  ;;  %s4344_s5 = int_to_ptr.hbm [resolvable:$true] %s4343_s5 }
0x1dd3   :  { %v3091_v59 = vadd.f32 %v3089_v53, %v3080_v46 }
0x1dd5   :  { %v3093_v21 = vmul.f32 0.7978846, %v3091_v59  ;;  %v5052_v55 = vpop.eup %5051 }
0x1dd6   :  { %v3096_v14 = vadd.f32 1.0, %v5052_v55 }
0x1dd7   :  { %5053 = vtanh.f32 %v3093_v21 }
0x1dd8   :  { %v3098_v60 = vmul.f32 %v3096_v14, %v3082_v22 }
0x1ddd   :  { %v5054_v48 = vpop.eup %5053 }
0x1dde   :  { %v3097_v57 = vadd.f32 1.0, %v5054_v48 }
0x1de0   :  { %v3099_v49 = vmul.f32 %v3097_v57, %v3083_v47 }
0x1de2   :  { %v3100_v61 = vpack.c.bf16 %v3099_v49, %v3098_v60 }
0x1de4   :  { %3179 = vmatmul.bf16.vlgmr.msrb.gmra.mxu2 %v3100_v61 }
0x1e67   :  { %v3180_v58 = vpop.f32.mrf.mxu2 }
0x1e68   :  { %v3181_v63 = vadd.f32 %v4909_v52, %v3180_v58 }
0x1e6a   :  { %v3185_v0 = vadd.f32 %v3181_v63, %v3040_v35  ;;  %v6048_v63 = vld [vmem:[%s6320_s23 + $0x8] sm:$0xff] }
0x1e6c   :  { %v3191_v1 = vsel %vm68_vm0, %v3185_v0, 0.0 }
0x1e6d   :  { %3192 = vadd.xlane.f32.xlu2 %v3191_v1 }
0x1e6f   :  { %v3182_v4 = vpop.f32.mrf.mxu2 }
0x1e70   :  { %v3183_v54 = vadd.f32 %v4909_v52, %v3182_v4  ;;  %v6042_v52 = vld [vmem:[%s6320_s23] sm:$0xff]  ;;  %s5177_s23 = smov 8  }
0x1e72   :  { %v3186_v5 = vadd.f32 %v3183_v54, %v3041_v62 }
0x1e74   :  { %v3194_v6 = vsel %vm68_vm0, %v3186_v5, 0.0 }
0x1e75   :  { %3195 = vadd.xlane.f32.xlu0 %v3194_v6 }
0x1ee0   :  { %v3193_v7 = vpop.xlane.xlu2 %3192 }
0x1ee1   :  { %v3197_v8 = vmul.f32 %v3193_v7, %v5287_v10 }
0x1ee3   :  { %v3199_v9 = vsub.f32 %v3185_v0, %v3197_v8 }
0x1ee5   :  { %v3201_v11 = vmul.f32 %v3199_v9, %v3199_v9 }
0x1ee7   :  { %v3203_v12 = vsel %vm68_vm0, %v3201_v11, 0.0 }
0x1ee8   :  { %v3196_v16 = vpop.xlane.xlu0 %3195  ;;  %3204 = vadd.xlane.f32.xlu0 %v3203_v12 }
0x1ee9   :  { %v3198_v17 = vmul.f32 %v3196_v16, %v5287_v10 }
0x1eeb   :  { %v3200_v19 = vsub.f32 %v3186_v5, %v3198_v17 }
0x1eed   :  { %v3202_v23 = vmul.f32 %v3200_v19, %v3200_v19 }
0x1eef   :  { %v3206_v24 = vsel %vm68_vm0, %v3202_v23, 0.0 }
0x1ef0   :  { %3207 = vadd.xlane.f32.xlu0 %v3206_v24 }
0x1f5b   :  { %v3205_v25 = vpop.xlane.xlu0 %3204 }
0x1f5c   :  { %v3209_v18 = vmul.f32 %v3205_v25, %v5287_v10 }
0x1f5e   :  { %v3211_v31 = vadd.f32 1e-12, %v3209_v18 }
0x1f60   :  { %5055 = vrsqrt.f32 %v3211_v31  ;;  %vm3219_vm4 = vweird.f32 %v3211_v31 }
0x1f63   :  { %v3208_v32 = vpop.xlane.xlu0 %3207 }
0x1f64   :  { %v3210_v33 = vmul.f32 %v3208_v32, %v5287_v10 }
0x1f66   :  { %v5056_v34 = vpop.eup %5055  ;;  %v3212_v2 = vadd.f32 1e-12, %v3210_v33 }
0x1f67   :  { %v3214_v35 = vmul.f32 %v5056_v34, %v3211_v31  ;;  %vm3220_vm3 = vweird.f32 %v5056_v34 }
0x1f68   :  { %5057 = vrsqrt.f32 %v3212_v2  ;;  %vm3221_vm5 = vmor %vm3219_vm4, %vm3220_vm3  ;;  %vm3229_vm9 = vweird.f32 %v3212_v2 }
0x1f69   :  { %v3215_v62 = vmul.f32 %v5056_v34, %v3214_v35 }
0x1f6b   :  { %v3216_v29 = vmul.f32 0.5, %v3215_v62 }
0x1f6d   :  { %v3217_v36 = vsub.f32 1.5, %v3216_v29 }
0x1f6e   :  { %v5058_v37 = vpop.eup %5057 }
0x1f6f   :  { %v3218_v38 = vmul.f32 %v5056_v34, %v3217_v36  ;;  %v3224_v51 = vmul.f32 %v5058_v37, %v3212_v2  ;;  %vm3230_vm7 = vweird.f32 %v5058_v37 }
0x1f70   :  { %vm3231_vm10 = vmor %vm3229_vm9, %vm3230_vm7 }
0x1f71   :  { %v3225_v39 = vmul.f32 %v5058_v37, %v3224_v51  ;;  %v3222_v56 = vsel %vm3221_vm5, %v5056_v34, %v3218_v38 }
0x1f72   :  { %v3233_v42 = vmul.f32 %v3222_v56, %v3199_v9 }
0x1f73   :  { %v3226_v40 = vmul.f32 0.5, %v3225_v39 }
0x1f74   :  { %v3238_v3 = vmul.f32 %v4910_v41, %v3233_v42 }
0x1f75   :  { %v3227_v50 = vsub.f32 1.5, %v3226_v40 }
0x1f76   :  { %v6009_v46 = vadd.f32 %v4911_v27, %v3238_v3 }
0x1f77   :  { %v3228_v43 = vmul.f32 %v5058_v37, %v3227_v50 }
0x1f79   :  { %v3232_v30 = vsel %vm3231_vm10, %v5058_v37, %v3228_v43 }
0x1f7a   :  { %v3234_v44 = vmul.f32 %v3232_v30, %v3200_v19 }
0x1f7c   :  { %v3239_v45 = vmul.f32 %v4910_v41, %v3234_v44 }
0x1f7e   :  { %v6011_v20 = vadd.f32 %v4911_v27, %v3239_v45 }
0x1f80   :  { %v3245_v13 = vpack.c.bf16 %v6011_v20, %v6009_v46 }
0x1f82   :  { %4690 = vmatmul.msk.bf16.vlgmr.msra.gmra.mxu0 %vm68_vm0, %v3245_v13 }
0x1fff   :  { %v3280_v53 = vpop.f32.mrf.mxu0 }
0x2000   :  { %v6019_v59 = vadd.f32 %v4912_v15, %v3280_v53 }
0x2002   :  { %3451 = vrot.lane.b32.xlu2 %v6019_v59, %s6328_s20  ;;  %3291 = vrot.lane.b32.xlu1 %v6019_v59, %s6329_s30 }
0x2007   :  { %v3282_v21 = vpop.f32.mrf.mxu0 }
0x2008   :  { %v6025_v55 = vadd.f32 %v4912_v15, %v3282_v21 }
0x200a   :  { %3318 = vrot.lane.b32.xlu0 %v6025_v55, %s6329_s30  ;;  %s5175_s30 = smov [#allocation2]  }
0x200b   :  { %s4341_s10 = sshll.u32 %s5175_s30, 4  ;;  %s4342_s10 = int_to_ptr.vmem [resolvable:$true] %s4341_s10 }
0x2012   :  { %3449 = vrot.lane.b32.xlu0 %v6019_v59, %s6330_s1 }
0x205c   :  { %v3452_v22 = vpop.permute.xlu2 %3451 }
0x2074   :  { %v3292_v14 = vpop.permute.xlu1 %3291 }
0x2075   :  { %4695 = vmatpush.xpose.msk.msra.mxu3 %vm177_vm8, %v3292_v14 }
0x2078   :  { %4696 = vmatmul.msk.f32.vlgmr.msra.gmra.mxu3 %vm177_vm8, %v6019_v59 }
0x207c   :  { %v3319_v48 = vpop.permute.xlu0 %3318 }
0x207d   :  { %4697 = vmatpush.xpose.msk.msrb.mxu1 %vm177_vm8, %v3319_v48 }
0x2080   :  { %4698 = vmatmul.msk.f32.vlgmr.msrb.gmra.mxu1 %vm177_vm8, %v6025_v55 }
0x2081   :  { %4701 = vmatpush.xpose.msk.msra.mxu1 %vm177_vm8, %v3452_v22 }
0x2084   :  { %v3450_v47 = vpop.permute.xlu0 %3449 }
0x2088   :  { %4702 = vmatmul.msk.f32.vlgmr.msra.gmra.mxu1 %vm177_vm8, %v3450_v47 }
0x20fb   :  { %v3314_v57 = vpop.f32.mrf.mxu3 }
0x20fc   :  { %v3344_v60 = vmul.f32 0.35355338, %v3314_v57 }
0x20fd   :  { %v3341_v49 = vpop.f32.mrf.mxu1 }
0x20fe   :  { %v3345_v61 = vmul.f32 0.35355338, %v3341_v49  ;;  %v3346_v58 = vadd.f32 %v6042_v52, %v3344_v60 }
0x2100   :  { %v3347_v0 = vadd.f32 %v6048_v63, %v3345_v61  ;;  %v3348_v1 = vsel %vm177_vm8, %v3346_v58, -inf }
0x2101   :  { %3349 = vmax.xlane.f32.xlu2 %v3348_v1 }
0x2102   :  { %v3351_v4 = vsel %vm177_vm8, %v3347_v0, -inf }
0x2103   :  { %3352 = vmax.xlane.f32.xlu0 %v3351_v4 }
0x2105   :  { %v3474_v54 = vpop.f32.mrf.mxu1 }
0x2106   :  { %v3505_v5 = vmul.f32 0.35355338, %v3474_v54 }
0x2108   :  { %v3507_v6 = vadd.f32 %v6042_v52, %v3505_v5 }
0x210a   :  { %v3509_v7 = vsel %vm177_vm8, %v3507_v6, -inf }
0x210b   :  { %3510 = vmax.xlane.f32.xlu1 %v3509_v7 }
0x2117   :  { %3557 = vrot.lane.b32.xlu0 %v6019_v59, %s6322_s0 }
0x2119   :  { %3422 = vrot.lane.b32.xlu2 %v6025_v55, %s6331_s21 }
0x2121   :  { %3652 = vrot.lane.b32.xlu2 %v6019_v59, %s6321_s2 }
0x2124   :  { %3396 = vrot.lane.b32.xlu1 %v6019_v59, %s6331_s21  ;;  %s6332_s21 = sld [smem:[#allocation14_spill]] }
0x2129   :  { %3477 = vrot.lane.b32.xlu2 %v6025_v55, %s6330_s1 }
0x2131   :  { %3583 = vrot.lane.b32.xlu2 %v6025_v55, %s6322_s0 }
0x2139   :  { %3678 = vrot.lane.b32.xlu2 %v6025_v55, %s6323_s27 }
0x2174   :  { %v3350_v8 = vpop.xlane.xlu2 %3349 }
0x2175   :  { %v3354_v9 = vsub.f32 %v3346_v58, %v3350_v8 }
0x2176   :  { %v3353_v11 = vpop.xlane.xlu0 %3352 }
0x2177   :  { %v3356_v12 = vmul.f32 1.442695, %v3354_v9  ;;  %v3355_v16 = vsub.f32 %v3347_v0, %v3353_v11  ;;  %v4691_v11 = vld [vmem:[%s6263_s6 + $0x30] sm:$0xf] }
0x2179   :  { %5059 = vpow2.f32 %v3356_v12  ;;  %v3358_v17 = vmul.f32 1.442695, %v3355_v16  ;;  %v3634_v12 = vsel %vm498_vm6, %v4691_v11, 0 }
0x217b   :  { %5061 = vpow2.f32 %v3358_v17 }
0x217c   :  { %v3423_v19 = vpop.permute.xlu2 %3422 }
0x217d   :  { %3443 = vmatpush.msrb.mxu3 %v3423_v19 }
0x217e   :  { %v3511_v23 = vpop.xlane.xlu1 %3510 }
0x217f   :  { %v5060_v24 = vpop.eup %5059  ;;  %v3515_v25 = vsub.f32 %v3507_v6, %v3511_v23 }
0x2180   :  { %v3360_v28 = vsel %vm177_vm8, %v5060_v24, 0.0 }
0x2181   :  { %v5062_v18 = vpop.eup %5061  ;;  %v3517_v31 = vmul.f32 1.442695, %v3515_v25  ;;  %3361 = vadd.xlane.f32.xlu1 %v3360_v28 }
0x2182   :  { %v3363_v26 = vsel %vm177_vm8, %v5062_v18, 0.0 }
0x2183   :  { %5063 = vpow2.f32 %v3517_v31  ;;  %3364 = vadd.xlane.f32.xlu0 %v3363_v26 }
0x2184   :  { %v3653_v32 = vpop.permute.xlu2 %3652 }
0x2189   :  { %v6071_v33 = vpop.eup %5063  ;;  %v3558_v34 = vpop.permute.xlu0 %3557 }
0x218a   :  { %3578 = vmatpush.msra.mxu3 %v3558_v34  ;;  %v3521_v2 = vsel %vm177_vm8, %v6071_v33, 0.0 }
0x218b   :  { %3522 = vadd.xlane.f32.xlu0 %v3521_v2 }
0x218c   :  { %v6075_v35 = vpop.permute.xlu2 %3477 }
0x2194   :  { %v3584_v62 = vpop.permute.xlu2 %3583 }
0x2195   :  { %3604 = vmatpush.msrb.mxu1 %v3584_v62 }
0x2196   :  { %v3397_v29 = vpop.permute.xlu1 %3396 }
0x2197   :  { %3417 = vmatpush.msrb.mxu0 %v3397_v29 }
0x219a   :  { %3479 = vrot.lane.b32.xlu1 %v6025_v55, %s6328_s20 }
0x219f   :  { %3650 = vrot.lane.b32.xlu0 %v6019_v59, %s6323_s27  ;;  %s6337_s27 = sld [smem:[#allocation16_spill]] }
0x21f4   :  { %v3362_v36 = vpop.xlane.xlu1 %3361 }
0x21f5   :  { %5065 = vrcp.f32 %v3362_v36  ;;  %v3377_v41 = vand.u32 2147483648, %v3362_v36  ;;  %v3375_v43 = vand.u32 2147483647, %v3362_v36  ;;  %vm3371_vm12 = vweird.f32 %v3362_v36 }
0x21f6   :  { %v3365_v37 = vpop.xlane.xlu0 %3364 }
0x21f7   :  { %5067 = vrcp.f32 %v3365_v37  ;;  %v3392_v27 = vand.u32 2147483648, %v3365_v37  ;;  %v3390_v45 = vand.u32 2147483647, %v3365_v37  ;;  %v3378_v13 = vor.u32 1.1754944e-38, %v3377_v41  ;;  %v3679_v41 = vpop.permute.xlu2 %3678 }
0x21f8   :  { %vm3376_vm15 = vcmp.eq.f32.partialorder %v3375_v43, 8.507059e+37  ;;  %vm3386_vm1 = vweird.f32 %v3365_v37 }
0x21f9   :  { %v3393_v48 = vor.u32 1.1754944e-38, %v3392_v27  ;;  %vm3391_vm3 = vcmp.eq.f32.partialorder %v3390_v45, 8.507059e+37 }
0x21fb   :  { %v5066_v38 = vpop.eup %5065 }
0x21fc   :  { %v3367_v51 = vmul.f32 %v5066_v38, %v3362_v36  ;;  %vm3372_vm11 = vweird.f32 %v5066_v38 }
0x21fd   :  { %v5068_v39 = vpop.eup %5067  ;;  %vm3373_vm14 = vmor %vm3371_vm12, %vm3372_vm11 }
0x21fe   :  { %v3368_v56 = vsub.f32 1.0, %v3367_v51  ;;  %v3382_v40 = vmul.f32 %v5068_v39, %v3365_v37  ;;  %v3523_v50 = vpop.xlane.xlu0 %3522  ;;  %vm3387_vm13 = vweird.f32 %v5068_v39 }
0x21ff   :  { %5069 = vrcp.f32 %v3523_v50  ;;  %vm3388_vm2 = vmor %vm3386_vm1, %vm3387_vm13  ;;  %v3538_v58 = vand.u32 2147483648, %v3523_v50  ;;  %v3536_v1 = vand.u32 2147483647, %v3523_v50  ;;  %vm3532_vm5 = vweird.f32 %v3523_v50 }
0x2200   :  { %v3369_v42 = vmul.f32 %v5066_v38, %v3368_v56  ;;  %v3383_v30 = vsub.f32 1.0, %v3382_v40 }
0x2201   :  { %v3539_v5 = vor.u32 1.1754944e-38, %v3538_v58  ;;  %vm3537_vm9 = vcmp.eq.f32.partialorder %v3536_v1, 8.507059e+37 }
0x2202   :  { %v3370_v3 = vadd.f32 %v5066_v38, %v3369_v42  ;;  %v3384_v44 = vmul.f32 %v5068_v39, %v3383_v30 }
0x2204   :  { %v3374_v15 = vsel %vm3373_vm14, %v5066_v38, %v3370_v3  ;;  %v3385_v53 = vadd.f32 %v5068_v39, %v3384_v44 }
0x2205   :  { %v5070_v21 = vpop.eup %5069  ;;  %v3379_v14 = vsel %vm3376_vm15, %v3378_v13, %v3374_v15 }
0x2206   :  { %v3380_v22 = vmul.f32 %v5060_v24, %v3379_v14  ;;  %v3389_v47 = vsel %vm3388_vm2, %v5068_v39, %v3385_v53  ;;  %v3528_v57 = vmul.f32 %v5070_v21, %v3523_v50  ;;  %vm3533_vm4 = vweird.f32 %v5070_v21 }
0x2207   :  { %v3394_v60 = vsel %vm3391_vm3, %v3393_v48, %v3389_v47  ;;  %vm3534_vm7 = vmor %vm3532_vm5, %vm3533_vm4 }
0x2208   :  { %v3395_v49 = vmul.f32 %v5062_v18, %v3394_v60  ;;  %v3529_v61 = vsub.f32 1.0, %v3528_v57  ;;  %4699 = vmatmul.msk.f32.vlgmr.msrb.gmra.mxu0 %vm177_vm8, %v3380_v22 }
0x220a   :  { %v3530_v0 = vmul.f32 %v5070_v21, %v3529_v61  ;;  %4700 = vmatmul.msk.f32.vlgmr.msrb.gmra.mxu3 %vm177_vm8, %v3395_v49 }
0x220b   :  { %4709 = vmatpush.xpose.msk.msrb.mxu3 %vm177_vm8, %v3653_v32 }
0x220c   :  { %v3531_v4 = vadd.f32 %v5070_v21, %v3530_v0  ;;  %v3480_v54 = vpop.permute.xlu1 %3479 }
0x220d   :  { %4703 = vmatpush.xpose.msk.msra.mxu0 %vm177_vm8, %v3480_v54 }
0x220e   :  { %v3535_v6 = vsel %vm3534_vm7, %v5070_v21, %v3531_v4 }
0x220f   :  { %v3540_v7 = vsel %vm3537_vm9, %v3539_v5, %v3535_v6 }
0x2210   :  { %v3541_v8 = vmul.f32 %v6071_v33, %v3540_v7  ;;  %4704 = vmatmul.msk.f32.vlgmr.msra.gmra.mxu0 %vm177_vm8, %v6075_v35 }
0x2211   :  { %v3651_v9 = vpop.permute.xlu0 %3650  ;;  %3643 = vmatpush.bf16.msrb.mxu0 %v3634_v12 }
0x2212   :  { %4705 = vmatmul.msk.f32.vlgmr.msra.gmra.mxu3 %vm177_vm8, %v3541_v8  ;;  %v4692_v8 = vld [vmem:[%s6263_s6 + $0x34] sm:$0xf] }
0x221a   :  { %4710 = vmatmul.msk.f32.vlgmr.msrb.gmra.mxu3 %vm177_vm8, %v3651_v9  ;;  %v3614_v9 = vsel %vm498_vm6, %v4692_v8, 0 }
0x221b   :  { %3623 = vmatpush.bf16.msra.mxu2 %v3614_v9 }
0x2285   :  { %v3419_v16 = vpop.f32.mrf.mxu0 }
0x228d   :  { %v3445_v17 = vpop.f32.mrf.mxu3  ;;  %v3502_v19 = vpop.f32.mrf.mxu0 }
0x228e   :  { %v3448_v23 = vpack.c.bf16 %v3445_v17, %v3419_v16  ;;  %v3506_v24 = vmul.f32 0.35355338, %v3502_v19 }
0x2290   :  { %v3508_v25 = vadd.f32 %v6048_v63, %v3506_v24  ;;  %4708 = vmatmul.msk.bf16.vlgmr.msrb.gmra.mxu0 %vm177_vm8, %v3448_v23 }
0x2292   :  { %v3512_v28 = vsel %vm177_vm8, %v3508_v25, -inf }
0x2293   :  { %3513 = vmax.xlane.f32.xlu0 %v3512_v28 }
0x2295   :  { %v6097_v18 = vpop.f32.mrf.mxu3 }
0x229d   :  { %v3675_v31 = vpop.f32.mrf.mxu3 }
0x229e   :  { %v3706_v26 = vmul.f32 0.35355338, %v3675_v31 }
0x22a0   :  { %v3708_v32 = vadd.f32 %v6042_v52, %v3706_v26 }
0x22a2   :  { %v3710_v33 = vsel %vm177_vm8, %v3708_v32, -inf }
0x22a3   :  { %3711 = vmax.xlane.f32.xlu1 %v3710_v33 }
0x22a7   :  { %3680 = vrot.lane.b32.xlu0 %v6025_v55, %s6321_s2 }
0x22af   :  { %3863 = vrot.lane.b32.xlu0 %v6025_v55, %s6324_s24 }
0x22bc   :  { %3758 = vrot.lane.b32.xlu1 %v6019_v59, %s6325_s22 }
0x22c4   :  { %3861 = vrot.lane.b32.xlu1 %v6025_v55, %s6326_s29 }
0x2306   :  { %v3514_v34 = vpop.xlane.xlu0 %3513 }
0x2307   :  { %v3516_v2 = vsub.f32 %v3508_v25, %v3514_v34 }
0x2309   :  { %v3519_v35 = vmul.f32 1.442695, %v3516_v2 }
0x230b   :  { %5071 = vpow2.f32 %v3519_v35 }
0x230d   :  { %v6127_v12 = vpop.f32.mrf.mxu0 }
0x2311   :  { %v5072_v62 = vpop.eup %5071 }
0x2312   :  { %v3524_v29 = vsel %vm177_vm8, %v5072_v62, 0.0 }
0x2313   :  { %3525 = vadd.xlane.f32.xlu2 %v3524_v29 }
0x2315   :  { %v6131_v23 = vpop.f32.mrf.mxu0 }
0x2316   :  { %v3712_v36 = vpop.xlane.xlu1 %3711 }
0x2317   :  { %v3716_v37 = vsub.f32 %v3708_v32, %v3712_v36 }
0x2319   :  { %v3718_v38 = vmul.f32 1.442695, %v3716_v37  ;;  %v3681_v51 = vpop.permute.xlu0 %3680 }
0x231a   :  { %4711 = vmatpush.xpose.msk.msra.mxu1 %vm177_vm8, %v3681_v51 }
0x231b   :  { %5073 = vpow2.f32 %v3718_v38 }
0x2321   :  { %v5074_v39 = vpop.eup %5073  ;;  %v3864_v50 = vpop.permute.xlu0 %3863 }
0x2322   :  { %v3722_v56 = vsel %vm177_vm8, %v5074_v39, 0.0 }
0x2323   :  { %3723 = vadd.xlane.f32.xlu0 %v3722_v56 }
0x232b   :  { %3833 = vrot.lane.b32.xlu2 %v6019_v59, %s6326_s29 }
0x232e   :  { %v3759_v40 = vpop.permute.xlu1 %3758 }
0x232f   :  { %3779 = vmatpush.msra.mxu3 %v3759_v40 }
0x2331   :  { %4718 = vmatpush.xpose.msk.msrb.mxu3 %vm177_vm8, %v3864_v50 }
0x2336   :  { %v3862_v7 = vpop.permute.xlu1 %3861 }
0x2337   :  { %3835 = vrot.lane.b32.xlu0 %v6019_v59, %s6324_s24  ;;  %s5178_s24 = smov [#allocation4]  }
0x2386   :  { %v3526_v42 = vpop.xlane.xlu2 %3525 }
0x2387   :  { %5075 = vrcp.f32 %v3526_v42  ;;  %v3553_v3 = vand.u32 2147483648, %v3526_v42  ;;  %v3551_v45 = vand.u32 2147483647, %v3526_v42  ;;  %vm3547_vm11 = vweird.f32 %v3526_v42 }
0x2389   :  { %v3554_v15 = vor.u32 1.1754944e-38, %v3553_v3  ;;  %vm3552_vm13 = vcmp.eq.f32.partialorder %v3551_v45, 8.507059e+37 }
0x238d   :  { %v5076_v43 = vpop.eup %5075 }
0x238e   :  { %v3543_v30 = vmul.f32 %v5076_v43, %v3526_v42  ;;  %vm3548_vm10 = vweird.f32 %v5076_v43  ;;  %v3834_v6 = vpop.permute.xlu2 %3833 }
0x238f   :  { %vm3549_vm12 = vmor %vm3547_vm11, %vm3548_vm10 }
0x2390   :  { %v3544_v27 = vsub.f32 1.0, %v3543_v30  ;;  %v4881_v30 = vpack.i.bf16 %v6025_v55, %v6019_v59 }
0x2392   :  { %v3545_v44 = vmul.f32 %v5076_v43, %v3544_v27 }
0x2394   :  { %v3546_v13 = vadd.f32 %v5076_v43, %v3545_v44 }
0x2396   :  { %v3550_v53 = vsel %vm3549_vm12, %v5076_v43, %v3546_v13  ;;  %v3724_v21 = vpop.xlane.xlu0 %3723 }
0x2397   :  { %v3555_v14 = vsel %vm3552_vm13, %v3554_v15, %v3550_v53  ;;  %5077 = vrcp.f32 %v3724_v21  ;;  %v3739_v60 = vand.u32 2147483648, %v3724_v21  ;;  %v3737_v61 = vand.u32 2147483647, %v3724_v21 }
0x2398   :  { %v3556_v48 = vmul.f32 %v5072_v62, %v3555_v14  ;;  %vm3733_vm15 = vweird.f32 %v3724_v21 }
0x2399   :  { %v3740_v0 = vor.u32 1.1754944e-38, %v3739_v60  ;;  %vm3738_vm2 = vcmp.eq.f32.partialorder %v3737_v61, 8.507059e+37 }
0x239a   :  { %4706 = vmatmul.msk.f32.vlgmr.msrb.gmra.mxu1 %vm177_vm8, %v3556_v48 }
0x239d   :  { %v5078_v22 = vpop.eup %5077 }
0x239e   :  { %v3729_v47 = vmul.f32 %v5078_v22, %v3724_v21  ;;  %vm3734_vm14 = vweird.f32 %v5078_v22 }
0x239f   :  { %vm3735_vm1 = vmor %vm3733_vm15, %vm3734_vm14 }
0x23a0   :  { %v3730_v57 = vsub.f32 1.0, %v3729_v47 }
0x23a2   :  { %v3731_v49 = vmul.f32 %v5078_v22, %v3730_v57  ;;  %4712 = vmatmul.msk.f32.vlgmr.msra.gmra.mxu1 %vm177_vm8, %v3679_v41 }
0x23a4   :  { %v3732_v58 = vadd.f32 %v5078_v22, %v3731_v49 }
0x23a6   :  { %v3736_v1 = vsel %vm3735_vm1, %v5078_v22, %v3732_v58 }
0x23a7   :  { %v3741_v4 = vsel %vm3738_vm2, %v3740_v0, %v3736_v1 }
0x23a8   :  { %v3742_v54 = vmul.f32 %v5074_v39, %v3741_v4 }
0x23a9   :  { %v3836_v5 = vpop.permute.xlu0 %3835 }
0x23aa   :  { %4713 = vmatmul.msk.f32.vlgmr.msra.gmra.mxu3 %vm177_vm8, %v3742_v54  ;;  %4716 = vmatpush.xpose.msk.msra.mxu0 %vm177_vm8, %v3836_v5 }
0x23ad   :  { %4717 = vmatmul.msk.f32.vlgmr.msra.gmra.mxu0 %vm177_vm8, %v3834_v6 }
0x23b2   :  { %4719 = vmatmul.msk.f32.vlgmr.msrb.gmra.mxu3 %vm177_vm8, %v3862_v7 }
0x2417   :  { %v3606_v11 = vpop.f32.mrf.mxu1 }
0x2418   :  { %v3609_v16 = vpack.c.bf16 %v3606_v11, %v6097_v18 }
0x241a   :  { %4707 = vmatmul.msk.bf16.vlgmr.msra.gmra.mxu2 %vm177_vm8, %v3609_v16 }
0x241f   :  { %v3703_v17 = vpop.f32.mrf.mxu1 }
0x2420   :  { %v3707_v19 = vmul.f32 0.35355338, %v3703_v17 }
0x2422   :  { %v3709_v24 = vadd.f32 %v6048_v63, %v3707_v19 }
0x2424   :  { %v3713_v25 = vsel %vm177_vm8, %v3709_v24, -inf }
0x2425   :  { %3714 = vmax.xlane.f32.xlu1 %v3713_v25 }
0x242a   :  { %v3858_v28 = vpop.f32.mrf.mxu0 }
0x242b   :  { %v3889_v31 = vmul.f32 0.35355338, %v3858_v28 }
0x242d   :  { %v3891_v26 = vadd.f32 %v6042_v52, %v3889_v31  ;;  %v6136_v32 = vpop.f32.mrf.mxu3 }
0x242f   :  { %v3893_v33 = vsel %vm177_vm8, %v3891_v26, -inf }
0x2430   :  { %3894 = vmax.xlane.f32.xlu0 %v3893_v33 }
0x2435   :  { %v3886_v18 = vpop.f32.mrf.mxu3 }
0x2436   :  { %v3890_v34 = vmul.f32 0.35355338, %v3886_v18 }
0x2438   :  { %v3892_v2 = vadd.f32 %v6048_v63, %v3890_v34 }
0x243a   :  { %v3896_v35 = vsel %vm177_vm8, %v3892_v2, -inf }
0x243b   :  { %3897 = vmax.xlane.f32.xlu2 %v3896_v35 }
0x2498   :  { %v3715_v62 = vpop.xlane.xlu1 %3714 }
0x2499   :  { %v3717_v29 = vsub.f32 %v3709_v24, %v3715_v62  ;;  %v4694_v62 = vld [vmem:[%s6263_s6 + $0x3c] sm:$0xf] }
0x249b   :  { %v3720_v36 = vmul.f32 1.442695, %v3717_v29  ;;  %v3998_v29 = vsel %vm498_vm6, %v4694_v62, 0 }
0x249c   :  { %4007 = vmatpush.bf16.msra.mxu3 %v3998_v29 }
0x249d   :  { %5079 = vpow2.f32 %v3720_v36 }
0x24a3   :  { %v5080_v37 = vpop.eup %5079  ;;  %v3895_v38 = vpop.xlane.xlu0 %3894 }
0x24a4   :  { %v3899_v51 = vsub.f32 %v3891_v26, %v3895_v38  ;;  %v3725_v52 = vsel %vm177_vm8, %v5080_v37, 0.0 }
0x24a5   :  { %3726 = vadd.xlane.f32.xlu1 %v3725_v52 }
0x24a6   :  { %v3901_v39 = vmul.f32 1.442695, %v3899_v51 }
0x24a8   :  { %5081 = vpow2.f32 %v3901_v39  ;;  %v3625_v39 = vpop.f32.mrf.mxu2 }
0x24ae   :  { %v5082_v56 = vpop.eup %5081  ;;  %v3898_v40 = vpop.xlane.xlu2 %3897 }
0x24af   :  { %v3900_v50 = vsub.f32 %v3892_v2, %v3898_v40  ;;  %v3905_v63 = vsel %vm177_vm8, %v5082_v56, 0.0  ;;  %v4693_v2 = vld [vmem:[%s6263_s6 + $0x38] sm:$0xf]  ;;  %s6338_s6 = sld [smem:[#allocation18_spill]] }
0x24b0   :  { %3906 = vadd.xlane.f32.xlu0 %v3905_v63  ;;  %v3815_v35 = vsel %vm498_vm6, %v4693_v2, 0 }
0x24b1   :  { %v3903_v41 = vmul.f32 1.442695, %v3900_v50  ;;  %3824 = vmatpush.bf16.msrb.mxu2 %v3815_v35  ;;  %v3646_v50 = vadd.f32 %v6127_v12, %v3625_v39  ;;  %v4844_v39 = vld [vmem:[%s6269_s12 + $0xe0] sm:$0xff] }
0x24b3   :  { %5083 = vpow2.f32 %v3903_v41  ;;  %v4913_v41 = vld [vmem:[%s6264_s7 + $0x3] ss:$0 sm:$0xff] }
0x24b5   :  { %s4357_s20 = sshll.u32 %s6338_s6, 4  ;;  %s4358_s20 = int_to_ptr.hbm [resolvable:$true] %s4357_s20 }
0x24b9   :  { %v6143_v42 = vpop.eup %5083 }
0x24ba   :  { %v3908_v43 = vsel %vm177_vm8, %v6143_v42, 0.0 }
0x24bb   :  { %3909 = vadd.xlane.f32.xlu2 %v3908_v43 }
0x24be   :  { %3784 = vrot.lane.b32.xlu1 %v6025_v55, %s6325_s22  ;;  %s4355_s22 = sshll.u32 %s5178_s24, 4  ;;  %s4356_s22 = int_to_ptr.vmem [resolvable:$true] %s4355_s22 }
0x24c4   :  { %4882 = vrot.lane.b32.xlu0 %v4881_v30, %s6327_s26 }
0x2518   :  { %v3727_v27 = vpop.xlane.xlu1 %3726 }
0x2519   :  { %5085 = vrcp.f32 %v3727_v27  ;;  %v3754_v21 = vand.u32 2147483648, %v3727_v27  ;;  %vm3748_vm4 = vweird.f32 %v3727_v27  ;;  %v3752_v14 = vand.u32 2147483647, %v3727_v27 }
0x251b   :  { %v3755_v47 = vor.u32 1.1754944e-38, %v3754_v21  ;;  %vm3753_vm7 = vcmp.eq.f32.partialorder %v3752_v14, 8.507059e+37 }
0x251f   :  { %v5086_v3 = vpop.eup %5085 }
0x2520   :  { %v3744_v44 = vmul.f32 %v5086_v3, %v3727_v27  ;;  %vm3749_vm3 = vweird.f32 %v5086_v3 }
0x2521   :  { %vm3750_vm5 = vmor %vm3748_vm4, %vm3749_vm3 }
0x2522   :  { %v3745_v45 = vsub.f32 1.0, %v3744_v44 }
0x2523   :  { %v3907_v13 = vpop.xlane.xlu0 %3906 }
0x2524   :  { %v3746_v15 = vmul.f32 %v5086_v3, %v3745_v45  ;;  %5087 = vrcp.f32 %v3907_v13  ;;  %v3922_v61 = vand.u32 2147483648, %v3907_v13  ;;  %v3920_v0 = vand.u32 2147483647, %v3907_v13 }
0x2525   :  { %vm3916_vm10 = vweird.f32 %v3907_v13 }
0x2526   :  { %v3747_v53 = vadd.f32 %v5086_v3, %v3746_v15  ;;  %v3923_v5 = vor.u32 1.1754944e-38, %v3922_v61  ;;  %vm3921_vm12 = vcmp.eq.f32.partialorder %v3920_v0, 8.507059e+37  ;;  %v4838_v0 = vld [vmem:[%s6332_s21 + $0x30] sm:$0xff] }
0x2528   :  { %v3751_v22 = vsel %vm3750_vm5, %v5086_v3, %v3747_v53 }
0x2529   :  { %v3756_v55 = vsel %vm3753_vm7, %v3755_v47, %v3751_v22 }
0x252a   :  { %v5088_v48 = vpop.eup %5087  ;;  %v3757_v58 = vmul.f32 %v5080_v37, %v3756_v55 }
0x252b   :  { %v3912_v59 = vmul.f32 %v5088_v48, %v3907_v13  ;;  %vm3917_vm9 = vweird.f32 %v5088_v48 }
0x252c   :  { %vm3918_vm11 = vmor %vm3916_vm10, %vm3917_vm9 }
0x252d   :  { %v3913_v57 = vsub.f32 1.0, %v3912_v59 }
0x252e   :  { %v3910_v60 = vpop.xlane.xlu2 %3909 }
0x252f   :  { %v3914_v49 = vmul.f32 %v5088_v48, %v3913_v57  ;;  %5089 = vrcp.f32 %v3910_v60  ;;  %v3937_v24 = vand.u32 2147483648, %v3910_v60  ;;  %v3935_v28 = vand.u32 2147483647, %v3910_v60 }
0x2530   :  { %v3785_v1 = vpop.permute.xlu1 %3784  ;;  %vm3931_vm14 = vweird.f32 %v3910_v60 }
0x2531   :  { %v3915_v4 = vadd.f32 %v5088_v48, %v3914_v49  ;;  %3805 = vmatpush.msrb.mxu1 %v3785_v1  ;;  %v3938_v26 = vor.u32 1.1754944e-38, %v3937_v24  ;;  %vm3936_vm1 = vcmp.eq.f32.partialorder %v3935_v28, 8.507059e+37  ;;  %v4839_v49 = vld [vmem:[%s6332_s21 + $0x38] sm:$0xff] }
0x2532   :  { %4714 = vmatmul.msk.f32.vlgmr.msrb.gmra.mxu1 %vm177_vm8, %v3757_v58 }
0x2533   :  { %v3919_v54 = vsel %vm3918_vm11, %v5088_v48, %v3915_v4 }
0x2534   :  { %v3924_v7 = vsel %vm3921_vm12, %v3923_v5, %v3919_v54 }
0x2535   :  { %v5090_v6 = vpop.eup %5089  ;;  %v3925_v17 = vmul.f32 %v5082_v56, %v3924_v7  ;;  %v3627_v56 = vpop.f32.mrf.mxu2 }
0x2536   :  { %v3927_v8 = vmul.f32 %v5090_v6, %v3910_v60  ;;  %v4883_v9 = vpop.permute.xlu0 %4882  ;;  %vm3932_vm13 = vweird.f32 %v5090_v6  ;;  %v3648_v27 = vadd.f32 %v6131_v23, %v3627_v56  ;;  %v4843_v56 = vld [vmem:[%s6269_s12 + $0xd8] sm:$0xff] }
0x2537   :  { %v4885_v11 = vunpack.i.h.bf16 %v4883_v9  ;;  %v4884_v16 = vunpack.i.l.bf16 %v4883_v9  ;;  %vm3933_vm15 = vmor %vm3931_vm14, %vm3932_vm13  ;;  %vm4303_vm14 = vcmask 1041409  }
0x2538   :  { %v3928_v19 = vsub.f32 1.0, %v3927_v8 }
0x2539   :  { %3962 = vmatpush.msra.mxu1 %v4884_v16  ;;  %3988 = vmatpush.msrb.mxu0 %v4885_v11 }
0x253a   :  { %v3929_v25 = vmul.f32 %v5090_v6, %v3928_v19  ;;  %4720 = vmatmul.msk.f32.vlgmr.msra.gmra.mxu1 %vm177_vm8, %v3925_v17 }
0x253b   :  { %4115 = vmatpush.bf16.msrb.mxu1 %v4839_v49 }
0x253c   :  { %v3930_v31 = vadd.f32 %v5090_v6, %v3929_v25 }
0x253e   :  { %v3934_v33 = vsel %vm3933_vm15, %v5090_v6, %v3930_v31  ;;  %v4914_v31 = vld [vmem:[%s6333_s28 + $0x3] ss:$0 sm:$0xff] }
0x253f   :  { %v3939_v18 = vsel %vm3936_vm1, %v3938_v26, %v3934_v33  ;;  %4116 = vmatpush.bf16.msrb.mxu1 %v4838_v0 }
0x2540   :  { %v3940_v34 = vmul.f32 %v6143_v42, %v3939_v18 }
0x2542   :  { %4721 = vmatmul.msk.f32.vlgmr.msrb.gmra.mxu0 %vm177_vm8, %v3940_v34  ;;  %v4915_v34 = vld [vmem:[%s6334_s16 + $0x3] ss:$0 sm:$0xff] }
0x25af   :  { %v3807_v36 = vpop.f32.mrf.mxu1 }
0x25b0   :  { %v3810_v37 = vpack.c.bf16 %v3807_v36, %v6136_v32 }
0x25b2   :  { %4715 = vmatmul.msk.bf16.vlgmr.msrb.gmra.mxu2 %vm177_vm8, %v3810_v37 }
0x25b7   :  { %v3964_v38 = vpop.f32.mrf.mxu1 }
0x25bf   :  { %v3990_v51 = vpop.f32.mrf.mxu0 }
0x25c0   :  { %v3993_v52 = vpack.c.bf16 %v3990_v51, %v3964_v38  ;;  %v4847_v38 = vld [vmem:[%s6269_s12 + $0xf8] sm:$0xff]  ;;  %v4846_v51 = vld [vmem:[%s6269_s12 + $0xf0] sm:$0xff] }
0x25c1   :  { %4212 = vmatpush.bf16.msra.mxu2 %v4847_v38 }
0x25c2   :  { %4722 = vmatmul.msk.bf16.vlgmr.msra.gmra.mxu3 %vm177_vm8, %v3993_v52  ;;  %v4845_v52 = vld [vmem:[%s6269_s12 + $0xe8] sm:$0xff] }
0x25c5   :  { %4213 = vmatpush.bf16.msra.mxu2 %v4846_v51 }
0x25c9   :  { %4214 = vmatpush.bf16.msra.mxu2 %v4845_v52 }
0x25cd   :  { %4215 = vmatpush.bf16.msra.mxu2 %v4844_v39 }
0x25d1   :  { %4216 = vmatpush.bf16.msra.mxu2 %v4843_v56  ;;  %v4918_v56 = vld [vmem:[%s6271_s14 + $0x3] ss:$0 sm:$0xff] }
0x2635   :  { %v3826_v40 = vpop.f32.mrf.mxu2 }
0x2636   :  { %v3831_v63 = vadd.f32 %v3826_v40, %v3646_v50  ;;  %v4842_v40 = vld [vmem:[%s6269_s12 + $0xd0] sm:$0xff]  ;;  %v4841_v50 = vld [vmem:[%s6269_s12 + $0xc8] sm:$0xff] }
0x2637   :  { %4217 = vmatpush.bf16.msra.mxu2 %v4842_v40 }
0x263b   :  { %4218 = vmatpush.bf16.msra.mxu2 %v4841_v50  ;;  %v4919_v50 = vld [vmem:[%s6272_s15 + $0x3] ss:$0 sm:$0xff] }
0x263d   :  { %v3828_v30 = vpop.f32.mrf.mxu2 }
0x263e   :  { %v3832_v44 = vadd.f32 %v3828_v30, %v3648_v27 }
0x2645   :  { %v4009_v42 = vpop.f32.mrf.mxu3 }
0x2646   :  { %v4014_v43 = vadd.f32 %v4009_v42, %v3831_v63  ;;  %v4916_v63 = vld [vmem:[%s6268_s11 + $0x3] ss:$0 sm:$0xff] }
0x2648   :  { %v4021_v32 = vadd.f32 %v4913_v41, %v4014_v43 }
0x264a   :  { %v4023_v3 = vadd.f32 %v4021_v32, %v6009_v46 }
0x264c   :  { %v4029_v45 = vsel %vm68_vm0, %v4023_v3, 0.0 }
0x264d   :  { %v4011_v13 = vpop.f32.mrf.mxu3  ;;  %4030 = vadd.xlane.f32.xlu2 %v4029_v45 }
0x264e   :  { %v4015_v15 = vadd.f32 %v4011_v13, %v3832_v44 }
0x2650   :  { %v4022_v12 = vadd.f32 %v4913_v41, %v4015_v15  ;;  %v4840_v41 = vld [vmem:[%s6269_s12 + $0xc0] sm:$0xff] }
0x2651   :  { %4219 = vmatpush.bf16.msra.mxu2 %v4840_v41 }
0x2652   :  { %v4024_v53 = vadd.f32 %v4022_v12, %v6011_v20 }
0x2654   :  { %v4032_v21 = vsel %vm68_vm0, %v4024_v53, 0.0 }
0x2655   :  { %4033 = vadd.xlane.f32.xlu2 %v4032_v21 }
0x26c0   :  { %v4031_v14 = vpop.xlane.xlu2 %4030 }
0x26c1   :  { %v4035_v48 = vmul.f32 %v4031_v14, %v5287_v10 }
0x26c3   :  { %v4037_v22 = vsub.f32 %v4023_v3, %v4035_v48 }
0x26c5   :  { %v4039_v47 = vmul.f32 %v4037_v22, %v4037_v22 }
0x26c7   :  { %v4041_v23 = vsel %vm68_vm0, %v4039_v47, 0.0 }
0x26c8   :  { %4042 = vadd.xlane.f32.xlu2 %v4041_v23  ;;  %v4034_v46 = vpop.xlane.xlu2 %4033 }
0x26c9   :  { %v4036_v59 = vmul.f32 %v4034_v46, %v5287_v10 }
0x26cb   :  { %v4038_v55 = vsub.f32 %v4024_v53, %v4036_v59 }
0x26cd   :  { %v4040_v57 = vmul.f32 %v4038_v55, %v4038_v55 }
0x26cf   :  { %v4044_v60 = vsel %vm68_vm0, %v4040_v57, 0.0 }
0x26d0   :  { %4045 = vadd.xlane.f32.xlu0 %v4044_v60 }
0x273b   :  { %v4043_v20 = vpop.xlane.xlu2 %4042 }
0x273c   :  { %v4047_v61 = vmul.f32 %v4043_v20, %v5287_v10  ;;  %v4917_v20 = vld [vmem:[%s6270_s13 + $0x3] ss:$0 sm:$0xff] }
0x273e   :  { %v4049_v58 = vadd.f32 1e-12, %v4047_v61 }
0x2740   :  { %5091 = vrsqrt.f32 %v4049_v58  ;;  %vm4057_vm6 = vweird.f32 %v4049_v58 }
0x2743   :  { %v4046_v1 = vpop.xlane.xlu0 %4045 }
0x2744   :  { %v4048_v4 = vmul.f32 %v4046_v1, %v5287_v10 }
0x2746   :  { %v5092_v54 = vpop.eup %5091  ;;  %v4050_v5 = vadd.f32 1e-12, %v4048_v4 }
0x2747   :  { %v4052_v6 = vmul.f32 %v5092_v54, %v4049_v58  ;;  %vm4058_vm8 = vweird.f32 %v5092_v54 }
0x2748   :  { %5093 = vrsqrt.f32 %v4050_v5  ;;  %vm4059_vm2 = vmor %vm4057_vm6, %vm4058_vm8  ;;  %vm4067_vm4 = vweird.f32 %v4050_v5 }
0x2749   :  { %v4053_v7 = vmul.f32 %v5092_v54, %v4052_v6 }
0x274b   :  { %v4054_v8 = vmul.f32 0.5, %v4053_v7 }
0x274d   :  { %v4055_v9 = vsub.f32 1.5, %v4054_v8 }
0x274e   :  { %v5094_v11 = vpop.eup %5093 }
0x274f   :  { %v4056_v16 = vmul.f32 %v5092_v54, %v4055_v9  ;;  %v4062_v17 = vmul.f32 %v5094_v11, %v4050_v5  ;;  %vm4068_vm3 = vweird.f32 %v5094_v11 }
0x2750   :  { %vm4069_vm5 = vmor %vm4067_vm4, %vm4068_vm3 }
0x2751   :  { %v4063_v19 = vmul.f32 %v5094_v11, %v4062_v17  ;;  %v4060_v24 = vsel %vm4059_vm2, %v5092_v54, %v4056_v16 }
0x2752   :  { %v4071_v26 = vmul.f32 %v4060_v24, %v4037_v22 }
0x2753   :  { %v4064_v25 = vmul.f32 0.5, %v4063_v19 }
0x2754   :  { %v4076_v2 = vmul.f32 %v4914_v31, %v4071_v26 }
0x2755   :  { %v4065_v28 = vsub.f32 1.5, %v4064_v25 }
0x2756   :  { %v4081_v29 = vadd.f32 %v4915_v34, %v4076_v2 }
0x2757   :  { %v4066_v33 = vmul.f32 %v5094_v11, %v4065_v28 }
0x2759   :  { %v4070_v18 = vsel %vm4069_vm5, %v5094_v11, %v4066_v33  ;;  %v4849_v33 = vld [vmem:[%s6335_s25 + $0x8] sm:$0xff] }
0x275a   :  { %v4072_v35 = vmul.f32 %v4070_v18, %v4038_v55  ;;  %4327 = vmatpush.bf16.msra.mxu0 %v4849_v33  ;;  %v4848_v18 = vld [vmem:[%s6335_s25] sm:$0xff] }
0x275c   :  { %v4077_v62 = vmul.f32 %v4914_v31, %v4072_v35 }
0x275e   :  { %v4082_v36 = vadd.f32 %v4915_v34, %v4077_v62  ;;  %4328 = vmatpush.bf16.msra.mxu0 %v4848_v18 }
0x2760   :  { %v4083_v37 = vpack.c.bf16 %v4082_v36, %v4081_v29 }
0x2762   :  { %4739 = vmatmul.msk.bf16.vlgmr.msrb.gmra.mxu1 %vm68_vm0, %v4083_v37 }
0x27df   :  { %v4118_v42 = vpop.f32.mrf.mxu1 }
0x27e0   :  { %v4119_v43 = vadd.f32 %v4916_v63, %v4118_v42 }
0x27e2   :  { %v4125_v32 = vmul.f32 0.044715, %v4119_v43  ;;  %v4123_v23 = vmul.f32 0.5, %v4119_v43 }
0x27e4   :  { %v4127_v30 = vmul.f32 %v4125_v32, %v4119_v43 }
0x27e6   :  { %v4129_v27 = vmul.f32 %v4127_v30, %v4119_v43 }
0x27e7   :  { %v4120_v3 = vpop.f32.mrf.mxu1 }
0x27e8   :  { %v4131_v44 = vadd.f32 %v4129_v27, %v4119_v43  ;;  %v4121_v45 = vadd.f32 %v4916_v63, %v4120_v3 }
0x27ea   :  { %v4126_v13 = vmul.f32 0.044715, %v4121_v45  ;;  %v4133_v15 = vmul.f32 0.7978846, %v4131_v44  ;;  %v4124_v46 = vmul.f32 0.5, %v4121_v45 }
0x27ec   :  { %v4128_v12 = vmul.f32 %v4126_v13, %v4121_v45  ;;  %5095 = vtanh.f32 %v4133_v15 }
0x27ee   :  { %v4130_v53 = vmul.f32 %v4128_v12, %v4121_v45 }
0x27f0   :  { %v4132_v21 = vadd.f32 %v4130_v53, %v4121_v45 }
0x27f2   :  { %v4134_v14 = vmul.f32 0.7978846, %v4132_v21  ;;  %v5096_v48 = vpop.eup %5095 }
0x27f3   :  { %v4137_v22 = vadd.f32 1.0, %v5096_v48 }
0x27f4   :  { %5097 = vtanh.f32 %v4134_v14 }
0x27f5   :  { %v4139_v55 = vmul.f32 %v4137_v22, %v4123_v23  ;;  %v4920_v22 = vld [vmem:[%s6337_s27] ss:$0 sm:$0xff] }
0x27fa   :  { %v5098_v47 = vpop.eup %5097 }
0x27fb   :  { %v4138_v59 = vadd.f32 1.0, %v5098_v47 }
0x27fd   :  { %v4140_v57 = vmul.f32 %v4138_v59, %v4124_v46 }
0x27ff   :  { %v4141_v60 = vpack.c.bf16 %v4140_v57, %v4139_v55 }
0x2801   :  { %4220 = vmatmul.bf16.vlgmr.msra.gmra.mxu2 %v4141_v60 }
0x2884   :  { %v4221_v49 = vpop.f32.mrf.mxu2 }
0x2885   :  { %v4222_v61 = vadd.f32 %v4917_v20, %v4221_v49 }
0x2887   :  { %v4226_v58 = vadd.f32 %v4222_v61, %v4081_v29 }
0x2889   :  { %v4232_v0 = vsel %vm68_vm0, %v4226_v58, 0.0 }
0x288a   :  { %4233 = vadd.xlane.f32.xlu2 %v4232_v0 }
0x288c   :  { %v4223_v1 = vpop.f32.mrf.mxu2 }
0x288d   :  { %v4224_v4 = vadd.f32 %v4917_v20, %v4223_v1 }
0x288f   :  { %v4227_v54 = vadd.f32 %v4224_v4, %v4082_v36 }
0x2891   :  { %v4235_v5 = vsel %vm68_vm0, %v4227_v54, 0.0 }
0x2892   :  { %4236 = vadd.xlane.f32.xlu1 %v4235_v5 }
0x28fd   :  { %v4234_v6 = vpop.xlane.xlu2 %4233 }
0x28fe   :  { %v4238_v9 = vmul.f32 %v4234_v6, %v5287_v10 }
0x2900   :  { %v4240_v17 = vsub.f32 %v4226_v58, %v4238_v9 }
0x2902   :  { %v4242_v24 = vmul.f32 %v4240_v17, %v4240_v17 }
0x2904   :  { %v4244_v25 = vsel %vm68_vm0, %v4242_v24, 0.0 }
0x2905   :  { %v4237_v7 = vpop.xlane.xlu1 %4236 }
0x2906   :  { %v4239_v8 = vmul.f32 %v4237_v7, %v5287_v10 }
0x2908   :  { %v4241_v11 = vsub.f32 %v4227_v54, %v4239_v8 }
0x290a   :  { %v4243_v16 = vmul.f32 %v4241_v11, %v4241_v11 }
0x290c   :  { %v4247_v19 = vsel %vm68_vm0, %v4243_v16, 0.0 }
0x290d   :  { %4248 = vadd.xlane.f32.xlu2 %v4247_v19 }
0x2915   :  { %4245 = vadd.xlane.f32.xlu2 %v4244_v25 }
0x2980   :  { %v4249_v28 = vpop.xlane.xlu2 %4248 }
0x2981   :  { %v4251_v31 = vmul.f32 %v4249_v28, %v5287_v10 }
0x2983   :  { %v4253_v26 = vadd.f32 1e-12, %v4251_v31 }
0x2985   :  { %5099 = vrsqrt.f32 %v4253_v26  ;;  %vm4270_vm9 = vweird.f32 %v4253_v26 }
0x2988   :  { %v4246_v34 = vpop.xlane.xlu2 %4245 }
0x2989   :  { %v4250_v2 = vmul.f32 %v4246_v34, %v5287_v10 }
0x298b   :  { %v5100_v35 = vpop.eup %5099  ;;  %v4252_v62 = vadd.f32 1e-12, %v4250_v2 }
0x298c   :  { %v4265_v29 = vmul.f32 %v5100_v35, %v4253_v26  ;;  %vm4271_vm7 = vweird.f32 %v5100_v35 }
0x298d   :  { %5101 = vrsqrt.f32 %v4252_v62  ;;  %vm4272_vm10 = vmor %vm4270_vm9, %vm4271_vm7  ;;  %vm4260_vm12 = vweird.f32 %v4252_v62 }
0x298e   :  { %v4266_v36 = vmul.f32 %v5100_v35, %v4265_v29 }
0x2990   :  { %v4267_v37 = vmul.f32 0.5, %v4266_v36 }
0x2992   :  { %v4268_v38 = vsub.f32 1.5, %v4267_v37 }
0x2993   :  { %v5102_v51 = vpop.eup %5101 }
0x2994   :  { %v4269_v52 = vmul.f32 %v5100_v35, %v4268_v38  ;;  %v4255_v39 = vmul.f32 %v5102_v51, %v4252_v62  ;;  %vm4261_vm11 = vweird.f32 %v5102_v51 }
0x2995   :  { %vm4262_vm13 = vmor %vm4260_vm12, %vm4261_vm11 }
0x2996   :  { %v4273_v40 = vsel %vm4272_vm10, %v5100_v35, %v4269_v52  ;;  %v4256_v10 = vmul.f32 %v5102_v51, %v4255_v39 }
0x2997   :  { %v4275_v63 = vmul.f32 %v4273_v40, %v4241_v11 }
0x2998   :  { %v4257_v41 = vmul.f32 0.5, %v4256_v10 }
0x2999   :  { %v4280_v42 = vmul.f32 %v4918_v56, %v4275_v63 }
0x299a   :  { %v4258_v43 = vsub.f32 1.5, %v4257_v41 }
0x299b   :  { %v4285_v32 = vadd.f32 %v4919_v50, %v4280_v42 }
0x299c   :  { %v4259_v30 = vmul.f32 %v5102_v51, %v4258_v43 }
0x299d   :  { %4287 = vst.msk [vmem:[#allocation2 + $0x8] sm:$0xff] %vm68_vm0, %v4285_v32  ;;  %v4289_v3 = vpack.c.bf16 %v4285_v32, %v4285_v32 }
0x299e   :  { %v4263_v27 = vsel %vm4262_vm13, %v5102_v51, %v4259_v30 }
0x299f   :  { %v4274_v44 = vmul.f32 %v4263_v27, %v4240_v17  ;;  %v4301_v13 = vunpack.c.l.b16 %v4289_v3 }
0x29a1   :  { %v4279_v45 = vmul.f32 %v4918_v56, %v4274_v44  ;;  %v4302_v53 = vrot.slane %v4301_v13, 7 }
0x29a3   :  { %v4284_v15 = vadd.f32 %v4919_v50, %v4279_v45 }
0x29a5   :  { %v4288_v12 = vpack.c.bf16 %v4284_v15, %v4284_v15  ;;  %4286 = vst.msk [vmem:[#allocation2] sm:$0xff] %vm68_vm0, %v4284_v15 }
0x29a6   :  { %4349 = dma.vmem_to_hbm [thread:$0]  %s4342_s10, 256, %s4344_s5, [#allocation3], %s5176_s17, %s5176_s17, %s5177_s23  }
0x29a7   :  { %v4300_v21 = vunpack.c.l.b16 %v4288_v12 }
0x29a9   :  { %v4304_v14 = vsel %vm4303_vm14, %v4302_v53, %v4300_v21 }
0x29aa   :  { %v4305_v48 = vpack.c.b16 %v4304_v14, %v4304_v14 }
0x29ac   :  { %4799 = vmatmul.msk.bf16.vlgmr.msra.gmra.mxu0 %vm68_vm0, %v4305_v48  ;;  %vm4335_vm0 = vcmask 254976  }
0x2a29   :  { %v4330_v47 = vpop.f32.mrf.mxu0 }
0x2a2a   :  { %v4331_v23 = vadd.f32 %v4920_v22, %v4330_v47 }
0x2a2c   :  { %5103 = vtanh.f32 %v4331_v23 }
0x2a31   :  { %v4332_v46 = vpop.f32.mrf.mxu0 }
0x2a32   :  { %v5104_v59 = vpop.eup %5103 }
0x2a33   :  { %4336 = vst.msk [vmem:[#allocation4] sm:$0x3] %vm4335_vm0, %v5104_v59 }
0x2a34   :  { %4360 = dma.vmem_to_hbm [thread:$0]  %s4356_s22, 32, %s4358_s20, [#allocation5]  }
0x2a35   :  { %5159 = dma.done.wait [#allocation3], 256  }
0x2a36   :  { %5160 = vsyncadd [#allocation3], 4294967040 }
0x2a37   :  { %5161 = dma.done.wait [#allocation5], 32  }
0x2a38   :  { %5162 = vsyncadd [#allocation5], 4294967264 }
0x2a39   :  { %4369 = vsyncpa [#allocation3], 1 }
0x2a3a   :  { %4370 = vsyncpa [#allocation5], 1 }

</bundles_post_ra>
